<compile_context>
chip_gen: v7x
topology: tpu7x:2x2x1
jax: 0.10.0
libtpu: 0.0.40
codegen_flags: <defaults>
</compile_context>

<pallas_src>
import jax
import jax.numpy as jnp
import numpy as np
from jax.experimental import pallas as pl
from jax.experimental.pallas import tpu as pltpu

_BN_EPS = 1e-5

_COMPILER_PARAMS = pltpu.CompilerParams(
    dimension_semantics=("parallel",),      # row-tile axis: independent work
    vmem_limit_bytes=32 * 1024 * 1024,      # explicit budget (fits v7x scoped VMEM)
)


# ---------------------------------------------------------------------------
# small helpers
# ---------------------------------------------------------------------------
def _ceil_to(x, m):
    return ((x + m - 1) // m) * m


def _pick_row_tile(nh, w_sp, target_flat_rows):
    """Largest divisor of nh that is a multiple of 8 (so the (sublane, lane)
    block dims satisfy the (8,128) rule) with th*W flattened rows <= target."""
    divs = [d for d in range(8, nh + 1, 8) if nh % d == 0]
    if not divs:
        return nh
    fitting = [d for d in divs if d * w_sp <= target_flat_rows]
    return max(fitting) if fitting else min(divs)


# ---------------------------------------------------------------------------
# Pallas kernels
# ---------------------------------------------------------------------------
def _conv3x3_bias_stats_kernel(xh_ref, w_ref, b_ref, y_ref, ssum_ref, ssq_ref):
    """3x3 conv tile + conv bias + per-tile BatchNorm partial statistics.

    xh_ref : (W+2, TH, 3*Ci) bf16   kh-stacked, width-padded input slab
    w_ref  : (3, 3*Ci, Cp)   bf16   folded weights (one K=3*Ci slab per kw tap)
    b_ref  : (1, Cp)         f32    conv bias
    y_ref  : (W, TH, Cp)     f32    raw conv output (pre-BN)
    ssum/ssq_ref : (8, Cp)   f32    per-tile sum / sum-of-squares (row 0, bcast)
    """
    wp2, th, cg = xh_ref.shape
    w_sp = wp2 - 2
    cp = y_ref.shape[-1]
    x = xh_ref[...]                                   # (W+2, TH, 3*Ci) bf16
    acc = jnp.zeros((w_sp * th, cp), jnp.float32)
    for kw in range(3):                               # 3 MXU matmuls, K = 3*Ci
        a = x[kw:kw + w_sp].reshape(w_sp * th, cg)    # leading-axis slice: free
        acc = acc + jnp.dot(a, w_ref[kw], preferred_element_type=jnp.float32)
    acc = acc + b_ref[...]                            # conv bias (f32)
    y_ref[...] = acc.reshape(w_sp, th, cp)
    # BatchNorm batch statistics: only *partial sums* per tile (global mean/var
    # is finalized in the wrapper), so tiling stays exact and the grid parallel.
    ssum_ref[...] = jnp.broadcast_to(jnp.sum(acc, axis=0, keepdims=True), (8, cp))
    ssq_ref[...] = jnp.broadcast_to(jnp.sum(acc * acc, axis=0, keepdims=True), (8, cp))


def _bn_relu_kernel(y_ref, s_ref, t_ref, h_ref):
    """h = relu(y * scale + shift); f32 math, bf16 (lane-dense) store."""
    h = y_ref[...] * s_ref[...] + t_ref[...]
    h_ref[...] = jnp.maximum(h, 0.0).astype(h_ref.dtype)


def _bn_relu_deconv_kernel(y_ref, s_ref, t_ref, wt_ref, bt_ref, o_ref):
    """relu(BN(y)) fused with ConvTranspose2d(k=2, s=2): ONE matmul whose N dim
    packs the 4 (kh,kw) taps -> a single contiguous 128-lane store."""
    w_sp, th, cp = y_ref.shape
    kt = o_ref.shape[-1]
    h = jnp.maximum(y_ref[...] * s_ref[...] + t_ref[...], 0.0)   # f32 BN/ReLU
    a = h.astype(jnp.bfloat16).reshape(w_sp * th, cp)
    o = jnp.dot(a, wt_ref[...], preferred_element_type=jnp.float32) + bt_ref[...]
    o_ref[...] = o.reshape(w_sp, th, kt)


# ---------------------------------------------------------------------------
# pallas_call wrappers (gridded, pipelined)
# ---------------------------------------------------------------------------
def _conv_bias_stats(xh, w_f, b_p, th):
    wp2, nh, cg = xh.shape
    w_sp = wp2 - 2
    cp = w_f.shape[-1]
    t = nh // th
    return pl.pallas_call(
        _conv3x3_bias_stats_kernel,
        grid=(t,),
        in_specs=[
            pl.BlockSpec((wp2, th, cg), lambda i: (0, i, 0)),
            pl.BlockSpec((3, cg, cp), lambda i: (0, 0, 0)),
            pl.BlockSpec((1, cp), lambda i: (0, 0)),
        ],
        out_specs=[
            pl.BlockSpec((w_sp, th, cp), lambda i: (0, i, 0)),
            pl.BlockSpec((8, cp), lambda i: (i, 0)),
            pl.BlockSpec((8, cp), lambda i: (i, 0)),
        ],
        out_shape=[
            jax.ShapeDtypeStruct((w_sp, nh, cp), jnp.float32),
            jax.ShapeDtypeStruct((t * 8, cp), jnp.float32),
            jax.ShapeDtypeStruct((t * 8, cp), jnp.float32),
        ],
        compiler_params=_COMPILER_PARAMS,
    )(xh, w_f, b_p)


def _bn_relu(y, scale, shift, th):
    w_sp, nh, cp = y.shape
    t = nh // th
    return pl.pallas_call(
        _bn_relu_kernel,
        grid=(t,),
        in_specs=[
            pl.BlockSpec((w_sp, th, cp), lambda i: (0, i, 0)),
            pl.BlockSpec((1, 1, cp), lambda i: (0, 0, 0)),
            pl.BlockSpec((1, 1, cp), lambda i: (0, 0, 0)),
        ],
        out_specs=pl.BlockSpec((w_sp, th, cp), lambda i: (0, i, 0)),
        out_shape=jax.ShapeDtypeStruct((w_sp, nh, cp), jnp.bfloat16),
        compiler_params=_COMPILER_PARAMS,
    )(y, scale, shift)


def _bn_relu_deconv(y, scale, shift, wt_f, bt_f, th):
    w_sp, nh, cp = y.shape
    kt = wt_f.shape[-1]
    t = nh // th
    return pl.pallas_call(
        _bn_relu_deconv_kernel,
        grid=(t,),
        in_specs=[
            pl.BlockSpec((w_sp, th, cp), lambda i: (0, i, 0)),
            pl.BlockSpec((1, 1, cp), lambda i: (0, 0, 0)),
            pl.BlockSpec((1, 1, cp), lambda i: (0, 0, 0)),
            pl.BlockSpec((cp, kt), lambda i: (0, 0)),
            pl.BlockSpec((1, kt), lambda i: (0, 0)),
        ],
        out_specs=pl.BlockSpec((w_sp, th, kt), lambda i: (0, i, 0)),
        out_shape=jax.ShapeDtypeStruct((w_sp, nh, kt), jnp.float32),
        compiler_params=_COMPILER_PARAMS,
    )(y, scale, shift, wt_f, bt_f)


# ---------------------------------------------------------------------------
# glue: stacking, weight folding, BN finalize
# ---------------------------------------------------------------------------
def _stack_rows(x_nhwc):
    """(N, H, W, Ci) -> (W+2, N*H, 3*Ci): SAME-pad spatially and stack the 3
    kh-shifts along channels; kw shifts are taken inside the kernel."""
    n, h, w, ci = x_nhwc.shape
    xp = jnp.pad(x_nhwc, ((0, 0), (1, 1), (1, 1), (0, 0)))
    slabs = [xp[:, kh:kh + h, :, :] for kh in range(3)]
    xs = jnp.concatenate(slabs, axis=-1).reshape(n * h, w + 2, 3 * ci)
    return jnp.transpose(xs, (1, 0, 2))


def _fold_conv_w(w_hwio, cin_pad, cout_pad):
    """(3,3,Cin,Cout) HWIO -> (3, 3*Cin_pad, Cout_pad) bf16, [kw][kh*Cin_pad+ci, co]."""
    _, _, cin, cout = w_hwio.shape
    wp = jnp.zeros((3, 3, cin_pad, cout_pad), jnp.float32)
    wp = wp.at[:, :, :cin, :cout].set(w_hwio.astype(jnp.float32))
    wf = jnp.transpose(wp, (1, 0, 2, 3)).reshape(3, 3 * cin_pad, cout_pad)
    return wf.astype(jnp.bfloat16)


def _fold_deconv_w(wt, cin_pad, cout_pad):
    """(2,2,Cin,Cout) -> (Cin_pad, 4*Cout_pad) bf16, [ci, (kh*2+kw)*Cout_pad+co]."""
    _, _, cin, cout = wt.shape
    wp = jnp.zeros((2, 2, cin_pad, cout_pad), jnp.float32)
    wp = wp.at[:, :, :cin, :cout].set(wt.astype(jnp.float32))
    return jnp.transpose(wp, (2, 0, 1, 3)).reshape(cin_pad, 4 * cout_pad).astype(jnp.bfloat16)


def _pad_vec(v, size):
    out = jnp.zeros((size,), jnp.float32)
    return out.at[: v.shape[0]].set(v.astype(jnp.float32))


def _bn_scale_shift(ssum, ssq, count, gamma_p, beta_p):
    """Global BatchNorm (training mode, biased var) from per-tile partial sums."""
    cp = ssum.shape[-1]
    s = ssum.reshape(-1, 8, cp)[:, 0, :].sum(axis=0)
    q = ssq.reshape(-1, 8, cp)[:, 0, :].sum(axis=0)
    mean = s / count
    var = jnp.maximum(q / count - mean * mean, 0.0)
    scale = gamma_p * jax.lax.rsqrt(var + _BN_EPS)
    shift = beta_p - mean * scale
    return scale.reshape(1, 1, cp), shift.reshape(1, 1, cp)


# ---------------------------------------------------------------------------
# forward
# ---------------------------------------------------------------------------
def upblock_forward(x1, x2, params, *, target_flat_rows=2048):
    """x1, x2: NCHW (N, C, H, W).  Returns NCHW (N, Cout, 2H, 2W)."""
    n, c, h, w = x1.shape
    cout = params["bt"].shape[0]
    nh = n * h
    cp = _ceil_to(c, 128)            # conv channels padded -> lane-dense stores
    ci1 = _ceil_to(2 * c, 8)         # stage-1 input channels (matmul K granularity)
    coutp = _ceil_to(cout, 32)       # 4*coutp is a multiple of 128 lanes
    th = _pick_row_tile(nh, w, target_flat_rows)
    count = float(n * h * w)

    # NCHW -> NHWC, channel concat (torch.cat([x2, x1], dim=1)), pad, bf16
    x1n = jnp.transpose(x1, (0, 2, 3, 1)).astype(jnp.float32)
    x2n = jnp.transpose(x2, (0, 2, 3, 1)).astype(jnp.float32)
    x = jnp.concatenate([x2n, x1n], axis=-1)                       # (N,H,W,2C)
    x = jnp.pad(x, ((0, 0), (0, 0), (0, 0), (0, ci1 - 2 * c))).astype(jnp.bfloat16)
    xh1 = _stack_rows(x)                                           # (W+2, NH, 3*ci1)

    # ---- stage 1: conv3x3(2C->C) + bias, two-pass BN, ReLU ------------------
    w1f = _fold_conv_w(params["w1"], ci1, cp)
    b1p = _pad_vec(params["b1"], cp).reshape(1, cp)
    y1, ss1, sq1 = _conv_bias_stats(xh1, w1f, b1p, th)
    s1, t1 = _bn_scale_shift(ss1, sq1, count,
                             _pad_vec(params["g1"], cp), _pad_vec(params["beta1"], cp))
    h1 = _bn_relu(y1, s1, t1, th)                                  # (W, NH, cp) bf16

    # ---- stage 2: conv3x3(C->C) + BN + ReLU fused with ConvTranspose2d ------
    h1_nhwc = jnp.transpose(h1, (1, 0, 2)).reshape(n, h, w, cp)
    xh2 = _stack_rows(h1_nhwc)                                     # (W+2, NH, 3*cp)
    w2f = _fold_conv_w(params["w2"], cp, cp)
    b2p = _pad_vec(params["b2"], cp).reshape(1, cp)
    y2, ss2, sq2 = _conv_bias_stats(xh2, w2f, b2p, th)
    s2, t2 = _bn_scale_shift(ss2, sq2, count,
                             _pad_vec(params["g2"], cp), _pad_vec(params["beta2"], cp))

    wtf = _fold_deconv_w(params["wt"], cp, coutp)                  # (cp, 4*coutp)
    btf = jnp.tile(_pad_vec(params["bt"], coutp), 4).reshape(1, 4 * coutp)
    o = _bn_relu_deconv(y2, s2, t2, wtf, btf, th)                  # (W, NH, 4*coutp)

    # interleave the 4 taps: out[n, 2h+kh, 2w+kw, co] = tap(kh, kw); strip pad
    o = jnp.transpose(o, (1, 0, 2)).reshape(n, h, w, 2, 2, coutp)[..., :cout]
    o = jnp.transpose(o, (0, 1, 3, 2, 4, 5)).reshape(n, 2 * h, 2 * w, cout)
    return jnp.transpose(o, (0, 3, 1, 2))                          # back to NCHW


# ---------------------------------------------------------------------------
# Pure-JAX reference (independent code path) for correctness checking
# ---------------------------------------------------------------------------
def ref_forward(x1, x2, params):
    x1n = jnp.transpose(x1, (0, 2, 3, 1)).astype(jnp.float32)
    x2n = jnp.transpose(x2, (0, 2, 3, 1)).astype(jnp.float32)
    x = jnp.concatenate([x2n, x1n], axis=-1)

    def conv_bn_relu(hh, w, b, g, beta):
        y = jax.lax.conv_general_dilated(
            hh, w, (1, 1), ((1, 1), (1, 1)),
            dimension_numbers=("NHWC", "HWIO", "NHWC"),
            precision=jax.lax.Precision.HIGHEST) + b
        mean = jnp.mean(y, axis=(0, 1, 2), keepdims=True)
        var = jnp.mean(jnp.square(y - mean), axis=(0, 1, 2), keepdims=True)
        return jnp.maximum((y - mean) * jax.lax.rsqrt(var + _BN_EPS) * g + beta, 0.0)

    hh = conv_bn_relu(x, params["w1"], params["b1"], params["g1"], params["beta1"])
    hh = conv_bn_relu(hh, params["w2"], params["b2"], params["g2"], params["beta2"])

    n, h, w, _ = hh.shape
    cout = params["bt"].shape[0]
    y = jnp.einsum("nhwc,xycd->nhxwyd", hh, params["wt"],
                   precision=jax.lax.Precision.HIGHEST)
    y = y.reshape(n, 2 * h, 2 * w, cout) + params["bt"]
    return jnp.transpose(y, (0, 3, 1, 2))


# ---------------------------------------------------------------------------
if __name__ == "__main__":
    N, Cin, Cout, H, W = 2, 4, 4, 16, 16
    C2 = 2 * Cin

    key = jax.random.PRNGKey(0)
    ks = jax.random.split(key, 12)

    x1 = jax.random.normal(ks[0], (N, Cin, H, W), jnp.float32)
    x2 = jax.random.normal(ks[1], (N, Cin, H, W), jnp.float32)

    # Deterministic synthetic parameters (shapes dictated by UpBlock.__init__).
    params = dict(
        w1=jax.random.normal(ks[2], (3, 3, C2, Cin), jnp.float32) / jnp.sqrt(9.0 * C2),
        b1=0.1 * jax.random.normal(ks[3], (Cin,), jnp.float32),
        g1=1.0 + 0.1 * jax.random.normal(ks[4], (Cin,), jnp.float32),
        beta1=0.1 * jax.random.normal(ks[5], (Cin,), jnp.float32),
        w2=jax.random.normal(ks[6], (3, 3, Cin, Cin), jnp.float32) / jnp.sqrt(9.0 * Cin),
        b2=0.1 * jax.random.normal(ks[7], (Cin,), jnp.float32),
        g2=1.0 + 0.1 * jax.random.normal(ks[8], (Cin,), jnp.float32),
        beta2=0.1 * jax.random.normal(ks[9], (Cin,), jnp.float32),
        wt=jax.random.normal(ks[10], (2, 2, Cin, Cout), jnp.float32) / jnp.sqrt(4.0 * Cin),
        bt=0.1 * jax.random.normal(ks[11], (Cout,), jnp.float32),
    )

    # The kernel feeds the MXU bf16 operands (per perf guidance); round the test
    # data to bf16-representable values so the f32 reference sees identical
    # inputs and only the bf16 intermediate storage contributes to the diff.
    rnd = lambda a: a.astype(jnp.bfloat16).astype(jnp.float32)
    x1, x2 = rnd(x1), rnd(x2)
    params = {k: rnd(v) for k, v in params.items()}

    fwd = jax.jit(upblock_forward, static_argnames=("target_flat_rows",))
    # target_flat_rows=256 -> 2 row tiles at this toy size, exercising the
    # multi-tile pipelined path (default 2048 for realistic feature maps).
    out = jax.block_until_ready(fwd(x1, x2, params, target_flat_rows=256))
    assert out.shape == (N, Cout, 2 * H, 2 * W), out.shape

    ref = jax.block_until_ready(ref_forward(x1, x2, params))
    np.testing.assert_allclose(np.asarray(out), np.asarray(ref), rtol=2e-2, atol=2e-2)

    print("KERNEL_OK")
</pallas_src>

<mosaic_0001>
module attributes {stable_mosaic.version = 11 : i64} {
  func.func @_conv3x3_bias_stats_kernel(%arg0: i32, %arg1: memref<18x16x24xbf16, #tpu.memory_space<vmem>>, %arg2: memref<3x24x128xbf16, #tpu.memory_space<vmem>>, %arg3: memref<1x128xf32, #tpu.memory_space<vmem>>, %arg4: memref<16x16x128xf32, #tpu.memory_space<vmem>>, %arg5: memref<8x128xf32, #tpu.memory_space<vmem>>, %arg6: memref<8x128xf32, #tpu.memory_space<vmem>>) attributes {dimension_semantics = [#tpu.dimension_semantics<parallel>], iteration_bounds = array<i64: 2>, scalar_prefetch = 0 : i64, scratch_operands = 0 : i64, tpu.core_type = #tpu.core_type<tc>, window_params = [{transform_indices = @transform_0, window_bounds = array<i64: 18, 16, 24>}, {pipeline_mode = #tpu.pipeline_mode<synchronous>, transform_indices = @transform_1, window_bounds = array<i64: 3, 24, 128>}, {pipeline_mode = #tpu.pipeline_mode<synchronous>, transform_indices = @transform_2, window_bounds = array<i64: 1, 128>}, {transform_indices = @transform_3, window_bounds = array<i64: 16, 16, 128>}, {transform_indices = @transform_4, window_bounds = array<i64: 8, 128>}, {transform_indices = @transform_5, window_bounds = array<i64: 8, 128>}]} {
    %c0 = arith.constant 0 : index
    %c0_0 = arith.constant 0 : index
    %c0_1 = arith.constant 0 : index
    %0 = vector.load %arg1[%c0, %c0_0, %c0_1] : memref<18x16x24xbf16, #tpu.memory_space<vmem>>, vector<18x16x24xbf16>
    %cst = arith.constant 0.000000e+00 : f32
    %1 = vector.broadcast %cst : f32 to vector<256x128xf32>
    %2 = vector.extract_strided_slice %0 {offsets = [0, 0, 0], sizes = [16, 16, 24], strides = [1, 1, 1]} : vector<18x16x24xbf16> to vector<16x16x24xbf16>
    %3 = vector.shape_cast %2 : vector<16x16x24xbf16> to vector<256x24xbf16>
    %c0_2 = arith.constant 0 : index
    %c0_3 = arith.constant 0 : index
    %c0_4 = arith.constant 0 : index
    %4 = vector.load %arg2[%c0_2, %c0_3, %c0_4] : memref<3x24x128xbf16, #tpu.memory_space<vmem>>, vector<1x24x128xbf16>
    %5 = vector.shape_cast %4 : vector<1x24x128xbf16> to vector<24x128xbf16>
    %cst_5 = arith.constant dense<0.000000e+00> : vector<256x128xf32>
    %6 = tpu.matmul %3, %5, %cst_5 {dimension_numbers = #tpu.dot_dimension_numbers<[1], [0], [0], [1], [0, 0, 1, 1], [], []>} : vector<256x24xbf16>, vector<24x128xbf16>, vector<256x128xf32> -> vector<256x128xf32>
    %7 = arith.addf %1, %6 : vector<256x128xf32>
    %8 = vector.extract_strided_slice %0 {offsets = [1, 0, 0], sizes = [16, 16, 24], strides = [1, 1, 1]} : vector<18x16x24xbf16> to vector<16x16x24xbf16>
    %9 = vector.shape_cast %8 : vector<16x16x24xbf16> to vector<256x24xbf16>
    %c1 = arith.constant 1 : index
    %c0_6 = arith.constant 0 : index
    %c0_7 = arith.constant 0 : index
    %10 = vector.load %arg2[%c1, %c0_6, %c0_7] : memref<3x24x128xbf16, #tpu.memory_space<vmem>>, vector<1x24x128xbf16>
    %11 = vector.shape_cast %10 : vector<1x24x128xbf16> to vector<24x128xbf16>
    %cst_8 = arith.constant dense<0.000000e+00> : vector<256x128xf32>
    %12 = tpu.matmul %9, %11, %cst_8 {dimension_numbers = #tpu.dot_dimension_numbers<[1], [0], [0], [1], [0, 0, 1, 1], [], []>} : vector<256x24xbf16>, vector<24x128xbf16>, vector<256x128xf32> -> vector<256x128xf32>
    %13 = arith.addf %7, %12 : vector<256x128xf32>
    %14 = vector.extract_strided_slice %0 {offsets = [2, 0, 0], sizes = [16, 16, 24], strides = [1, 1, 1]} : vector<18x16x24xbf16> to vector<16x16x24xbf16>
    %15 = vector.shape_cast %14 : vector<16x16x24xbf16> to vector<256x24xbf16>
    %c2 = arith.constant 2 : index
    %c0_9 = arith.constant 0 : index
    %c0_10 = arith.constant 0 : index
    %16 = vector.load %arg2[%c2, %c0_9, %c0_10] : memref<3x24x128xbf16, #tpu.memory_space<vmem>>, vector<1x24x128xbf16>
    %17 = vector.shape_cast %16 : vector<1x24x128xbf16> to vector<24x128xbf16>
    %cst_11 = arith.constant dense<0.000000e+00> : vector<256x128xf32>
    %18 = tpu.matmul %15, %17, %cst_11 {dimension_numbers = #tpu.dot_dimension_numbers<[1], [0], [0], [1], [0, 0, 1, 1], [], []>} : vector<256x24xbf16>, vector<24x128xbf16>, vector<256x128xf32> -> vector<256x128xf32>
    %19 = arith.addf %13, %18 : vector<256x128xf32>
    %c0_12 = arith.constant 0 : index
    %c0_13 = arith.constant 0 : index
    %20 = vector.load %arg3[%c0_12, %c0_13] : memref<1x128xf32, #tpu.memory_space<vmem>>, vector<1x128xf32>
    %21 = vector.broadcast %20 : vector<1x128xf32> to vector<256x128xf32>
    %22 = arith.addf %19, %21 : vector<256x128xf32>
    %23 = vector.shape_cast %22 : vector<256x128xf32> to vector<16x16x128xf32>
    %c0_14 = arith.constant 0 : index
    %c0_15 = arith.constant 0 : index
    %c0_16 = arith.constant 0 : index
    %24 = vector.load %arg4[%c0_14, %c0_15, %c0_16] : memref<16x16x128xf32, #tpu.memory_space<vmem>>, vector<16x16x128xf32>
    tpu.vector_store %arg4[%c0_14, %c0_15, %c0_16], %23 {strides = array<i32>} : memref<16x16x128xf32, #tpu.memory_space<vmem>>, vector<16x16x128xf32>,
    %cst_17 = arith.constant dense<0.000000e+00> : vector<128xf32>
    %25 = vector.multi_reduction <add>, %22, %cst_17 [0] : vector<256x128xf32> to vector<128xf32>
    %26 = vector.shape_cast %25 : vector<128xf32> to vector<1x128xf32>
    %27 = vector.shape_cast %26 : vector<1x128xf32> to vector<1x128xf32>
    %28 = vector.broadcast %27 : vector<1x128xf32> to vector<8x128xf32>
    %c0_18 = arith.constant 0 : index
    %c0_19 = arith.constant 0 : index
    %29 = vector.load %arg5[%c0_18, %c0_19] : memref<8x128xf32, #tpu.memory_space<vmem>>, vector<8x128xf32>
    tpu.vector_store %arg5[%c0_18, %c0_19], %28 {strides = array<i32>} : memref<8x128xf32, #tpu.memory_space<vmem>>, vector<8x128xf32>,
    %30 = arith.mulf %22, %22 : vector<256x128xf32>
    %cst_20 = arith.constant dense<0.000000e+00> : vector<128xf32>
    %31 = vector.multi_reduction <add>, %30, %cst_20 [0] : vector<256x128xf32> to vector<128xf32>
    %32 = vector.shape_cast %31 : vector<128xf32> to vector<1x128xf32>
    %33 = vector.shape_cast %32 : vector<1x128xf32> to vector<1x128xf32>
    %34 = vector.broadcast %33 : vector<1x128xf32> to vector<8x128xf32>
    %c0_21 = arith.constant 0 : index
    %c0_22 = arith.constant 0 : index
    %35 = vector.load %arg6[%c0_21, %c0_22] : memref<8x128xf32, #tpu.memory_space<vmem>>, vector<8x128xf32>
    tpu.vector_store %arg6[%c0_21, %c0_22], %34 {strides = array<i32>} : memref<8x128xf32, #tpu.memory_space<vmem>>, vector<8x128xf32>,
    return
  }
  func.func @transform_0(%arg0: i32) -> (i32, i32, i32) {
    %c0_i32 = arith.constant 0 : i32
    %c0_i32_0 = arith.constant 0 : i32
    %c0_i32_1 = arith.constant 0 : i32
    return %c0_i32, %arg0, %c0_i32_0 : i32, i32, i32
  }
  func.func @transform_1(%arg0: i32) -> (i32, i32, i32) {
    %c0_i32 = arith.constant 0 : i32
    %c0_i32_0 = arith.constant 0 : i32
    %c0_i32_1 = arith.constant 0 : i32
    %c0_i32_2 = arith.constant 0 : i32
    return %c0_i32, %c0_i32_0, %c0_i32_1 : i32, i32, i32
  }
  func.func @transform_2(%arg0: i32) -> (i32, i32) {
    %c0_i32 = arith.constant 0 : i32
    %c0_i32_0 = arith.constant 0 : i32
    %c0_i32_1 = arith.constant 0 : i32
    return %c0_i32, %c0_i32_0 : i32, i32
  }
  func.func @transform_3(%arg0: i32) -> (i32, i32, i32) {
    %c0_i32 = arith.constant 0 : i32
    %c0_i32_0 = arith.constant 0 : i32
    %c0_i32_1 = arith.constant 0 : i32
    return %c0_i32, %arg0, %c0_i32_0 : i32, i32, i32
  }
  func.func @transform_4(%arg0: i32) -> (i32, i32) {
    %c0_i32 = arith.constant 0 : i32
    %c0_i32_0 = arith.constant 0 : i32
    return %arg0, %c0_i32 : i32, i32
  }
  func.func @transform_5(%arg0: i32) -> (i32, i32) {
    %c0_i32 = arith.constant 0 : i32
    %c0_i32_0 = arith.constant 0 : i32
    return %arg0, %c0_i32 : i32, i32
  }
}

module attributes {stable_mosaic.version = 11 : i64} {
  func.func @_bn_relu_kernel(%arg0: i32, %arg1: memref<16x16x128xf32, #tpu.memory_space<vmem>>, %arg2: memref<1x1x128xf32, #tpu.memory_space<vmem>>, %arg3: memref<1x1x128xf32, #tpu.memory_space<vmem>>, %arg4: memref<16x16x128xbf16, #tpu.memory_space<vmem>>) attributes {dimension_semantics = [#tpu.dimension_semantics<parallel>], iteration_bounds = array<i64: 2>, scalar_prefetch = 0 : i64, scratch_operands = 0 : i64, tpu.core_type = #tpu.core_type<tc>, window_params = [{transform_indices = @transform_0, window_bounds = array<i64: 16, 16, 128>}, {pipeline_mode = #tpu.pipeline_mode<synchronous>, transform_indices = @transform_1, window_bounds = array<i64: 1, 1, 128>}, {pipeline_mode = #tpu.pipeline_mode<synchronous>, transform_indices = @transform_2, window_bounds = array<i64: 1, 1, 128>}, {transform_indices = @transform_3, window_bounds = array<i64: 16, 16, 128>}]} {
    %c0 = arith.constant 0 : index
    %c0_0 = arith.constant 0 : index
    %c0_1 = arith.constant 0 : index
    %0 = vector.load %arg1[%c0, %c0_0, %c0_1] : memref<16x16x128xf32, #tpu.memory_space<vmem>>, vector<16x16x128xf32>
    %c0_2 = arith.constant 0 : index
    %c0_3 = arith.constant 0 : index
    %c0_4 = arith.constant 0 : index
    %1 = vector.load %arg2[%c0_2, %c0_3, %c0_4] : memref<1x1x128xf32, #tpu.memory_space<vmem>>, vector<1x1x128xf32>
    %2 = vector.broadcast %1 : vector<1x1x128xf32> to vector<16x16x128xf32>
    %3 = arith.mulf %0, %2 : vector<16x16x128xf32>
    %c0_5 = arith.constant 0 : index
    %c0_6 = arith.constant 0 : index
    %c0_7 = arith.constant 0 : index
    %4 = vector.load %arg3[%c0_5, %c0_6, %c0_7] : memref<1x1x128xf32, #tpu.memory_space<vmem>>, vector<1x1x128xf32>
    %5 = vector.broadcast %4 : vector<1x1x128xf32> to vector<16x16x128xf32>
    %6 = arith.addf %3, %5 : vector<16x16x128xf32>
    %cst = arith.constant 0.000000e+00 : f32
    %7 = vector.broadcast %cst : f32 to vector<16x16x128xf32>
    %8 = arith.maximumf %6, %7 : vector<16x16x128xf32>
    %9 = arith.truncf %8 : vector<16x16x128xf32> to vector<16x16x128xbf16>
    %c0_8 = arith.constant 0 : index
    %c0_9 = arith.constant 0 : index
    %c0_10 = arith.constant 0 : index
    %10 = vector.load %arg4[%c0_8, %c0_9, %c0_10] : memref<16x16x128xbf16, #tpu.memory_space<vmem>>, vector<16x16x128xbf16>
    tpu.vector_store %arg4[%c0_8, %c0_9, %c0_10], %9 {strides = array<i32>} : memref<16x16x128xbf16, #tpu.memory_space<vmem>>, vector<16x16x128xbf16>,
    return
  }
  func.func @transform_0(%arg0: i32) -> (i32, i32, i32) {
    %c0_i32 = arith.constant 0 : i32
    %c0_i32_0 = arith.constant 0 : i32
    %c0_i32_1 = arith.constant 0 : i32
    return %c0_i32, %arg0, %c0_i32_0 : i32, i32, i32
  }
  func.func @transform_1(%arg0: i32) -> (i32, i32, i32) {
    %c0_i32 = arith.constant 0 : i32
    %c0_i32_0 = arith.constant 0 : i32
    %c0_i32_1 = arith.constant 0 : i32
    %c0_i32_2 = arith.constant 0 : i32
    return %c0_i32, %c0_i32_0, %c0_i32_1 : i32, i32, i32
  }
  func.func @transform_2(%arg0: i32) -> (i32, i32, i32) {
    %c0_i32 = arith.constant 0 : i32
    %c0_i32_0 = arith.constant 0 : i32
    %c0_i32_1 = arith.constant 0 : i32
    %c0_i32_2 = arith.constant 0 : i32
    return %c0_i32, %c0_i32_0, %c0_i32_1 : i32, i32, i32
  }
  func.func @transform_3(%arg0: i32) -> (i32, i32, i32) {
    %c0_i32 = arith.constant 0 : i32
    %c0_i32_0 = arith.constant 0 : i32
    %c0_i32_1 = arith.constant 0 : i32
    return %c0_i32, %arg0, %c0_i32_0 : i32, i32, i32
  }
}

module attributes {stable_mosaic.version = 11 : i64} {
  func.func @_conv3x3_bias_stats_kernel(%arg0: i32, %arg1: memref<18x16x384xbf16, #tpu.memory_space<vmem>>, %arg2: memref<3x384x128xbf16, #tpu.memory_space<vmem>>, %arg3: memref<1x128xf32, #tpu.memory_space<vmem>>, %arg4: memref<16x16x128xf32, #tpu.memory_space<vmem>>, %arg5: memref<8x128xf32, #tpu.memory_space<vmem>>, %arg6: memref<8x128xf32, #tpu.memory_space<vmem>>) attributes {dimension_semantics = [#tpu.dimension_semantics<parallel>], iteration_bounds = array<i64: 2>, scalar_prefetch = 0 : i64, scratch_operands = 0 : i64, tpu.core_type = #tpu.core_type<tc>, window_params = [{transform_indices = @transform_0, window_bounds = array<i64: 18, 16, 384>}, {pipeline_mode = #tpu.pipeline_mode<synchronous>, transform_indices = @transform_1, window_bounds = array<i64: 3, 384, 128>}, {pipeline_mode = #tpu.pipeline_mode<synchronous>, transform_indices = @transform_2, window_bounds = array<i64: 1, 128>}, {transform_indices = @transform_3, window_bounds = array<i64: 16, 16, 128>}, {transform_indices = @transform_4, window_bounds = array<i64: 8, 128>}, {transform_indices = @transform_5, window_bounds = array<i64: 8, 128>}]} {
    %c0 = arith.constant 0 : index
    %c0_0 = arith.constant 0 : index
    %c0_1 = arith.constant 0 : index
    %0 = vector.load %arg1[%c0, %c0_0, %c0_1] : memref<18x16x384xbf16, #tpu.memory_space<vmem>>, vector<18x16x384xbf16>
    %cst = arith.constant 0.000000e+00 : f32
    %1 = vector.broadcast %cst : f32 to vector<256x128xf32>
    %2 = vector.extract_strided_slice %0 {offsets = [0, 0, 0], sizes = [16, 16, 384], strides = [1, 1, 1]} : vector<18x16x384xbf16> to vector<16x16x384xbf16>
    %3 = vector.shape_cast %2 : vector<16x16x384xbf16> to vector<256x384xbf16>
    %c0_2 = arith.constant 0 : index
    %c0_3 = arith.constant 0 : index
    %c0_4 = arith.constant 0 : index
    %4 = vector.load %arg2[%c0_2, %c0_3, %c0_4] : memref<3x384x128xbf16, #tpu.memory_space<vmem>>, vector<1x384x128xbf16>
    %5 = vector.shape_cast %4 : vector<1x384x128xbf16> to vector<384x128xbf16>
    %cst_5 = arith.constant dense<0.000000e+00> : vector<256x128xf32>
    %6 = tpu.matmul %3, %5, %cst_5 {dimension_numbers = #tpu.dot_dimension_numbers<[1], [0], [0], [1], [0, 0, 1, 1], [], []>} : vector<256x384xbf16>, vector<384x128xbf16>, vector<256x128xf32> -> vector<256x128xf32>
    %7 = arith.addf %1, %6 : vector<256x128xf32>
    %8 = vector.extract_strided_slice %0 {offsets = [1, 0, 0], sizes = [16, 16, 384], strides = [1, 1, 1]} : vector<18x16x384xbf16> to vector<16x16x384xbf16>
    %9 = vector.shape_cast %8 : vector<16x16x384xbf16> to vector<256x384xbf16>
    %c1 = arith.constant 1 : index
    %c0_6 = arith.constant 0 : index
    %c0_7 = arith.constant 0 : index
    %10 = vector.load %arg2[%c1, %c0_6, %c0_7] : memref<3x384x128xbf16, #tpu.memory_space<vmem>>, vector<1x384x128xbf16>
    %11 = vector.shape_cast %10 : vector<1x384x128xbf16> to vector<384x128xbf16>
    %cst_8 = arith.constant dense<0.000000e+00> : vector<256x128xf32>
    %12 = tpu.matmul %9, %11, %cst_8 {dimension_numbers = #tpu.dot_dimension_numbers<[1], [0], [0], [1], [0, 0, 1, 1], [], []>} : vector<256x384xbf16>, vector<384x128xbf16>, vector<256x128xf32> -> vector<256x128xf32>
    %13 = arith.addf %7, %12 : vector<256x128xf32>
    %14 = vector.extract_strided_slice %0 {offsets = [2, 0, 0], sizes = [16, 16, 384], strides = [1, 1, 1]} : vector<18x16x384xbf16> to vector<16x16x384xbf16>
    %15 = vector.shape_cast %14 : vector<16x16x384xbf16> to vector<256x384xbf16>
    %c2 = arith.constant 2 : index
    %c0_9 = arith.constant 0 : index
    %c0_10 = arith.constant 0 : index
    %16 = vector.load %arg2[%c2, %c0_9, %c0_10] : memref<3x384x128xbf16, #tpu.memory_space<vmem>>, vector<1x384x128xbf16>
    %17 = vector.shape_cast %16 : vector<1x384x128xbf16> to vector<384x128xbf16>
    %cst_11 = arith.constant dense<0.000000e+00> : vector<256x128xf32>
    %18 = tpu.matmul %15, %17, %cst_11 {dimension_numbers = #tpu.dot_dimension_numbers<[1], [0], [0], [1], [0, 0, 1, 1], [], []>} : vector<256x384xbf16>, vector<384x128xbf16>, vector<256x128xf32> -> vector<256x128xf32>
    %19 = arith.addf %13, %18 : vector<256x128xf32>
    %c0_12 = arith.constant 0 : index
    %c0_13 = arith.constant 0 : index
    %20 = vector.load %arg3[%c0_12, %c0_13] : memref<1x128xf32, #tpu.memory_space<vmem>>, vector<1x128xf32>
    %21 = vector.broadcast %20 : vector<1x128xf32> to vector<256x128xf32>
    %22 = arith.addf %19, %21 : vector<256x128xf32>
    %23 = vector.shape_cast %22 : vector<256x128xf32> to vector<16x16x128xf32>
    %c0_14 = arith.constant 0 : index
    %c0_15 = arith.constant 0 : index
    %c0_16 = arith.constant 0 : index
    %24 = vector.load %arg4[%c0_14, %c0_15, %c0_16] : memref<16x16x128xf32, #tpu.memory_space<vmem>>, vector<16x16x128xf32>
    tpu.vector_store %arg4[%c0_14, %c0_15, %c0_16], %23 {strides = array<i32>} : memref<16x16x128xf32, #tpu.memory_space<vmem>>, vector<16x16x128xf32>,
    %cst_17 = arith.constant dense<0.000000e+00> : vector<128xf32>
    %25 = vector.multi_reduction <add>, %22, %cst_17 [0] : vector<256x128xf32> to vector<128xf32>
    %26 = vector.shape_cast %25 : vector<128xf32> to vector<1x128xf32>
    %27 = vector.shape_cast %26 : vector<1x128xf32> to vector<1x128xf32>
    %28 = vector.broadcast %27 : vector<1x128xf32> to vector<8x128xf32>
    %c0_18 = arith.constant 0 : index
    %c0_19 = arith.constant 0 : index
    %29 = vector.load %arg5[%c0_18, %c0_19] : memref<8x128xf32, #tpu.memory_space<vmem>>, vector<8x128xf32>
    tpu.vector_store %arg5[%c0_18, %c0_19], %28 {strides = array<i32>} : memref<8x128xf32, #tpu.memory_space<vmem>>, vector<8x128xf32>,
    %30 = arith.mulf %22, %22 : vector<256x128xf32>
    %cst_20 = arith.constant dense<0.000000e+00> : vector<128xf32>
    %31 = vector.multi_reduction <add>, %30, %cst_20 [0] : vector<256x128xf32> to vector<128xf32>
    %32 = vector.shape_cast %31 : vector<128xf32> to vector<1x128xf32>
    %33 = vector.shape_cast %32 : vector<1x128xf32> to vector<1x128xf32>
    %34 = vector.broadcast %33 : vector<1x128xf32> to vector<8x128xf32>
    %c0_21 = arith.constant 0 : index
    %c0_22 = arith.constant 0 : index
    %35 = vector.load %arg6[%c0_21, %c0_22] : memref<8x128xf32, #tpu.memory_space<vmem>>, vector<8x128xf32>
    tpu.vector_store %arg6[%c0_21, %c0_22], %34 {strides = array<i32>} : memref<8x128xf32, #tpu.memory_space<vmem>>, vector<8x128xf32>,
    return
  }
  func.func @transform_0(%arg0: i32) -> (i32, i32, i32) {
    %c0_i32 = arith.constant 0 : i32
    %c0_i32_0 = arith.constant 0 : i32
    %c0_i32_1 = arith.constant 0 : i32
    return %c0_i32, %arg0, %c0_i32_0 : i32, i32, i32
  }
  func.func @transform_1(%arg0: i32) -> (i32, i32, i32) {
    %c0_i32 = arith.constant 0 : i32
    %c0_i32_0 = arith.constant 0 : i32
    %c0_i32_1 = arith.constant 0 : i32
    %c0_i32_2 = arith.constant 0 : i32
    return %c0_i32, %c0_i32_0, %c0_i32_1 : i32, i32, i32
  }
  func.func @transform_2(%arg0: i32) -> (i32, i32) {
    %c0_i32 = arith.constant 0 : i32
    %c0_i32_0 = arith.constant 0 : i32
    %c0_i32_1 = arith.constant 0 : i32
    return %c0_i32, %c0_i32_0 : i32, i32
  }
  func.func @transform_3(%arg0: i32) -> (i32, i32, i32) {
    %c0_i32 = arith.constant 0 : i32
    %c0_i32_0 = arith.constant 0 : i32
    %c0_i32_1 = arith.constant 0 : i32
    return %c0_i32, %arg0, %c0_i32_0 : i32, i32, i32
  }
  func.func @transform_4(%arg0: i32) -> (i32, i32) {
    %c0_i32 = arith.constant 0 : i32
    %c0_i32_0 = arith.constant 0 : i32
    return %arg0, %c0_i32 : i32, i32
  }
  func.func @transform_5(%arg0: i32) -> (i32, i32) {
    %c0_i32 = arith.constant 0 : i32
    %c0_i32_0 = arith.constant 0 : i32
    return %arg0, %c0_i32 : i32, i32
  }
}

module attributes {stable_mosaic.version = 11 : i64} {
  func.func @_bn_relu_deconv_kernel(%arg0: i32, %arg1: memref<16x16x128xf32, #tpu.memory_space<vmem>>, %arg2: memref<1x1x128xf32, #tpu.memory_space<vmem>>, %arg3: memref<1x1x128xf32, #tpu.memory_space<vmem>>, %arg4: memref<128x128xbf16, #tpu.memory_space<vmem>>, %arg5: memref<1x128xf32, #tpu.memory_space<vmem>>, %arg6: memref<16x16x128xf32, #tpu.memory_space<vmem>>) attributes {dimension_semantics = [#tpu.dimension_semantics<parallel>], iteration_bounds = array<i64: 2>, scalar_prefetch = 0 : i64, scratch_operands = 0 : i64, tpu.core_type = #tpu.core_type<tc>, window_params = [{transform_indices = @transform_0, window_bounds = array<i64: 16, 16, 128>}, {pipeline_mode = #tpu.pipeline_mode<synchronous>, transform_indices = @transform_1, window_bounds = array<i64: 1, 1, 128>}, {pipeline_mode = #tpu.pipeline_mode<synchronous>, transform_indices = @transform_2, window_bounds = array<i64: 1, 1, 128>}, {pipeline_mode = #tpu.pipeline_mode<synchronous>, transform_indices = @transform_3, window_bounds = array<i64: 128, 128>}, {pipeline_mode = #tpu.pipeline_mode<synchronous>, transform_indices = @transform_4, window_bounds = array<i64: 1, 128>}, {transform_indices = @transform_5, window_bounds = array<i64: 16, 16, 128>}]} {
    %c0 = arith.constant 0 : index
    %c0_0 = arith.constant 0 : index
    %c0_1 = arith.constant 0 : index
    %0 = vector.load %arg1[%c0, %c0_0, %c0_1] : memref<16x16x128xf32, #tpu.memory_space<vmem>>, vector<16x16x128xf32>
    %c0_2 = arith.constant 0 : index
    %c0_3 = arith.constant 0 : index
    %c0_4 = arith.constant 0 : index
    %1 = vector.load %arg2[%c0_2, %c0_3, %c0_4] : memref<1x1x128xf32, #tpu.memory_space<vmem>>, vector<1x1x128xf32>
    %2 = vector.broadcast %1 : vector<1x1x128xf32> to vector<16x16x128xf32>
    %3 = arith.mulf %0, %2 : vector<16x16x128xf32>
    %c0_5 = arith.constant 0 : index
    %c0_6 = arith.constant 0 : index
    %c0_7 = arith.constant 0 : index
    %4 = vector.load %arg3[%c0_5, %c0_6, %c0_7] : memref<1x1x128xf32, #tpu.memory_space<vmem>>, vector<1x1x128xf32>
    %5 = vector.broadcast %4 : vector<1x1x128xf32> to vector<16x16x128xf32>
    %6 = arith.addf %3, %5 : vector<16x16x128xf32>
    %cst = arith.constant 0.000000e+00 : f32
    %7 = vector.broadcast %cst : f32 to vector<16x16x128xf32>
    %8 = arith.maximumf %6, %7 : vector<16x16x128xf32>
    %9 = arith.truncf %8 : vector<16x16x128xf32> to vector<16x16x128xbf16>
    %10 = vector.shape_cast %9 : vector<16x16x128xbf16> to vector<256x128xbf16>
    %c0_8 = arith.constant 0 : index
    %c0_9 = arith.constant 0 : index
    %11 = vector.load %arg4[%c0_8, %c0_9] : memref<128x128xbf16, #tpu.memory_space<vmem>>, vector<128x128xbf16>
    %cst_10 = arith.constant dense<0.000000e+00> : vector<256x128xf32>
    %12 = tpu.matmul %10, %11, %cst_10 {dimension_numbers = #tpu.dot_dimension_numbers<[1], [0], [0], [1], [0, 0, 1, 1], [], []>} : vector<256x128xbf16>, vector<128x128xbf16>, vector<256x128xf32> -> vector<256x128xf32>
    %c0_11 = arith.constant 0 : index
    %c0_12 = arith.constant 0 : index
    %13 = vector.load %arg5[%c0_11, %c0_12] : memref<1x128xf32, #tpu.memory_space<vmem>>, vector<1x128xf32>
    %14 = vector.broadcast %13 : vector<1x128xf32> to vector<256x128xf32>
    %15 = arith.addf %12, %14 : vector<256x128xf32>
    %16 = vector.shape_cast %15 : vector<256x128xf32> to vector<16x16x128xf32>
    %c0_13 = arith.constant 0 : index
    %c0_14 = arith.constant 0 : index
    %c0_15 = arith.constant 0 : index
    %17 = vector.load %arg6[%c0_13, %c0_14, %c0_15] : memref<16x16x128xf32, #tpu.memory_space<vmem>>, vector<16x16x128xf32>
    tpu.vector_store %arg6[%c0_13, %c0_14, %c0_15], %16 {strides = array<i32>} : memref<16x16x128xf32, #tpu.memory_space<vmem>>, vector<16x16x128xf32>,
    return
  }
  func.func @transform_0(%arg0: i32) -> (i32, i32, i32) {
    %c0_i32 = arith.constant 0 : i32
    %c0_i32_0 = arith.constant 0 : i32
    %c0_i32_1 = arith.constant 0 : i32
    return %c0_i32, %arg0, %c0_i32_0 : i32, i32, i32
  }
  func.func @transform_1(%arg0: i32) -> (i32, i32, i32) {
    %c0_i32 = arith.constant 0 : i32
    %c0_i32_0 = arith.constant 0 : i32
    %c0_i32_1 = arith.constant 0 : i32
    %c0_i32_2 = arith.constant 0 : i32
    return %c0_i32, %c0_i32_0, %c0_i32_1 : i32, i32, i32
  }
  func.func @transform_2(%arg0: i32) -> (i32, i32, i32) {
    %c0_i32 = arith.constant 0 : i32
    %c0_i32_0 = arith.constant 0 : i32
    %c0_i32_1 = arith.constant 0 : i32
    %c0_i32_2 = arith.constant 0 : i32
    return %c0_i32, %c0_i32_0, %c0_i32_1 : i32, i32, i32
  }
  func.func @transform_3(%arg0: i32) -> (i32, i32) {
    %c0_i32 = arith.constant 0 : i32
    %c0_i32_0 = arith.constant 0 : i32
    %c0_i32_1 = arith.constant 0 : i32
    return %c0_i32, %c0_i32_0 : i32, i32
  }
  func.func @transform_4(%arg0: i32) -> (i32, i32) {
    %c0_i32 = arith.constant 0 : i32
    %c0_i32_0 = arith.constant 0 : i32
    %c0_i32_1 = arith.constant 0 : i32
    return %c0_i32, %c0_i32_0 : i32, i32
  }
  func.func @transform_5(%arg0: i32) -> (i32, i32, i32) {
    %c0_i32 = arith.constant 0 : i32
    %c0_i32_0 = arith.constant 0 : i32
    %c0_i32_1 = arith.constant 0 : i32
    return %c0_i32, %arg0, %c0_i32_0 : i32, i32, i32
  }
}

</mosaic_0001>

<bundles_post_ra>
// kernel: tile.8
= control target key start
LH: loop header
LB: loop body
LE: loop exit
PB: predicated region body
PF: predicated region fallthrough
CT: control target
= control target key end

     0   :  { %s22_s0 = inlined_call_operand.vmem [shape: f32[32], index: 0, kind: input, shape index: {}]   ;;  %s23_s1 = inlined_call_operand.vmem [shape: f32[4,32], index: 1, kind: output, shape index: {}]  }
   0x1   :  { %v4_v0 = vld [vmem:[%s22_s0] ss:$0 sm:$0xff] }
   0x2   :  { %5 = vst [vmem:[%s23_s1] sm:$0xf] %v4_v0 }

// kernel: tile.9
= control target key start
LH: loop header
LB: loop body
LE: loop exit
PB: predicated region body
PF: predicated region fallthrough
CT: control target
= control target key end

     0   :  { %vm7_vm0 = vcmask 261120   ;;  %s37_s8 = smov 32   ;;  %s38_s9 = smov 64   ;;  %vm13_vm1 = vcmask 1048320   ;;  %vm19_vm2 = vcmask 785920   ;;  %vm25_vm3 = vcmask 523520   ;;  %s55_s0 = inlined_call_operand.vmem [shape: f32[4,32], index: 0, kind: input, shape index: {}]   ;;  %s56_s1 = inlined_call_operand.vmem [shape: f32[1,128], index: 1, kind: output, shape index: {}]  }
   0x1   :  { %v4_v0 = vld [vmem:[%s55_s0] sm:$0xf]  ;;  %s36_s0 = smov 96  }
   0x2   :  { %5 = vst [vmem:[#allocation1] sm:$0xf] %v4_v0 }
   0x9   :  { %v10_v1 = vld [vmem:[#allocation1 + $0x3] sm:$0x1]   ;;  %v22_v2 = vld [vmem:[#allocation1 + $0x1] sm:$0x1]   ;;  %v6_v3 = vld [vmem:[#allocation1] sm:$0x1]  }
   0xa   :  { %11 = vrot.lane.b32.xlu0 %v10_v1, %s36_s0  ;;  %23 = vrot.lane.b32.xlu1 %v22_v2, %s37_s8  ;;  %v16_v4 = vld [vmem:[#allocation1 + $0x2] sm:$0x1]   ;;  %8 = vst.msk [vmem:[#allocation0] sm:$0x1] %vm7_vm0, %v6_v3  }
   0xe   :  { %17 = vrot.lane.b32.xlu0 %v16_v4, %s38_s9 }
  0x7c   :  { %v12_v5 = vpop.permute.xlu0 %11   ;;  %v24_v6 = vpop.permute.xlu1 %23  }
  0x7d   :  { %14 = vst.msk [vmem:[#allocation0] sm:$0x1] %vm13_vm1, %v12_v5  }
  0x80   :  { %v18_v7 = vpop.permute.xlu0 %17  }
  0x81   :  { %20 = vst.msk [vmem:[#allocation0] sm:$0x1] %vm19_vm2, %v18_v7  }
  0x82   :  { %26 = vst.msk [vmem:[#allocation0] sm:$0x1] %vm25_vm3, %v24_v6  }
  0x89   :  { %v30_v8 = vld [vmem:[#allocation0] sm:$0x1] }
  0x8a   :  { %32 = vst [vmem:[%s56_s1] sm:$0x1] %v30_v8 }

// kernel: upblock_forward.5
= control target key start
LH: loop header
LB: loop body
LE: loop exit
PB: predicated region body
PF: predicated region fallthrough
CT: control target
= control target key end

     0   :  { %s1103_s12 = smov 0   ;;  %s1105_s13 = smov 0   ;;  %s1376_s0 = inlined_call_operand.vmem [shape: f32[16,32,128], index: 0, kind: input, shape index: {}]   ;;  %s1377_s1 = inlined_call_operand.vmem [shape: f32[1,1,128], index: 1, kind: input, shape index: {}]   ;;  %s1378_s2 = inlined_call_operand.vmem [shape: f32[1,1,128], index: 2, kind: input, shape index: {}]   ;;  %s1379_s3 = inlined_call_operand.vmem [shape: bf16[16,32,128], index: 3, kind: output, shape index: {}]  }
   0x1   :  { %s1107_s14 = smov 0  }
   0x2 LB: > { %s857_s15 = sadd.s32 4294967295, %s1081_s14   ;;  %s1120_s16 = sadd.s32 1, %s1081_s14   ;;  %s1081_s14 = sphi %s1107_s14, %s1383_s14   ;;  %s1077_s13 = sphi %s1105_s13, %s1382_s13   ;;  %s1073_s12 = sphi %s1103_s12, %s1381_s12  }
   0x3   : > { %s17_s17 = ssub.s32 %s1081_s14, %s1120_s16  ;;  %s20_s18 = sadd.s32 1, %s1077_s13 }
   0x4   : > { %p18_p0 = scmp.eq.s32.totalorder %s17_s17, 0  ;;  %p27_p1 = scmp.ne.s32.totalorder %s1077_s13, %s1073_s12 }
   0x5   : > { %p28_p2 = scmp.eq.s32.totalorder %s1081_s14, 0  ;;  %p99_p3 = scmp.eq.s32.totalorder %s857_s15, 1 }
   0x6   : > { %s1131_s19 = scalar_select %p18_p0, %s1077_s13, %s20_s18  }
   0x7   : > { %p29_p4 = por %p28_p2, %p27_p1  ;;  %p1133_p5 = por %p99_p3, %p27_p1 }
   0x8   : > { %p860_p6 = scmp.ge.s32.totalorder %s1081_s14, 2 }
   0xa   : > { %127 = sbr.rel (%p860_p6) target bundleno = 37 (0x25), region = 24 }
  0x11   : > { %130 = sbr.rel (!%p29_p4) target bundleno = 37 (0x25), region = 28  ;;  %s132_s21 = sand.u32 (%p29_p4), 1, %s1077_s13  }
  0x12   : > { %s906_s22 = sshll.u32 (%p29_p4), %s1081_s14, 4  ;;  %s861_s23 = sshll.u32 (%p29_p4), %s132_s21, 8 }
  0x13   : > { %s1143_s26 = scalar_lea.vmem (%p29_p4), %s1376_s0, %s906_s22  ;;  %s1148_s27 = scalar_lea.vmem (%p29_p4), [#allocation2], %s861_s23 }
  0x14   : > { %v227_v0 = vld [vmem:[%s1143_s26] sm:$0xff] (%p29_p4)  ;;  %v229_v1 = vld [vmem:[%s1143_s26 + $0x8] sm:$0xff] (%p29_p4) }
  0x15   : > { %v231_v2 = vld [vmem:[%s1143_s26 + $0x20] sm:$0xff] (%p29_p4)  ;;  %228 = vst [vmem:[%s1148_s27] sm:$0xff] (%p29_p4), %v227_v0  ;;  %230 = vst [vmem:[%s1148_s27 + $0x8] sm:$0xff] (%p29_p4), %v229_v1  ;;  %v233_v3 = vld [vmem:[%s1143_s26 + $0x28] sm:$0xff] (%p29_p4) }
  0x16   : > { %232 = vst [vmem:[%s1148_s27 + $0x10] sm:$0xff] (%p29_p4), %v231_v2  ;;  %v235_v4 = vld [vmem:[%s1143_s26 + $0x40] sm:$0xff] (%p29_p4)  ;;  %v237_v5 = vld [vmem:[%s1143_s26 + $0x48] sm:$0xff] (%p29_p4)  ;;  %234 = vst [vmem:[%s1148_s27 + $0x18] sm:$0xff] (%p29_p4), %v233_v3 }
  0x17   : > { %236 = vst [vmem:[%s1148_s27 + $0x20] sm:$0xff] (%p29_p4), %v235_v4  ;;  %238 = vst [vmem:[%s1148_s27 + $0x28] sm:$0xff] (%p29_p4), %v237_v5  ;;  %v239_v6 = vld [vmem:[%s1143_s26 + $0x60] sm:$0xff] (%p29_p4)  ;;  %v241_v7 = vld [vmem:[%s1143_s26 + $0x68] sm:$0xff] (%p29_p4) }
  0x18   : > { %v243_v8 = vld [vmem:[%s1143_s26 + $0x80] sm:$0xff]  ;;  %240 = vst [vmem:[%s1148_s27 + $0x30] sm:$0xff] %v239_v6  ;;  %242 = vst [vmem:[%s1148_s27 + $0x38] sm:$0xff] %v241_v7  ;;  %v245_v9 = vld [vmem:[%s1143_s26 + $0x88] sm:$0xff] }
  0x19   : > { %244 = vst [vmem:[%s1148_s27 + $0x40] sm:$0xff] %v243_v8  ;;  %v247_v10 = vld [vmem:[%s1143_s26 + $0xa0] sm:$0xff]  ;;  %v249_v11 = vld [vmem:[%s1143_s26 + $0xa8] sm:$0xff]  ;;  %246 = vst [vmem:[%s1148_s27 + $0x48] sm:$0xff] %v245_v9 }
  0x1a   : > { %248 = vst [vmem:[%s1148_s27 + $0x50] sm:$0xff] %v247_v10  ;;  %250 = vst [vmem:[%s1148_s27 + $0x58] sm:$0xff] %v249_v11  ;;  %v251_v12 = vld [vmem:[%s1143_s26 + $0xc0] sm:$0xff]  ;;  %v253_v13 = vld [vmem:[%s1143_s26 + $0xc8] sm:$0xff] }
  0x1b   : > { %v255_v14 = vld [vmem:[%s1143_s26 + $0xe0] sm:$0xff]  ;;  %252 = vst [vmem:[%s1148_s27 + $0x60] sm:$0xff] %v251_v12  ;;  %254 = vst [vmem:[%s1148_s27 + $0x68] sm:$0xff] %v253_v13  ;;  %v257_v15 = vld [vmem:[%s1143_s26 + $0xe8] sm:$0xff] }
  0x1c   : > { %256 = vst [vmem:[%s1148_s27 + $0x70] sm:$0xff] %v255_v14  ;;  %v259_v16 = vld [vmem:[%s1143_s26 + $0x100] sm:$0xff]  ;;  %v261_v17 = vld [vmem:[%s1143_s26 + $0x108] sm:$0xff]  ;;  %258 = vst [vmem:[%s1148_s27 + $0x78] sm:$0xff] %v257_v15 }
  0x1d   : > { %260 = vst [vmem:[%s1148_s27 + $0x80] sm:$0xff] %v259_v16  ;;  %262 = vst [vmem:[%s1148_s27 + $0x88] sm:$0xff] %v261_v17  ;;  %v263_v18 = vld [vmem:[%s1143_s26 + $0x120] sm:$0xff]  ;;  %v265_v19 = vld [vmem:[%s1143_s26 + $0x128] sm:$0xff] }
  0x1e   : > { %v267_v20 = vld [vmem:[%s1143_s26 + $0x140] sm:$0xff]  ;;  %264 = vst [vmem:[%s1148_s27 + $0x90] sm:$0xff] %v263_v18  ;;  %266 = vst [vmem:[%s1148_s27 + $0x98] sm:$0xff] %v265_v19  ;;  %v269_v21 = vld [vmem:[%s1143_s26 + $0x148] sm:$0xff] }
  0x1f   : > { %268 = vst [vmem:[%s1148_s27 + $0xa0] sm:$0xff] %v267_v20  ;;  %v271_v22 = vld [vmem:[%s1143_s26 + $0x160] sm:$0xff]  ;;  %v273_v23 = vld [vmem:[%s1143_s26 + $0x168] sm:$0xff]  ;;  %270 = vst [vmem:[%s1148_s27 + $0xa8] sm:$0xff] %v269_v21 }
  0x20   : > { %272 = vst [vmem:[%s1148_s27 + $0xb0] sm:$0xff] %v271_v22  ;;  %274 = vst [vmem:[%s1148_s27 + $0xb8] sm:$0xff] %v273_v23  ;;  %v275_v24 = vld [vmem:[%s1143_s26 + $0x180] sm:$0xff]  ;;  %v277_v25 = vld [vmem:[%s1143_s26 + $0x188] sm:$0xff] }
  0x21   : > { %v279_v26 = vld [vmem:[%s1143_s26 + $0x1a0] sm:$0xff]  ;;  %276 = vst [vmem:[%s1148_s27 + $0xc0] sm:$0xff] %v275_v24  ;;  %278 = vst [vmem:[%s1148_s27 + $0xc8] sm:$0xff] %v277_v25  ;;  %v281_v27 = vld [vmem:[%s1143_s26 + $0x1a8] sm:$0xff] }
  0x22   : > { %280 = vst [vmem:[%s1148_s27 + $0xd0] sm:$0xff] %v279_v26  ;;  %v283_v28 = vld [vmem:[%s1143_s26 + $0x1c0] sm:$0xff]  ;;  %v285_v29 = vld [vmem:[%s1143_s26 + $0x1c8] sm:$0xff]  ;;  %282 = vst [vmem:[%s1148_s27 + $0xd8] sm:$0xff] %v281_v27 }
  0x23   : > { %284 = vst [vmem:[%s1148_s27 + $0xe0] sm:$0xff] %v283_v28  ;;  %286 = vst [vmem:[%s1148_s27 + $0xe8] sm:$0xff] %v285_v29  ;;  %v287_v30 = vld [vmem:[%s1143_s26 + $0x1e0] sm:$0xff]  ;;  %v289_v31 = vld [vmem:[%s1143_s26 + $0x1e8] sm:$0xff] }
  0x24   : > { %288 = vst [vmem:[%s1148_s27 + $0xf0] sm:$0xff] %v287_v30  ;;  %290 = vst [vmem:[%s1148_s27 + $0xf8] sm:$0xff] %v289_v31 }
  0x25 PF: > { %p864_p7 = scmp.ge.s32.totalorder %s1081_s14, 1  ;;  %p295_p8 = scmp.lt.s32.totalorder %s1081_s14, 3 }
  0x27   : > { %p296_p9 = pnand %p864_p7, %p295_p8 }
  0x28   : > { %s302_s28 = sand.u32 (!%p296_p9), 1, %s1073_s12   ;;  %v1217_v32 = vld [vmem:[%s1377_s1] ss:$0 sm:$0xff] (!%p296_p9) }
  0x29   : > { %299 = sbr.rel (%p296_p9) target bundleno = 86 (0x56), region = 66  ;;  %s865_s29 = sshll.u32 (!%p296_p9), %s302_s28, 8  ;;  %v1222_v33 = vld [vmem:[%s1378_s2] ss:$0 sm:$0xff] (!%p296_p9) }
  0x2a   : > { %s1224_s7 = scalar_lea.vmem (!%p296_p9), [#allocation2], %s865_s29  ;;  %s1240_s8 = sshll.u32 (!%p296_p9), %s302_s28, 7 }
  0x2b   : > { %v326_v34 = vld [vmem:[%s1224_s7] sm:$0xff] (!%p296_p9)  ;;  %v327_v35 = vld [vmem:[%s1224_s7 + $0x8] sm:$0xff] (!%p296_p9)  ;;  %v328_v36 = vld [vmem:[%s1224_s7 + $0x10] sm:$0xff] (!%p296_p9)  ;;  %s1263_s9 = scalar_lea.vmem (!%p296_p9), [#allocation3], %s1240_s8 }
  0x2c   : > { %v365_v37 = vmul.f32 (!%p296_p9), %v1217_v32, %v326_v34  ;;  %v366_v38 = vmul.f32 (!%p296_p9), %v1217_v32, %v327_v35  ;;  %v329_v39 = vld [vmem:[%s1224_s7 + $0x18] sm:$0xff] (!%p296_p9)  ;;  %v367_v40 = vmul.f32 (!%p296_p9), %v1217_v32, %v328_v36  ;;  %v330_v41 = vld [vmem:[%s1224_s7 + $0x20] sm:$0xff] (!%p296_p9)  ;;  %v331_v42 = vld [vmem:[%s1224_s7 + $0x28] sm:$0xff] (!%p296_p9) }
  0x2d   : > { %v368_v43 = vmul.f32 (!%p296_p9), %v1217_v32, %v329_v39  ;;  %v369_v44 = vmul.f32 (!%p296_p9), %v1217_v32, %v330_v41  ;;  %v370_v45 = vmul.f32 (!%p296_p9), %v1217_v32, %v331_v42  ;;  %v332_v46 = vld [vmem:[%s1224_s7 + $0x30] sm:$0xff] (!%p296_p9)  ;;  %v333_v47 = vld [vmem:[%s1224_s7 + $0x38] sm:$0xff] (!%p296_p9)  ;;  %v334_v56 = vld [vmem:[%s1224_s7 + $0x40] sm:$0xff] (!%p296_p9) }
  0x2e   : > { %v404_v48 = vadd.f32 (!%p296_p9), %v1222_v33, %v365_v37  ;;  %v405_v49 = vadd.f32 (!%p296_p9), %v1222_v33, %v366_v38  ;;  %v406_v50 = vadd.f32 (!%p296_p9), %v1222_v33, %v367_v40  ;;  %v371_v51 = vmul.f32 (!%p296_p9), %v1217_v32, %v332_v46  ;;  %v335_v57 = vld [vmem:[%s1224_s7 + $0x48] sm:$0xff] (!%p296_p9)  ;;  %v336_v62 = vld [vmem:[%s1224_s7 + $0x50] sm:$0xff] (!%p296_p9)  ;;  %v337_v3 = vld [vmem:[%s1224_s7 + $0x58] sm:$0xff] (!%p296_p9) }
  0x2f   : > { %v407_v52 = vadd.f32 (!%p296_p9), %v1222_v33, %v368_v43  ;;  %v408_v53 = vadd.f32 (!%p296_p9), %v1222_v33, %v369_v44  ;;  %v409_v54 = vadd.f32 (!%p296_p9), %v1222_v33, %v370_v45  ;;  %v372_v55 = vmul.f32 (!%p296_p9), %v1217_v32, %v333_v47  ;;  %v338_v4 = vld [vmem:[%s1224_s7 + $0x60] sm:$0xff] (!%p296_p9)  ;;  %v339_v9 = vld [vmem:[%s1224_s7 + $0x68] sm:$0xff] (!%p296_p9)  ;;  %v340_v10 = vld [vmem:[%s1224_s7 + $0x70] sm:$0xff] (!%p296_p9) }
  0x30   : > { %v436_v58 = vmax.f32 %v404_v48, 0.0  ;;  %v437_v59 = vmax.f32 %v405_v49, 0.0  ;;  %v438_v60 = vmax.f32 %v406_v50, 0.0  ;;  %v410_v61 = vadd.f32 %v1222_v33, %v371_v51  ;;  %v341_v19 = vld [vmem:[%s1224_s7 + $0x78] sm:$0xff]  ;;  %v342_v24 = vld [vmem:[%s1224_s7 + $0x80] sm:$0xff]  ;;  %v343_v29 = vld [vmem:[%s1224_s7 + $0x88] sm:$0xff] }
  0x31   : > { %v439_v63 = vmax.f32 %v407_v52, 0.0  ;;  %v440_v0 = vmax.f32 %v408_v53, 0.0  ;;  %v441_v1 = vmax.f32 %v409_v54, 0.0  ;;  %v411_v2 = vadd.f32 %v1222_v33, %v372_v55  ;;  %v344_v36 = vld [vmem:[%s1224_s7 + $0x90] sm:$0xff]  ;;  %v345_v37 = vld [vmem:[%s1224_s7 + $0x98] sm:$0xff]  ;;  %v346_v42 = vld [vmem:[%s1224_s7 + $0xa0] sm:$0xff] }
  0x32   : > { %v943_v5 = vpack.c.bf16 %v437_v59, %v436_v58  ;;  %v442_v6 = vmax.f32 %v410_v61, 0.0  ;;  %v373_v7 = vmul.f32 %v1217_v32, %v334_v56  ;;  %v374_v8 = vmul.f32 %v1217_v32, %v335_v57  ;;  %v347_v47 = vld [vmem:[%s1224_s7 + $0xa8] sm:$0xff]  ;;  %v348_v52 = vld [vmem:[%s1224_s7 + $0xb0] sm:$0xff]  ;;  %v349_v57 = vld [vmem:[%s1224_s7 + $0xb8] sm:$0xff]  ;;  %s939_s10 = sshll.u32 (%p1133_p5), %s857_s15, 3 }
  0x33   : > { %v948_v11 = vpack.c.bf16 %v439_v63, %v438_v60  ;;  %v953_v12 = vpack.c.bf16 %v441_v1, %v440_v0  ;;  %v443_v13 = vmax.f32 %v411_v2, 0.0  ;;  %v375_v14 = vmul.f32 %v1217_v32, %v336_v62  ;;  %v350_v62 = vld [vmem:[%s1224_s7 + $0xc0] sm:$0xff]  ;;  %s637_s17 = scalar_lea.vmem (%p1133_p5), %s1379_s3, %s939_s10 }
  0x34   : > { %944 = vst [vmem:[%s1263_s9] sm:$0xff] %v943_v5   ;;  %v412_v15 = vadd.f32 %v1222_v33, %v373_v7  ;;  %v413_v16 = vadd.f32 %v1222_v33, %v374_v8  ;;  %v376_v17 = vmul.f32 %v1217_v32, %v337_v3  ;;  %v377_v18 = vmul.f32 %v1217_v32, %v338_v4  ;;  %v351_v3 = vld [vmem:[%s1224_s7 + $0xc8] sm:$0xff]  ;;  %v352_v8 = vld [vmem:[%s1224_s7 + $0xd0] sm:$0xff] }
  0x35   : > { %1020 = vst [vmem:[%s1263_s9 + $0x8] sm:$0xff] %v948_v11   ;;  %1021 = vst [vmem:[%s1263_s9 + $0x10] sm:$0xff] %v953_v12   ;;  %v958_v20 = vpack.c.bf16 %v443_v13, %v442_v6  ;;  %v414_v21 = vadd.f32 %v1222_v33, %v375_v14  ;;  %v378_v22 = vmul.f32 %v1217_v32, %v339_v9  ;;  %v353_v9 = vld [vmem:[%s1224_s7 + $0xd8] sm:$0xff]  ;;  %v354_v14 = vld [vmem:[%s1224_s7 + $0xe0] sm:$0xff] }
  0x36   : > { %v379_v23 = vmul.f32 %v1217_v32, %v340_v10  ;;  %v444_v25 = vmax.f32 %v412_v15, 0.0  ;;  %v445_v26 = vmax.f32 %v413_v16, 0.0  ;;  %v415_v27 = vadd.f32 %v1222_v33, %v376_v17 }
  0x37   : > { %v416_v28 = vadd.f32 %v1222_v33, %v377_v18  ;;  %1022 = vst [vmem:[%s1263_s9 + $0x18] sm:$0xff] %v958_v20   ;;  %v446_v30 = vmax.f32 %v414_v21, 0.0  ;;  %v417_v31 = vadd.f32 %v1222_v33, %v378_v22  ;;  %v380_v34 = vmul.f32 %v1217_v32, %v341_v19  ;;  %v355_v19 = vld [vmem:[%s1224_s7 + $0xe8] sm:$0xff] }
  0x38   : > { %v418_v35 = vadd.f32 %v1222_v33, %v379_v23  ;;  %v963_v38 = vpack.c.bf16 %v445_v26, %v444_v25  ;;  %v447_v39 = vmax.f32 %v415_v27, 0.0  ;;  %v381_v41 = vmul.f32 %v1217_v32, %v342_v24  ;;  %v356_v24 = vld [vmem:[%s1224_s7 + $0xf0] sm:$0xff] }
  0x39   : > { %v448_v40 = vmax.f32 %v416_v28, 0.0  ;;  %v449_v43 = vmax.f32 %v417_v31, 0.0  ;;  %v419_v44 = vadd.f32 %v1222_v33, %v380_v34  ;;  %v382_v46 = vmul.f32 %v1217_v32, %v343_v29  ;;  %v357_v29 = vld [vmem:[%s1224_s7 + $0xf8] sm:$0xff] }
  0x3a   : > { %v450_v45 = vmax.f32 %v418_v35, 0.0  ;;  %1023 = vst [vmem:[%s1263_s9 + $0x20] sm:$0xff] %v963_v38   ;;  %v968_v48 = vpack.c.bf16 %v447_v39, %v446_v30  ;;  %v420_v49 = vadd.f32 %v1222_v33, %v381_v41  ;;  %v383_v50 = vmul.f32 %v1217_v32, %v344_v36 }
  0x3b   : > { %v384_v51 = vmul.f32 %v1217_v32, %v345_v37  ;;  %v973_v53 = vpack.c.bf16 %v449_v43, %v448_v40  ;;  %v451_v54 = vmax.f32 %v419_v44, 0.0  ;;  %v421_v55 = vadd.f32 %v1222_v33, %v382_v46 }
  0x3c   : > { %v385_v56 = vmul.f32 %v1217_v32, %v346_v42  ;;  %1024 = vst [vmem:[%s1263_s9 + $0x28] sm:$0xff] %v968_v48   ;;  %v452_v58 = vmax.f32 %v420_v49, 0.0  ;;  %v422_v59 = vadd.f32 %v1222_v33, %v383_v50  ;;  %v386_v61 = vmul.f32 %v1217_v32, %v347_v47 }
  0x3d   : > { %v423_v60 = vadd.f32 %v1222_v33, %v384_v51  ;;  %1025 = vst [vmem:[%s1263_s9 + $0x30] sm:$0xff] %v973_v53   ;;  %v978_v63 = vpack.c.bf16 %v451_v54, %v450_v45  ;;  %v453_v0 = vmax.f32 %v421_v55, 0.0  ;;  %v387_v2 = vmul.f32 %v1217_v32, %v348_v52  ;;  %v661_v54 = vld [vmem:[%s1263_s9 + $0x10] sm:$0xff] (%p1133_p5)  }
  0x3e   : > { %v424_v1 = vadd.f32 %v1222_v33, %v385_v56  ;;  %v454_v4 = vmax.f32 %v422_v59, 0.0  ;;  %v425_v6 = vadd.f32 %v1222_v33, %v386_v61  ;;  %v388_v7 = vmul.f32 %v1217_v32, %v349_v57  ;;  %v665_v55 = vld [vmem:[%s1263_s9 + $0x18] sm:$0xff] (%p1133_p5)   ;;  %662 = vst [vmem:[%s637_s17 + $0x20] sm:$0xff] (%p1133_p5), %v661_v54  }
  0x3f   : > { %v455_v5 = vmax.f32 %v423_v60, 0.0  ;;  %1026 = vst [vmem:[%s1263_s9 + $0x38] sm:$0xff] %v978_v63   ;;  %v983_v10 = vpack.c.bf16 %v453_v0, %v452_v58  ;;  %v426_v12 = vadd.f32 %v1222_v33, %v387_v2  ;;  %v389_v13 = vmul.f32 %v1217_v32, %v350_v62  ;;  %666 = vst [vmem:[%s637_s17 + $0x30] sm:$0xff] (%p1133_p5), %v665_v55  }
  0x40   : > { %v456_v11 = vmax.f32 %v424_v1, 0.0  ;;  %v457_v16 = vmax.f32 %v425_v6, 0.0  ;;  %v427_v17 = vadd.f32 %v1222_v33, %v388_v7  ;;  %v390_v18 = vmul.f32 %v1217_v32, %v351_v3 }
  0x41   : > { %v988_v15 = vpack.c.bf16 %v455_v5, %v454_v4  ;;  %1027 = vst [vmem:[%s1263_s9 + $0x40] sm:$0xff] %v983_v10   ;;  %v458_v20 = vmax.f32 %v426_v12, 0.0  ;;  %v428_v21 = vadd.f32 %v1222_v33, %v389_v13  ;;  %v391_v22 = vmul.f32 %v1217_v32, %v352_v8  ;;  %v669_v56 = vld [vmem:[%s1263_s9 + $0x20] sm:$0xff] (%p1133_p5)  }
  0x42   : > { %v392_v23 = vmul.f32 %v1217_v32, %v353_v9  ;;  %v993_v25 = vpack.c.bf16 %v457_v16, %v456_v11  ;;  %v459_v26 = vmax.f32 %v427_v17, 0.0  ;;  %v429_v27 = vadd.f32 %v1222_v33, %v390_v18  ;;  %670 = vst [vmem:[%s637_s17 + $0x40] sm:$0xff] (%p1133_p5), %v669_v56  }
  0x43   : > { %1028 = vst [vmem:[%s1263_s9 + $0x48] sm:$0xff] %v988_v15   ;;  %v393_v28 = vmul.f32 %v1217_v32, %v354_v14  ;;  %v460_v30 = vmax.f32 %v428_v21, 0.0  ;;  %v430_v31 = vadd.f32 %v1222_v33, %v391_v22  ;;  %v394_v35 = vmul.f32 %v1217_v32, %v355_v19  ;;  %v673_v57 = vld [vmem:[%s1263_s9 + $0x28] sm:$0xff] (%p1133_p5)  }
  0x44   : > { %v431_v34 = vadd.f32 %v1222_v33, %v392_v23  ;;  %1029 = vst [vmem:[%s1263_s9 + $0x50] sm:$0xff] %v993_v25   ;;  %v998_v36 = vpack.c.bf16 %v459_v26, %v458_v20  ;;  %v461_v37 = vmax.f32 %v429_v27, 0.0  ;;  %v395_v39 = vmul.f32 %v1217_v32, %v356_v24  ;;  %674 = vst [vmem:[%s637_s17 + $0x50] sm:$0xff] (%p1133_p5), %v673_v57   ;;  %v677_v58 = vld [vmem:[%s1263_s9 + $0x30] sm:$0xff] (%p1133_p5)  }
  0x45   : > { %v432_v38 = vadd.f32 %v1222_v33, %v393_v28  ;;  %v462_v40 = vmax.f32 %v430_v31, 0.0  ;;  %v433_v42 = vadd.f32 %v1222_v33, %v394_v35  ;;  %v396_v43 = vmul.f32 %v1217_v32, %v357_v29  ;;  %v653_v32 = vld [vmem:[%s1263_s9] sm:$0xff] (%p1133_p5)   ;;  %678 = vst [vmem:[%s637_s17 + $0x60] sm:$0xff] (%p1133_p5), %v677_v58  }
  0x46   : > { %v463_v41 = vmax.f32 %v431_v34, 0.0  ;;  %1030 = vst [vmem:[%s1263_s9 + $0x58] sm:$0xff] %v998_v36   ;;  %v1003_v44 = vpack.c.bf16 %v461_v37, %v460_v30  ;;  %v434_v46 = vadd.f32 %v1222_v33, %v395_v39  ;;  %654 = vst [vmem:[%s637_s17] sm:$0xff] (%p1133_p5), %v653_v32   ;;  %v681_v59 = vld [vmem:[%s1263_s9 + $0x38] sm:$0xff] (%p1133_p5)  }
  0x47   : > { %v464_v45 = vmax.f32 %v432_v38, 0.0  ;;  %v465_v48 = vmax.f32 %v433_v42, 0.0  ;;  %v435_v49 = vadd.f32 %v1222_v33, %v396_v43  ;;  %634 = sbr.rel (!%p1133_p5) target bundleno = 86 (0x56), region = 74  ;;  %v657_v33 = vld [vmem:[%s1263_s9 + $0x8] sm:$0xff] (%p1133_p5)   ;;  %682 = vst [vmem:[%s637_s17 + $0x70] sm:$0xff] (%p1133_p5), %v681_v59  }
  0x48   : > { %v1008_v47 = vpack.c.bf16 %v463_v41, %v462_v40  ;;  %1031 = vst [vmem:[%s1263_s9 + $0x60] sm:$0xff] %v1003_v44   ;;  %v466_v50 = vmax.f32 %v434_v46, 0.0  ;;  %658 = vst [vmem:[%s637_s17 + $0x10] sm:$0xff] (%p1133_p5), %v657_v33   ;;  %v685_v60 = vld [vmem:[%s1263_s9 + $0x40] sm:$0xff] (%p1133_p5)  }
  0x49   : > { %v1013_v51 = vpack.c.bf16 %v465_v48, %v464_v45  ;;  %v467_v52 = vmax.f32 %v435_v49, 0.0  ;;  %686 = vst [vmem:[%s637_s17 + $0x80] sm:$0xff] (%p1133_p5), %v685_v60  }
  0x4a   : > { %1032 = vst [vmem:[%s1263_s9 + $0x68] sm:$0xff] %v1008_v47   ;;  %v689_v61 = vld [vmem:[%s1263_s9 + $0x48] sm:$0xff] (%p1133_p5)  }
  0x4b   : > { %1033 = vst [vmem:[%s1263_s9 + $0x70] sm:$0xff] %v1013_v51   ;;  %v1018_v53 = vpack.c.bf16 %v467_v52, %v466_v50  ;;  %v693_v62 = vld [vmem:[%s1263_s9 + $0x50] sm:$0xff] (%p1133_p5)   ;;  %690 = vst [vmem:[%s637_s17 + $0x90] sm:$0xff] (%p1133_p5), %v689_v61  }
  0x4c   : > { %694 = vst [vmem:[%s637_s17 + $0xa0] sm:$0xff] (%p1133_p5), %v693_v62  }
  0x4d   : > { %1034 = vst [vmem:[%s1263_s9 + $0x78] sm:$0xff] %v1018_v53   ;;  %v697_v63 = vld [vmem:[%s1263_s9 + $0x58] sm:$0xff] (%p1133_p5)  }
  0x4e   : > { %698 = vst [vmem:[%s637_s17 + $0xb0] sm:$0xff] %v697_v63  }
  0x4f   : > { %v701_v0 = vld [vmem:[%s1263_s9 + $0x60] sm:$0xff]  }
  0x50   : > { %702 = vst [vmem:[%s637_s17 + $0xc0] sm:$0xff] %v701_v0  }
  0x51   : > { %v705_v1 = vld [vmem:[%s1263_s9 + $0x68] sm:$0xff]  }
  0x52   : > { %v709_v2 = vld [vmem:[%s1263_s9 + $0x70] sm:$0xff]   ;;  %706 = vst [vmem:[%s637_s17 + $0xd0] sm:$0xff] %v705_v1  }
  0x53   : > { %710 = vst [vmem:[%s637_s17 + $0xe0] sm:$0xff] %v709_v2  }
  0x54   : > { %v713_v3 = vld [vmem:[%s1263_s9 + $0x78] sm:$0xff]  }
  0x55   : > { %714 = vst [vmem:[%s637_s17 + $0xf0] sm:$0xff] %v713_v3  }
  0x56 PF: > { %p10_p10 = scmp.ge.s32.totalorder %s1120_s16, 4   ;;  %s1381_s12 = smov %s1077_s13 }
  0x57   : > { %s1382_s13 = smov %s1131_s19  ;;  %s1383_s14 = smov %s1120_s16 }
  0x58   :  { %12 = sbr.rel (!%p10_p10) target bundleno = 2 (0x2), region = 146 }

// kernel: upblock_forward.4
= control target key start
LH: loop header
LB: loop body
LE: loop exit
PB: predicated region body
PF: predicated region fallthrough
CT: control target
= control target key end

     0   :  { %s2066_s18 = smov 0   ;;  %s2068_s19 = smov 0   ;;  %s2409_s0 = inlined_call_operand.vmem [shape: bf16[18,32,24], index: 0, kind: input, shape index: {}]   ;;  %s2410_s1 = inlined_call_operand.vmem [shape: bf16[3,24,128], index: 1, kind: input, shape index: {}]   ;;  %s2411_s2 = inlined_call_operand.vmem [shape: f32[1,128], index: 2, kind: input, shape index: {}]   ;;  %s2412_s3 = inlined_call_operand.vmem [shape: f32[16,32,128], index: 3, kind: output, shape index: {0}]   ;;  %s2413_s4 = inlined_call_operand.vmem [shape: f32[16,128], index: 4, kind: output, shape index: {1}]   ;;  %s2414_s5 = inlined_call_operand.vmem [shape: f32[16,128], index: 5, kind: output, shape index: {2}]  }
   0x1   :  { %s2070_s20 = smov 0  }
   0x2 LB: > { %s2082_s21 = sadd.s32 4294967295, %s2034_s20   ;;  %s2085_s22 = sadd.s32 1, %s2034_s20   ;;  %s2034_s20 = sphi %s2070_s20, %s2418_s20   ;;  %s2030_s19 = sphi %s2068_s19, %s2417_s19   ;;  %s2026_s18 = sphi %s2066_s18, %s2416_s18  }
   0x3   : > { %s20_s23 = ssub.s32 %s2034_s20, %s2085_s22  ;;  %s23_s24 = sadd.s32 1, %s2030_s19 }
   0x4   : > { %p21_p0 = scmp.eq.s32.totalorder %s20_s23, 0  ;;  %p30_p1 = scmp.ne.s32.totalorder %s2030_s19, %s2026_s18 }
   0x5   : > { %p31_p2 = scmp.eq.s32.totalorder %s2034_s20, 0  ;;  %p102_p3 = scmp.eq.s32.totalorder %s2082_s21, 1 }
   0x6   : > { %s2095_s25 = scalar_select %p21_p0, %s2030_s19, %s23_s24  }
   0x7   : > { %p32_p4 = por %p31_p2, %p30_p1  ;;  %p2097_p5 = por %p102_p3, %p30_p1 }
   0x8   : > { %p1635_p6 = scmp.ge.s32.totalorder %s2034_s20, 2 }
   0xa   : > { %182 = sbr.rel (%p1635_p6) target bundleno = 30 (0x1e), region = 24 }
  0x11   : > { %185 = sbr.rel (!%p32_p4) target bundleno = 30 (0x1e), region = 28  ;;  %s187_s27 = sand.u32 (%p32_p4), 1, %s2030_s19  }
  0x12   : > { %s1726_s28 = sshll.u32 (%p32_p4), %s2034_s20, 3  ;;  %s1962_s29 = smul.u32 (%p32_p4), 144, %s187_s27 }
  0x13   : > { %s2107_s7 = scalar_lea.vmem (%p32_p4), %s2409_s0, %s1726_s28 }
  0x14   : > { %v208_v0 = vld [vmem:[%s2107_s7] sm:$0xff] (%p32_p4)   ;;  %v212_v1 = vld [vmem:[%s2107_s7 + $0x10] sm:$0xff] (%p32_p4)   ;;  %s189_s8 = scalar_lea.vmem (%p32_p4), [#allocation2], %s1962_s29 }
  0x15   : > { %v216_v2 = vld [vmem:[%s2107_s7 + $0x20] sm:$0xff] (%p32_p4)   ;;  %v220_v3 = vld [vmem:[%s2107_s7 + $0x30] sm:$0xff] (%p32_p4)   ;;  %209 = vst [vmem:[%s189_s8] sm:$0xff] (%p32_p4), %v208_v0   ;;  %213 = vst [vmem:[%s189_s8 + $0x8] sm:$0xff] (%p32_p4), %v212_v1  }
  0x16   : > { %v224_v4 = vld [vmem:[%s2107_s7 + $0x40] sm:$0xff] (%p32_p4)   ;;  %v228_v5 = vld [vmem:[%s2107_s7 + $0x50] sm:$0xff] (%p32_p4)   ;;  %217 = vst [vmem:[%s189_s8 + $0x10] sm:$0xff] (%p32_p4), %v216_v2   ;;  %221 = vst [vmem:[%s189_s8 + $0x18] sm:$0xff] (%p32_p4), %v220_v3  }
  0x17   : > { %225 = vst [vmem:[%s189_s8 + $0x20] sm:$0xff] (%p32_p4), %v224_v4   ;;  %229 = vst [vmem:[%s189_s8 + $0x28] sm:$0xff] (%p32_p4), %v228_v5   ;;  %v232_v6 = vld [vmem:[%s2107_s7 + $0x60] sm:$0xff] (%p32_p4)   ;;  %v236_v7 = vld [vmem:[%s2107_s7 + $0x70] sm:$0xff] (%p32_p4)  }
  0x18   : > { %v240_v8 = vld [vmem:[%s2107_s7 + $0x80] sm:$0xff]   ;;  %233 = vst [vmem:[%s189_s8 + $0x30] sm:$0xff] %v232_v6   ;;  %237 = vst [vmem:[%s189_s8 + $0x38] sm:$0xff] %v236_v7   ;;  %v244_v9 = vld [vmem:[%s2107_s7 + $0x90] sm:$0xff]  }
  0x19   : > { %241 = vst [vmem:[%s189_s8 + $0x40] sm:$0xff] %v240_v8   ;;  %v248_v10 = vld [vmem:[%s2107_s7 + $0xa0] sm:$0xff]   ;;  %v252_v11 = vld [vmem:[%s2107_s7 + $0xb0] sm:$0xff]   ;;  %245 = vst [vmem:[%s189_s8 + $0x48] sm:$0xff] %v244_v9  }
  0x1a   : > { %249 = vst [vmem:[%s189_s8 + $0x50] sm:$0xff] %v248_v10   ;;  %253 = vst [vmem:[%s189_s8 + $0x58] sm:$0xff] %v252_v11   ;;  %v256_v12 = vld [vmem:[%s2107_s7 + $0xc0] sm:$0xff]   ;;  %v260_v13 = vld [vmem:[%s2107_s7 + $0xd0] sm:$0xff]  }
  0x1b   : > { %v264_v14 = vld [vmem:[%s2107_s7 + $0xe0] sm:$0xff]   ;;  %257 = vst [vmem:[%s189_s8 + $0x60] sm:$0xff] %v256_v12   ;;  %261 = vst [vmem:[%s189_s8 + $0x68] sm:$0xff] %v260_v13   ;;  %v268_v15 = vld [vmem:[%s2107_s7 + $0xf0] sm:$0xff]  }
  0x1c   : > { %265 = vst [vmem:[%s189_s8 + $0x70] sm:$0xff] %v264_v14   ;;  %v272_v16 = vld [vmem:[%s2107_s7 + $0x100] sm:$0xff]   ;;  %v276_v17 = vld [vmem:[%s2107_s7 + $0x110] sm:$0xff]   ;;  %269 = vst [vmem:[%s189_s8 + $0x78] sm:$0xff] %v268_v15  }
  0x1d   : > { %273 = vst [vmem:[%s189_s8 + $0x80] sm:$0xff] %v272_v16   ;;  %277 = vst [vmem:[%s189_s8 + $0x88] sm:$0xff] %v276_v17  }
  0x1e PF: > { %p1638_p7 = scmp.ge.s32.totalorder %s2034_s20, 1  ;;  %p373_p8 = scmp.lt.s32.totalorder %s2034_s20, 3 }
  0x20   : > { %p374_p9 = pnand %p1638_p7, %p373_p8 }
  0x21   : > { %v1988_v18 = vld [vmem:[%s2410_s1 + $0xc] sm:$0xff] (!%p374_p9)   ;;  %vm606_vm0 = vcmask (!%p374_p9), 1043456   ;;  %v1989_v19 = vld [vmem:[%s2410_s1] sm:$0xff] (!%p374_p9)   ;;  %s380_s13 = sand.u32 (!%p374_p9), 1, %s2026_s18   ;;  %v1990_v20 = vld [vmem:[%s2410_s1 + $0x14] ss:$0 sps:$4 sm:$0xff] (!%p374_p9)  }
  0x22   : > { %377 = sbr.rel (%p374_p9) target bundleno = 370 (0x172), region = 69  ;;  %1782 = vmatprep.subr.bf16.mxu1 (!%p374_p9), %v1988_v18  ;;  %1818 = vmatprep.subr.bf16.mxu0 (!%p374_p9), %v1989_v19  ;;  %v1991_v21 = vld [vmem:[%s2410_s1 + $0x8] ss:$0 sps:$4 sm:$0xff] (!%p374_p9)   ;;  %v608_v22 = vsel (!%p374_p9), %vm606_vm0, %v1990_v20, 0  ;;  %vm557_vm1 = vcmask (!%p374_p9), 195584   ;;  %v1995_v24 = vld [vmem:[%s2410_s1 + $0x18] sm:$0xff] (!%p374_p9)  }
  0x23   : > { %1783 = vmatpush3.bf16.msra.mxu1 (!%p374_p9), %v1988_v18  ;;  %s1963_s20 = smul.u32 (!%p374_p9), 144, %s380_s13  ;;  %1819 = vmatpush3.bf16.msra.mxu0 (!%p374_p9), %v1989_v19  ;;  %v789_v23 = vsel (!%p374_p9), %vm606_vm0, %v1991_v21, 0  ;;  %v2000_v27 = vld [vmem:[%s2410_s1 + $0x20] ss:$0 sps:$4 sm:$0xff] (!%p374_p9)   ;;  %s1639_s30 = sshll.u32 (!%p374_p9), %s380_s13, 8 }
  0x24   : > { %1958 = vmatprep.subr.msk.bf16.mxu1 (!%p374_p9), %vm606_vm0, %v1990_v20  ;;  %1959 = vmatprep.subr.msk.bf16.mxu0 (!%p374_p9), %vm606_vm0, %v1991_v21  ;;  %v974_v30 = vsel (!%p374_p9), %vm606_vm0, %v2000_v27, 0  ;;  %v2244_v62 = vld [vmem:[%s2411_s2] ss:$0 sm:$0xff] (!%p374_p9)  ;;  %s2248_s8 = scalar_lea.vmem (!%p374_p9), [#allocation3], %s1639_s30  ;;  %p416_p10 = scmp.lt.s32.totalorder (!%p374_p9), %s2082_s21, 1 }
  0x25   : > { %s2151_s27 = scalar_lea.vmem (!%p374_p9), [#allocation2], %s1963_s20 }
  0x26   : > { %v1992_v25 = vld [vmem:[%s2151_s27 + $0x8] sm:$0xff] (!%p374_p9)   ;;  %v1993_v26 = vld [vmem:[%s2151_s27] sm:$0xff] (!%p374_p9)   ;;  %v1994_v28 = vld [vmem:[%s2151_s27 + $0x10] sm:$0xff] (!%p374_p9)  }
  0x27   : > { %1785 = vmatpush3.bf16.msra.mxu1 (!%p374_p9), %v608_v22  ;;  %1821 = vmatpush3.bf16.msra.mxu0 (!%p374_p9), %v789_v23  ;;  %v1996_v29 = vld [vmem:[%s2151_s27 + $0x18] sm:$0xff] (!%p374_p9)   ;;  %v1997_v31 = vld [vmem:[%s2151_s27 + $0x20] sm:$0xff] (!%p374_p9)   ;;  %v1998_v32 = vld [vmem:[%s2151_s27 + $0x28] sm:$0xff] (!%p374_p9)  }
  0x28   : > { %1786 = vmatprep.mubr.msk.bf16.mxu1 (!%p374_p9), %vm557_vm1, %v1992_v25  ;;  %1822 = vmatprep.mubr.msk.bf16.mxu0 (!%p374_p9), %vm557_vm1, %v1993_v26  ;;  %v1999_v33 = vld [vmem:[%s2151_s27 + $0x30] sm:$0xff] (!%p374_p9)   ;;  %v2001_v34 = vld [vmem:[%s2151_s27 + $0x38] sm:$0xff] (!%p374_p9)   ;;  %v2002_v35 = vld [vmem:[%s2151_s27 + $0x40] sm:$0xff] (!%p374_p9)  }
  0x29   : > { %1890 = vmatprep.subr.bf16.mxu1 %v1989_v19  ;;  %1854 = vmatprep.subr.bf16.mxu0 %v1995_v24  ;;  %v2003_v36 = vld [vmem:[%s2151_s27 + $0x48] sm:$0xff]   ;;  %v2004_v37 = vld [vmem:[%s2151_s27 + $0x50] sm:$0xff]   ;;  %v2005_v38 = vld [vmem:[%s2151_s27 + $0x58] sm:$0xff]   ;;  %s417_s18 = scalar_select %p416_p10, %s2082_s21, 1 }
  0x2a   : > { %1787 = vmatmul.mubr.msk.bf16.vlgmr.msra.gmra.mrb[0].mxu1 %vm557_vm1, %v1994_v28  ;;  %1823 = vmatmul.mubr.msk.bf16.vlgmr.msra.gmra.mrb[0].mxu0 %vm557_vm1, %v1992_v25  ;;  %v2006_v39 = vld [vmem:[%s2151_s27 + $0x60] sm:$0xff]   ;;  %v2007_v40 = vld [vmem:[%s2151_s27 + $0x68] sm:$0xff]   ;;  %v2008_v41 = vld [vmem:[%s2151_s27 + $0x70] sm:$0xff]   ;;  %s1727_s16 = sshll.u32 (%p2097_p5), %s2082_s21, 4 }
  0x2b   : > { %1892 = vmatpush3.bf16.msra.mxu1 %v1989_v19  ;;  %1855 = vmatpush3.bf16.msra.mxu0 %v1995_v24  ;;  %v2009_v42 = vld [vmem:[%s2151_s27 + $0x78] sm:$0xff]   ;;  %v2010_v43 = vld [vmem:[%s2151_s27 + $0x80] sm:$0xff]   ;;  %v2011_v44 = vld [vmem:[%s2151_s27 + $0x88] sm:$0xff]   ;;  %s1640_s9 = sshll.u32 %s417_s18, 3  ;;  %s2336_s23 = scalar_lea.vmem (%p2097_p5), %s2412_s3, %s1727_s16 }
  0x2c   : > { %1790 = vmatprep.mubr.msk.bf16.mxu1 %vm557_vm1, %v1996_v29  ;;  %1826 = vmatprep.mubr.msk.bf16.mxu0 %vm557_vm1, %v1994_v28  ;;  %s419_s12 = scalar_lea.vmem %s2413_s4, %s1640_s9  ;;  %s423_s15 = scalar_lea.vmem %s2414_s5, %s1640_s9 }
  0x2d   : > { %1961 = vmatprep.subr.msk.bf16.mxu0 %vm606_vm0, %v2000_v27  ;;  %1960 = vmatprep.subr.msk.bf16.mxu1 %vm606_vm0, %v1991_v21 }
  0x2f   : > { %1893 = vmatpush3.bf16.msra.mxu1 %v789_v23  ;;  %1857 = vmatpush3.bf16.msra.mxu0 %v974_v30 }
  0x32   : > { %1791 = vmatmul.mubr.msk.bf16.gmra.mrb[4].mxu1 %vm557_vm1, %v1997_v31  ;;  %1827 = vmatmul.mubr.msk.bf16.gmra.mrb[4].mxu0 %vm557_vm1, %v1996_v29 }
  0x33   : > { %1794 = vmatprep.mubr.msk.bf16.mxu1 %vm557_vm1, %v1998_v32  ;;  %1830 = vmatprep.mubr.msk.bf16.mxu0 %vm557_vm1, %v1997_v31 }
  0x3a   : > { %1795 = vmatmul.mubr.msk.bf16.gmra.mrb[8].mxu1 %vm557_vm1, %v1999_v33  ;;  %1831 = vmatmul.mubr.msk.bf16.gmra.mrb[8].mxu0 %vm557_vm1, %v1998_v32 }
  0x3b   : > { %1798 = vmatprep.mubr.msk.bf16.mxu1 %vm557_vm1, %v2001_v34  ;;  %1834 = vmatprep.mubr.msk.bf16.mxu0 %vm557_vm1, %v1999_v33 }
  0x42   : > { %1799 = vmatmul.mubr.msk.bf16.gmra.mrb[12].mxu1 %vm557_vm1, %v2002_v35  ;;  %1835 = vmatmul.mubr.msk.bf16.gmra.mrb[12].mxu0 %vm557_vm1, %v2001_v34 }
  0x43   : > { %1802 = vmatprep.mubr.msk.bf16.mxu1 %vm557_vm1, %v2003_v36  ;;  %1858 = vmatprep.mubr.msk.bf16.mxu0 %vm557_vm1, %v1994_v28 }
  0x4a   : > { %1803 = vmatmul.mubr.msk.bf16.gmra.mrb[16].mxu1 %vm557_vm1, %v2004_v37  ;;  %1859 = vmatmul.mubr.msk.bf16.vlgmr.msra.gmra.mrb[0].mxu0 %vm557_vm1, %v1996_v29 }
  0x4b   : > { %1806 = vmatprep.mubr.msk.bf16.mxu1 %vm557_vm1, %v2005_v38  ;;  %1862 = vmatprep.mubr.msk.bf16.mxu0 %vm557_vm1, %v1997_v31 }
  0x52   : > { %1807 = vmatmul.mubr.msk.bf16.gmra.mrb[20].mxu1 %vm557_vm1, %v2006_v39  ;;  %1863 = vmatmul.mubr.msk.bf16.gmra.mrb[4].mxu0 %vm557_vm1, %v1998_v32 }
  0x53   : > { %1810 = vmatprep.mubr.msk.bf16.mxu1 %vm557_vm1, %v2007_v40  ;;  %1866 = vmatprep.mubr.msk.bf16.mxu0 %vm557_vm1, %v1999_v33 }
  0x5a   : > { %1811 = vmatmul.mubr.msk.bf16.gmra.mrb[24].mxu1 %vm557_vm1, %v2008_v41  ;;  %1867 = vmatmul.mubr.msk.bf16.gmra.mrb[8].mxu0 %vm557_vm1, %v2001_v34 }
  0x5b   : > { %1814 = vmatprep.mubr.msk.bf16.mxu1 %vm557_vm1, %v2009_v42  ;;  %1870 = vmatprep.mubr.msk.bf16.mxu0 %vm557_vm1, %v2002_v35 }
  0x62   : > { %1815 = vmatmul.mubr.msk.bf16.gmra.mrb[28].mxu1 %vm557_vm1, %v2010_v43  ;;  %1871 = vmatmul.mubr.msk.bf16.gmra.mrb[12].mxu0 %vm557_vm1, %v2003_v36 }
  0x63   : > { %1838 = vmatprep.mubr.msk.bf16.mxu1 %vm557_vm1, %v2002_v35  ;;  %1874 = vmatprep.mubr.msk.bf16.mxu0 %vm557_vm1, %v2004_v37 }
  0x6a   : > { %1839 = vmatmul.mubr.msk.bf16.vlgmr.msra.gmra.mrb[16].mxu1 %vm557_vm1, %v2003_v36  ;;  %1875 = vmatmul.mubr.msk.bf16.gmra.mrb[16].mxu0 %vm557_vm1, %v2005_v38 }
  0x6b   : > { %1842 = vmatprep.mubr.msk.bf16.mxu1 %vm557_vm1, %v2004_v37  ;;  %1878 = vmatprep.mubr.msk.bf16.mxu0 %vm557_vm1, %v2006_v39 }
  0x72   : > { %1843 = vmatmul.mubr.msk.bf16.gmra.mrb[20].mxu1 %vm557_vm1, %v2005_v38  ;;  %1879 = vmatmul.mubr.msk.bf16.gmra.mrb[20].mxu0 %vm557_vm1, %v2007_v40 }
  0x73   : > { %1846 = vmatprep.mubr.msk.bf16.mxu1 %vm557_vm1, %v2006_v39  ;;  %1882 = vmatprep.mubr.msk.bf16.mxu0 %vm557_vm1, %v2008_v41 }
  0x7a   : > { %1847 = vmatmul.mubr.msk.bf16.gmra.mrb[24].mxu1 %vm557_vm1, %v2007_v40  ;;  %1883 = vmatmul.mubr.msk.bf16.gmra.mrb[24].mxu0 %vm557_vm1, %v2009_v42 }
  0x7b   : > { %1850 = vmatprep.mubr.msk.bf16.mxu1 %vm557_vm1, %v2008_v41  ;;  %1886 = vmatprep.mubr.msk.bf16.mxu0 %vm557_vm1, %v2010_v43 }
  0x82   : > { %1851 = vmatmul.mubr.msk.bf16.gmra.mrb[28].mxu1 %vm557_vm1, %v2009_v42  ;;  %1887 = vmatmul.mubr.msk.bf16.gmra.mrb[28].mxu0 %vm557_vm1, %v2011_v44 }
  0xfd   : > { %v1788_v45 = vpop.f32.mrb[0].mxu1 }
  0xfe   : > { %v644_v46 = vpop.f32.mrb[1].mxu1 }
  0xff   : > { %v1789_v47 = vpop.f32.mrb[2].mxu1 }
 0x100   : > { %v647_v48 = vpop.f32.mrb[3].mxu1 }
 0x105   : > { %v1792_v49 = vpop.f32.mrb[4].mxu1 }
 0x106   : > { %v660_v50 = vpop.f32.mrb[5].mxu1 }
 0x107   : > { %v1793_v51 = vpop.f32.mrb[6].mxu1 }
 0x108   : > { %v663_v52 = vpop.f32.mrb[7].mxu1 }
 0x10d   : > { %v1796_v53 = vpop.f32.mrb[8].mxu1 }
 0x10e   : > { %v2225_v54 = vpop.f32.mrb[9].mxu1 }
 0x10f   : > { %v2227_v55 = vpop.f32.mrb[10].mxu1 }
 0x110   : > { %v2229_v56 = vpop.f32.mrb[11].mxu1 }
 0x115   : > { %v2231_v57 = vpop.f32.mrb[12].mxu1 }
 0x116   : > { %v2233_v58 = vpop.f32.mrb[13].mxu1 }
 0x117   : > { %v2235_v59 = vpop.f32.mrb[14].mxu1 }
 0x118   : > { %v2237_v60 = vpop.f32.mrb[15].mxu1 }
 0x11d   : > { %v1860_v61 = vpop.f32.mrb[0].mxu0 }
 0x11e   : > { %v1894_v63 = vadd.f32 %v1860_v61, %v1788_v45  ;;  %v1010_v0 = vpop.f32.mrb[1].mxu0 }
 0x11f   : > { %v1895_v1 = vadd.f32 %v1010_v0, %v644_v46  ;;  %v1861_v2 = vpop.f32.mrb[2].mxu0 }
 0x120   : > { %v1178_v3 = vadd.f32 %v1894_v63, %v2244_v62  ;;  %v1896_v4 = vadd.f32 %v1861_v2, %v1789_v47  ;;  %v1013_v5 = vpop.f32.mrb[3].mxu0 }
 0x121   : > { %v1176_v6 = vadd.f32 %v1895_v1, %v2244_v62  ;;  %v1897_v7 = vadd.f32 %v1013_v5, %v647_v48 }
 0x122   : > { %1210 = vst [vmem:[%s2248_s8 + $0x10] sm:$0xff] %v1178_v3  ;;  %v1179_v8 = vadd.f32 %v1896_v4, %v2244_v62  ;;  %v1280_v16 = vmul.f32 %v1178_v3, %v1178_v3 }
 0x123   : > { %1208 = vst [vmem:[%s2248_s8] sm:$0xff] %v1176_v6  ;;  %v1177_v9 = vadd.f32 %v1897_v7, %v2244_v62  ;;  %v1278_v10 = vmul.f32 %v1176_v6, %v1176_v6 }
 0x124   : > { %1211 = vst [vmem:[%s2248_s8 + $0x18] sm:$0xff] %v1179_v8  ;;  %v1281_v21 = vmul.f32 %v1179_v8, %v1179_v8 }
 0x125   : > { %1209 = vst [vmem:[%s2248_s8 + $0x8] sm:$0xff] %v1177_v9  ;;  %v1240_v11 = vadd.f32 %v1177_v9, %v1176_v6  ;;  %v1279_v12 = vmul.f32 %v1177_v9, %v1177_v9  ;;  %v1864_v13 = vpop.f32.mrb[4].mxu0 }
 0x126   : > { %v1898_v14 = vadd.f32 %v1864_v13, %v1792_v49  ;;  %v1026_v15 = vpop.f32.mrb[5].mxu0 }
 0x127   : > { %v1241_v17 = vadd.f32 %v1240_v11, %v1178_v3  ;;  %v1310_v18 = vadd.f32 %v1279_v12, %v1278_v10  ;;  %v1899_v19 = vadd.f32 %v1026_v15, %v660_v50  ;;  %v1865_v20 = vpop.f32.mrb[6].mxu0 }
 0x128   : > { %v1182_v22 = vadd.f32 %v1898_v14, %v2244_v62  ;;  %v1900_v23 = vadd.f32 %v1865_v20, %v1793_v51  ;;  %v1029_v24 = vpop.f32.mrb[7].mxu0 }
 0x129   : > { %v1311_v25 = vadd.f32 %v1310_v18, %v1280_v16  ;;  %v1180_v26 = vadd.f32 %v1899_v19, %v2244_v62  ;;  %v1242_v27 = vadd.f32 %v1241_v17, %v1179_v8  ;;  %v1901_v28 = vadd.f32 %v1029_v24, %v663_v52 }
 0x12a   : > { %1214 = vst [vmem:[%s2248_s8 + $0x30] sm:$0xff] %v1182_v22  ;;  %v1183_v29 = vadd.f32 %v1900_v23, %v2244_v62  ;;  %v1284_v40 = vmul.f32 %v1182_v22, %v1182_v22 }
 0x12b   : > { %1212 = vst [vmem:[%s2248_s8 + $0x20] sm:$0xff] %v1180_v26  ;;  %v1243_v30 = vadd.f32 %v1242_v27, %v1180_v26  ;;  %v1282_v31 = vmul.f32 %v1180_v26, %v1180_v26  ;;  %v1312_v32 = vadd.f32 %v1311_v25, %v1281_v21  ;;  %v1181_v33 = vadd.f32 %v1901_v28, %v2244_v62 }
 0x12c   : > { %1215 = vst [vmem:[%s2248_s8 + $0x38] sm:$0xff] %v1183_v29  ;;  %v1285_v45 = vmul.f32 %v1183_v29, %v1183_v29 }
 0x12d   : > { %v1313_v34 = vadd.f32 %v1312_v32, %v1282_v31  ;;  %1213 = vst [vmem:[%s2248_s8 + $0x28] sm:$0xff] %v1181_v33  ;;  %v1244_v35 = vadd.f32 %v1243_v30, %v1181_v33  ;;  %v1283_v36 = vmul.f32 %v1181_v33, %v1181_v33  ;;  %v1868_v37 = vpop.f32.mrb[8].mxu0 }
 0x12e   : > { %v1902_v38 = vadd.f32 %v1868_v37, %v1796_v53  ;;  %v1042_v39 = vpop.f32.mrb[9].mxu0 }
 0x12f   : > { %v1245_v41 = vadd.f32 %v1244_v35, %v1182_v22  ;;  %v1314_v42 = vadd.f32 %v1313_v34, %v1283_v36  ;;  %v1903_v43 = vadd.f32 %v1042_v39, %v2225_v54  ;;  %v1869_v44 = vpop.f32.mrb[10].mxu0 }
 0x130   : > { %v1186_v46 = vadd.f32 %v1902_v38, %v2244_v62  ;;  %v1904_v47 = vadd.f32 %v1869_v44, %v2227_v55  ;;  %v1045_v48 = vpop.f32.mrb[11].mxu0 }
 0x131   : > { %v1315_v49 = vadd.f32 %v1314_v42, %v1284_v40  ;;  %v1184_v50 = vadd.f32 %v1903_v43, %v2244_v62  ;;  %v1246_v51 = vadd.f32 %v1245_v41, %v1183_v29  ;;  %v1905_v52 = vadd.f32 %v1045_v48, %v2229_v56 }
 0x132   : > { %1218 = vst [vmem:[%s2248_s8 + $0x50] sm:$0xff] %v1186_v46  ;;  %v1187_v53 = vadd.f32 %v1904_v47, %v2244_v62  ;;  %v1288_v56 = vmul.f32 %v1186_v46, %v1186_v46 }
 0x133   : > { %1216 = vst [vmem:[%s2248_s8 + $0x40] sm:$0xff] %v1184_v50  ;;  %v1247_v54 = vadd.f32 %v1246_v51, %v1184_v50  ;;  %v1286_v61 = vmul.f32 %v1184_v50, %v1184_v50  ;;  %v1316_v63 = vadd.f32 %v1315_v49, %v1285_v45  ;;  %v1185_v0 = vadd.f32 %v1905_v52, %v2244_v62 }
 0x134   : > { %1219 = vst [vmem:[%s2248_s8 + $0x58] sm:$0xff] %v1187_v53  ;;  %v1289_v10 = vmul.f32 %v1187_v53, %v1187_v53 }
 0x135   : > { %v1317_v1 = vadd.f32 %v1316_v63, %v1286_v61  ;;  %1217 = vst [vmem:[%s2248_s8 + $0x48] sm:$0xff] %v1185_v0  ;;  %v1248_v55 = vadd.f32 %v1247_v54, %v1185_v0  ;;  %v1287_v2 = vmul.f32 %v1185_v0, %v1185_v0  ;;  %v1872_v3 = vpop.f32.mrb[12].mxu0 }
 0x136   : > { %v1906_v4 = vadd.f32 %v1872_v3, %v2231_v57  ;;  %v1058_v5 = vpop.f32.mrb[13].mxu0 }
 0x137   : > { %v1249_v6 = vadd.f32 %v1248_v55, %v1186_v46  ;;  %v1318_v7 = vadd.f32 %v1317_v1, %v1287_v2  ;;  %v1907_v8 = vadd.f32 %v1058_v5, %v2233_v58  ;;  %v1873_v9 = vpop.f32.mrb[14].mxu0 }
 0x138   : > { %v1190_v11 = vadd.f32 %v1906_v4, %v2244_v62  ;;  %v1908_v12 = vadd.f32 %v1873_v9, %v2235_v59  ;;  %v1061_v13 = vpop.f32.mrb[15].mxu0 }
 0x139   : > { %v1319_v14 = vadd.f32 %v1318_v7, %v1288_v56  ;;  %v1188_v15 = vadd.f32 %v1907_v8, %v2244_v62  ;;  %v1250_v57 = vadd.f32 %v1249_v6, %v1187_v53  ;;  %v1909_v16 = vadd.f32 %v1061_v13, %v2237_v60 }
 0x13a   : > { %1222 = vst [vmem:[%s2248_s8 + $0x70] sm:$0xff] %v1190_v11  ;;  %v1191_v17 = vadd.f32 %v1908_v12, %v2244_v62  ;;  %v1292_v28 = vmul.f32 %v1190_v11, %v1190_v11 }
 0x13b   : > { %1220 = vst [vmem:[%s2248_s8 + $0x60] sm:$0xff] %v1188_v15  ;;  %v1251_v58 = vadd.f32 %v1250_v57, %v1188_v15  ;;  %v1290_v18 = vmul.f32 %v1188_v15, %v1188_v15  ;;  %v1320_v19 = vadd.f32 %v1319_v14, %v1289_v10  ;;  %v1189_v20 = vadd.f32 %v1909_v16, %v2244_v62 }
 0x13c   : > { %1223 = vst [vmem:[%s2248_s8 + $0x78] sm:$0xff] %v1191_v17  ;;  %v1293_v34 = vmul.f32 %v1191_v17, %v1191_v17 }
 0x13d   : > { %v1840_v21 = vpop.f32.mrb[16].mxu1  ;;  %v1321_v59 = vadd.f32 %v1320_v19, %v1290_v18  ;;  %1221 = vst [vmem:[%s2248_s8 + $0x68] sm:$0xff] %v1189_v20  ;;  %v1252_v22 = vadd.f32 %v1251_v58, %v1189_v20  ;;  %v1291_v23 = vmul.f32 %v1189_v20, %v1189_v20  ;;  %v1876_v24 = vpop.f32.mrb[16].mxu0 }
 0x13e   : > { %v889_v25 = vpop.f32.mrb[17].mxu1  ;;  %v1910_v26 = vadd.f32 %v1876_v24, %v1840_v21  ;;  %v1074_v27 = vpop.f32.mrb[17].mxu0 }
 0x13f   : > { %v1841_v60 = vpop.f32.mrb[18].mxu1  ;;  %v1253_v29 = vadd.f32 %v1252_v22, %v1190_v11  ;;  %v1322_v30 = vadd.f32 %v1321_v59, %v1291_v23  ;;  %v1911_v31 = vadd.f32 %v1074_v27, %v889_v25  ;;  %v1877_v32 = vpop.f32.mrb[18].mxu0 }
 0x140   : > { %v892_v33 = vpop.f32.mrb[19].mxu1  ;;  %v1194_v35 = vadd.f32 %v1910_v26, %v2244_v62  ;;  %v1912_v36 = vadd.f32 %v1877_v32, %v1841_v60  ;;  %v1077_v37 = vpop.f32.mrb[19].mxu0 }
 0x141   : > { %v1323_v38 = vadd.f32 %v1322_v30, %v1292_v28  ;;  %v1192_v39 = vadd.f32 %v1911_v31, %v2244_v62  ;;  %v1254_v40 = vadd.f32 %v1253_v29, %v1191_v17  ;;  %v1913_v41 = vadd.f32 %v1077_v37, %v892_v33 }
 0x142   : > { %1226 = vst [vmem:[%s2248_s8 + $0x90] sm:$0xff] %v1194_v35  ;;  %v1195_v42 = vadd.f32 %v1912_v36, %v2244_v62  ;;  %v1296_v63 = vmul.f32 %v1194_v35, %v1194_v35 }
 0x143   : > { %1224 = vst [vmem:[%s2248_s8 + $0x80] sm:$0xff] %v1192_v39  ;;  %v1255_v43 = vadd.f32 %v1254_v40, %v1192_v39  ;;  %v1294_v44 = vmul.f32 %v1192_v39, %v1192_v39  ;;  %v1324_v45 = vadd.f32 %v1323_v38, %v1293_v34  ;;  %v1193_v46 = vadd.f32 %v1913_v41, %v2244_v62 }
 0x144   : > { %1227 = vst [vmem:[%s2248_s8 + $0x98] sm:$0xff] %v1195_v42  ;;  %v1297_v4 = vmul.f32 %v1195_v42, %v1195_v42 }
 0x145   : > { %v1844_v47 = vpop.f32.mrb[20].mxu1  ;;  %v1325_v48 = vadd.f32 %v1324_v45, %v1294_v44  ;;  %1225 = vst [vmem:[%s2248_s8 + $0x88] sm:$0xff] %v1193_v46  ;;  %v1256_v49 = vadd.f32 %v1255_v43, %v1193_v46  ;;  %v1295_v50 = vmul.f32 %v1193_v46, %v1193_v46  ;;  %v1880_v51 = vpop.f32.mrb[20].mxu0 }
 0x146   : > { %v905_v52 = vpop.f32.mrb[21].mxu1  ;;  %v1914_v53 = vadd.f32 %v1880_v51, %v1844_v47  ;;  %v1090_v54 = vpop.f32.mrb[21].mxu0 }
 0x147   : > { %v1845_v61 = vpop.f32.mrb[22].mxu1  ;;  %v1257_v0 = vadd.f32 %v1256_v49, %v1194_v35  ;;  %v1326_v1 = vadd.f32 %v1325_v48, %v1295_v50  ;;  %v1915_v55 = vadd.f32 %v1090_v54, %v905_v52  ;;  %v1881_v2 = vpop.f32.mrb[22].mxu0 }
 0x148   : > { %v908_v3 = vpop.f32.mrb[23].mxu1  ;;  %v1198_v5 = vadd.f32 %v1914_v53, %v2244_v62  ;;  %v1916_v56 = vadd.f32 %v1881_v2, %v1845_v61  ;;  %v1093_v6 = vpop.f32.mrb[23].mxu0 }
 0x149   : > { %v1327_v7 = vadd.f32 %v1326_v1, %v1296_v63  ;;  %v1196_v8 = vadd.f32 %v1915_v55, %v2244_v62  ;;  %v1258_v9 = vadd.f32 %v1257_v0, %v1195_v42  ;;  %v1917_v10 = vadd.f32 %v1093_v6, %v908_v3 }
 0x14a   : > { %1230 = vst [vmem:[%s2248_s8 + $0xb0] sm:$0xff] %v1198_v5  ;;  %v1199_v11 = vadd.f32 %v1916_v56, %v2244_v62  ;;  %v1300_v22 = vmul.f32 %v1198_v5, %v1198_v5 }
 0x14b   : > { %1228 = vst [vmem:[%s2248_s8 + $0xa0] sm:$0xff] %v1196_v8  ;;  %v1259_v12 = vadd.f32 %v1258_v9, %v1196_v8  ;;  %v1298_v13 = vmul.f32 %v1196_v8, %v1196_v8  ;;  %v1328_v14 = vadd.f32 %v1327_v7, %v1297_v4  ;;  %v1197_v15 = vadd.f32 %v1917_v10, %v2244_v62 }
 0x14c   : > { %1231 = vst [vmem:[%s2248_s8 + $0xb8] sm:$0xff] %v1199_v11  ;;  %v1301_v60 = vmul.f32 %v1199_v11, %v1199_v11 }
 0x14d   : > { %v1848_v57 = vpop.f32.mrb[24].mxu1  ;;  %v1329_v16 = vadd.f32 %v1328_v14, %v1298_v13  ;;  %1229 = vst [vmem:[%s2248_s8 + $0xa8] sm:$0xff] %v1197_v15  ;;  %v1260_v17 = vadd.f32 %v1259_v12, %v1197_v15  ;;  %v1299_v58 = vmul.f32 %v1197_v15, %v1197_v15  ;;  %v1884_v18 = vpop.f32.mrb[24].mxu0 }
 0x14e   : > { %v921_v19 = vpop.f32.mrb[25].mxu1  ;;  %v1918_v20 = vadd.f32 %v1884_v18, %v1848_v57  ;;  %v1106_v21 = vpop.f32.mrb[25].mxu0 }
 0x14f   : > { %v1849_v59 = vpop.f32.mrb[26].mxu1  ;;  %v1261_v23 = vadd.f32 %v1260_v17, %v1198_v5  ;;  %v1330_v24 = vadd.f32 %v1329_v16, %v1299_v58  ;;  %v1919_v25 = vadd.f32 %v1106_v21, %v921_v19  ;;  %v1885_v26 = vpop.f32.mrb[26].mxu0 }
 0x150   : > { %v924_v27 = vpop.f32.mrb[27].mxu1  ;;  %v1202_v28 = vadd.f32 %v1918_v20, %v2244_v62  ;;  %v1920_v29 = vadd.f32 %v1885_v26, %v1849_v59  ;;  %v1109_v30 = vpop.f32.mrb[27].mxu0 }
 0x151   : > { %v1331_v31 = vadd.f32 %v1330_v24, %v1300_v22  ;;  %v1200_v32 = vadd.f32 %v1919_v25, %v2244_v62  ;;  %v1262_v33 = vadd.f32 %v1261_v23, %v1199_v11  ;;  %v1921_v34 = vadd.f32 %v1109_v30, %v924_v27  ;;  %v1455_v27 = vld [vmem:[%s2248_s8] sm:$0xff] (%p2097_p5) }
 0x152   : > { %1234 = vst [vmem:[%s2248_s8 + $0xd0] sm:$0xff] %v1202_v28  ;;  %v1203_v35 = vadd.f32 %v1920_v29, %v2244_v62  ;;  %v1304_v49 = vmul.f32 %v1202_v28, %v1202_v28  ;;  %v1461_v29 = vld [vmem:[%s2248_s8 + $0x18] sm:$0xff] (%p2097_p5)  ;;  %v1463_v30 = vld [vmem:[%s2248_s8 + $0x20] sm:$0xff] (%p2097_p5)  ;;  %1456 = vst [vmem:[%s2336_s23] sm:$0xff] (%p2097_p5), %v1455_v27 }
 0x153   : > { %1232 = vst [vmem:[%s2248_s8 + $0xc0] sm:$0xff] %v1200_v32  ;;  %v1263_v36 = vadd.f32 %v1262_v33, %v1200_v32  ;;  %v1302_v37 = vmul.f32 %v1200_v32, %v1200_v32  ;;  %v1332_v38 = vadd.f32 %v1331_v31, %v1301_v60  ;;  %v1201_v39 = vadd.f32 %v1921_v34, %v2244_v62  ;;  %v1457_v60 = vld [vmem:[%s2248_s8 + $0x8] sm:$0xff] (%p2097_p5)  ;;  %v1467_v32 = vld [vmem:[%s2248_s8 + $0x30] sm:$0xff] (%p2097_p5)  ;;  %v1469_v33 = vld [vmem:[%s2248_s8 + $0x38] sm:$0xff] (%p2097_p5) }
 0x154   : > { %1235 = vst [vmem:[%s2248_s8 + $0xd8] sm:$0xff] %v1203_v35  ;;  %v1305_v61 = vmul.f32 %v1203_v35, %v1203_v35  ;;  %v1465_v31 = vld [vmem:[%s2248_s8 + $0x28] sm:$0xff] (%p2097_p5)  ;;  %1458 = vst [vmem:[%s2336_s23 + $0x8] sm:$0xff] (%p2097_p5), %v1457_v60  ;;  %v1471_v34 = vld [vmem:[%s2248_s8 + $0x40] sm:$0xff] (%p2097_p5) }
 0x155   : > { %v1852_v40 = vpop.f32.mrb[28].mxu1  ;;  %v1333_v41 = vadd.f32 %v1332_v38, %v1302_v37  ;;  %1233 = vst [vmem:[%s2248_s8 + $0xc8] sm:$0xff] %v1201_v39  ;;  %v1264_v42 = vadd.f32 %v1263_v36, %v1201_v39  ;;  %v1303_v43 = vmul.f32 %v1201_v39, %v1201_v39  ;;  %v1888_v44 = vpop.f32.mrb[28].mxu0  ;;  %1462 = vst [vmem:[%s2336_s23 + $0x28] sm:$0xff] (%p2097_p5), %v1461_v29  ;;  %v1475_v36 = vld [vmem:[%s2248_s8 + $0x50] sm:$0xff] (%p2097_p5)  ;;  %v1477_v37 = vld [vmem:[%s2248_s8 + $0x58] sm:$0xff] (%p2097_p5) }
 0x156   : > { %v937_v45 = vpop.f32.mrb[29].mxu1  ;;  %v1922_v46 = vadd.f32 %v1888_v44, %v1852_v40  ;;  %v1122_v47 = vpop.f32.mrb[29].mxu0  ;;  %1464 = vst [vmem:[%s2336_s23 + $0x40] sm:$0xff] (%p2097_p5), %v1463_v30  ;;  %1466 = vst [vmem:[%s2336_s23 + $0x48] sm:$0xff] (%p2097_p5), %v1465_v31  ;;  %v1479_v38 = vld [vmem:[%s2248_s8 + $0x60] sm:$0xff] (%p2097_p5)  ;;  %v1481_v39 = vld [vmem:[%s2248_s8 + $0x68] sm:$0xff] (%p2097_p5) }
 0x157   : > { %v1853_v48 = vpop.f32.mrb[30].mxu1  ;;  %v1265_v50 = vadd.f32 %v1264_v42, %v1202_v28  ;;  %v1334_v51 = vadd.f32 %v1333_v41, %v1303_v43  ;;  %v1923_v52 = vadd.f32 %v1122_v47, %v937_v45  ;;  %v1889_v53 = vpop.f32.mrb[30].mxu0  ;;  %v1459_v28 = vld [vmem:[%s2248_s8 + $0x10] sm:$0xff] (%p2097_p5)  ;;  %1468 = vst [vmem:[%s2336_s23 + $0x60] sm:$0xff] (%p2097_p5), %v1467_v32  ;;  %1470 = vst [vmem:[%s2336_s23 + $0x68] sm:$0xff] (%p2097_p5), %v1469_v33  ;;  %v1485_v41 = vld [vmem:[%s2248_s8 + $0x78] sm:$0xff] (%p2097_p5) }
 0x158   : > { %v940_v54 = vpop.f32.mrb[31].mxu1  ;;  %v1206_v63 = vadd.f32 %v1922_v46, %v2244_v62  ;;  %v1924_v0 = vadd.f32 %v1889_v53, %v1853_v48  ;;  %v1125_v1 = vpop.f32.mrb[31].mxu0  ;;  %1460 = vst [vmem:[%s2336_s23 + $0x20] sm:$0xff] (%p2097_p5), %v1459_v28  ;;  %1472 = vst [vmem:[%s2336_s23 + $0x80] sm:$0xff] (%p2097_p5), %v1471_v34  ;;  %v1483_v40 = vld [vmem:[%s2248_s8 + $0x70] sm:$0xff] (%p2097_p5)  ;;  %v1487_v42 = vld [vmem:[%s2248_s8 + $0x80] sm:$0xff] (%p2097_p5) }
 0x159   : > { %v1335_v55 = vadd.f32 %v1334_v51, %v1304_v49  ;;  %v1204_v2 = vadd.f32 %v1923_v52, %v2244_v62  ;;  %v1266_v3 = vadd.f32 %v1265_v50, %v1203_v35  ;;  %v1925_v4 = vadd.f32 %v1125_v1, %v940_v54  ;;  %v1473_v35 = vld [vmem:[%s2248_s8 + $0x48] sm:$0xff] (%p2097_p5)  ;;  %1476 = vst [vmem:[%s2336_s23 + $0xa0] sm:$0xff] (%p2097_p5), %v1475_v36  ;;  %v1491_v44 = vld [vmem:[%s2248_s8 + $0x90] sm:$0xff] (%p2097_p5)  ;;  %v1493_v45 = vld [vmem:[%s2248_s8 + $0x98] sm:$0xff] (%p2097_p5) }
 0x15a   : > { %1238 = vst [vmem:[%s2248_s8 + $0xf0] sm:$0xff] %v1206_v63  ;;  %v1207_v5 = vadd.f32 %v1924_v0, %v2244_v62  ;;  %v1308_v12 = vmul.f32 %v1206_v63, %v1206_v63  ;;  %1474 = vst [vmem:[%s2336_s23 + $0x88] sm:$0xff] (%p2097_p5), %v1473_v35  ;;  %v1489_v43 = vld [vmem:[%s2248_s8 + $0x88] sm:$0xff] (%p2097_p5)  ;;  %v1495_v46 = vld [vmem:[%s2248_s8 + $0xa0] sm:$0xff] (%p2097_p5) }
 0x15b   : > { %1236 = vst [vmem:[%s2248_s8 + $0xe0] sm:$0xff] %v1204_v2  ;;  %v1267_v56 = vadd.f32 %v1266_v3, %v1204_v2  ;;  %v1306_v6 = vmul.f32 %v1204_v2, %v1204_v2  ;;  %v1336_v7 = vadd.f32 %v1335_v55, %v1305_v61  ;;  %v1205_v8 = vadd.f32 %v1925_v4, %v2244_v62  ;;  %v1497_v47 = vld [vmem:[%s2248_s8 + $0xa8] sm:$0xff] (%p2097_p5)  ;;  %v1499_v48 = vld [vmem:[%s2248_s8 + $0xb0] sm:$0xff] (%p2097_p5)  ;;  %v1501_v49 = vld [vmem:[%s2248_s8 + $0xb8] sm:$0xff] (%p2097_p5) }
 0x15c   : > { %1239 = vst [vmem:[%s2248_s8 + $0xf8] sm:$0xff] %v1207_v5  ;;  %v1309_v15 = vmul.f32 %v1207_v5, %v1207_v5  ;;  %1478 = vst [vmem:[%s2336_s23 + $0xa8] sm:$0xff] (%p2097_p5), %v1477_v37  ;;  %v1503_v50 = vld [vmem:[%s2248_s8 + $0xc0] sm:$0xff] (%p2097_p5)  ;;  %v1505_v51 = vld [vmem:[%s2248_s8 + $0xc8] sm:$0xff] (%p2097_p5) }
 0x15d   : > { %v1337_v9 = vadd.f32 %v1336_v7, %v1306_v6  ;;  %1237 = vst [vmem:[%s2248_s8 + $0xe8] sm:$0xff] %v1205_v8  ;;  %v1268_v10 = vadd.f32 %v1267_v56, %v1205_v8  ;;  %v1307_v11 = vmul.f32 %v1205_v8, %v1205_v8  ;;  %1480 = vst [vmem:[%s2336_s23 + $0xc0] sm:$0xff] (%p2097_p5), %v1479_v38  ;;  %v1507_v52 = vld [vmem:[%s2248_s8 + $0xd0] sm:$0xff] (%p2097_p5)  ;;  %v1509_v53 = vld [vmem:[%s2248_s8 + $0xd8] sm:$0xff] (%p2097_p5) }
 0x15e   : > { %1482 = vst [vmem:[%s2336_s23 + $0xc8] sm:$0xff] (%p2097_p5), %v1481_v39  ;;  %1484 = vst [vmem:[%s2336_s23 + $0xe0] sm:$0xff] (%p2097_p5), %v1483_v40 }
 0x15f   : > { %v1269_v13 = vadd.f32 %v1268_v10, %v1206_v63  ;;  %v1338_v14 = vadd.f32 %v1337_v9, %v1307_v11  ;;  %1486 = vst [vmem:[%s2336_s23 + $0xe8] sm:$0xff] (%p2097_p5), %v1485_v41  ;;  %1488 = vst [vmem:[%s2336_s23 + $0x100] sm:$0xff] (%p2097_p5), %v1487_v42 }
 0x160   : > { %1490 = vst [vmem:[%s2336_s23 + $0x108] sm:$0xff] (%p2097_p5), %v1489_v43  ;;  %1492 = vst [vmem:[%s2336_s23 + $0x120] sm:$0xff] (%p2097_p5), %v1491_v44 }
 0x161   : > { %v1270_v57 = vadd.f32 %v1269_v13, %v1207_v5  ;;  %v1339_v16 = vadd.f32 %v1338_v14, %v1308_v12  ;;  %1494 = vst [vmem:[%s2336_s23 + $0x128] sm:$0xff] (%p2097_p5), %v1493_v45  ;;  %1496 = vst [vmem:[%s2336_s23 + $0x140] sm:$0xff] (%p2097_p5), %v1495_v46  ;;  %v1515_v63 = vld [vmem:[%s2248_s8 + $0xf0] sm:$0xff] (%p2097_p5) }
 0x162   : > { %1498 = vst [vmem:[%s2336_s23 + $0x148] sm:$0xff] (%p2097_p5), %v1497_v47  ;;  %1500 = vst [vmem:[%s2336_s23 + $0x160] sm:$0xff] (%p2097_p5), %v1499_v48  ;;  %v1511_v54 = vld [vmem:[%s2248_s8 + $0xe0] sm:$0xff] (%p2097_p5) }
 0x163   : > { %v1271_v17 = vrot.slane %v1270_v57, 4  ;;  %v1340_v58 = vadd.f32 %v1339_v16, %v1309_v15  ;;  %1502 = vst [vmem:[%s2336_s23 + $0x168] sm:$0xff] (%p2097_p5), %v1501_v49  ;;  %1504 = vst [vmem:[%s2336_s23 + $0x180] sm:$0xff] (%p2097_p5), %v1503_v50  ;;  %v1517_v0 = vld [vmem:[%s2248_s8 + $0xf8] sm:$0xff] (%p2097_p5) }
 0x164   : > { %1506 = vst [vmem:[%s2336_s23 + $0x188] sm:$0xff] (%p2097_p5), %v1505_v51  ;;  %1508 = vst [vmem:[%s2336_s23 + $0x1a0] sm:$0xff] (%p2097_p5), %v1507_v52  ;;  %v1513_v61 = vld [vmem:[%s2248_s8 + $0xe8] sm:$0xff] (%p2097_p5) }
 0x165   : > { %v1272_v18 = vadd.f32 %v1271_v17, %v1270_v57  ;;  %v1341_v19 = vrot.slane %v1340_v58, 4  ;;  %1510 = vst [vmem:[%s2336_s23 + $0x1a8] sm:$0xff] (%p2097_p5), %v1509_v53  ;;  %1512 = vst [vmem:[%s2336_s23 + $0x1c0] sm:$0xff] (%p2097_p5), %v1511_v54 }
 0x166   : > { %1514 = vst [vmem:[%s2336_s23 + $0x1c8] sm:$0xff] (%p2097_p5), %v1513_v61  ;;  %1516 = vst [vmem:[%s2336_s23 + $0x1e0] sm:$0xff] (%p2097_p5), %v1515_v63 }
 0x167   : > { %v1273_v20 = vrot.slane %v1272_v18, 2  ;;  %v1342_v21 = vadd.f32 %v1341_v19, %v1340_v58  ;;  %1518 = vst [vmem:[%s2336_s23 + $0x1e8] sm:$0xff] (%p2097_p5), %v1517_v0 }
 0x169   : > { %v1274_v62 = vadd.f32 %v1273_v20, %v1272_v18  ;;  %v1343_v59 = vrot.slane %v1342_v21, 2 }
 0x16b   : > { %v1275_v22 = vrot.slane %v1274_v62, 1  ;;  %v1344_v23 = vadd.f32 %v1343_v59, %v1342_v21  ;;  %1362 = sbr.rel (!%p2097_p5) target bundleno = 370 (0x172), region = 77 }
 0x16d   : > { %v1276_v24 = vadd.f32 %v1275_v22, %v1274_v62  ;;  %v1345_v25 = vrot.slane %v1344_v23, 1 }
 0x16f   : > { %1277 = vst [vmem:[%s419_s12] sm:$0xff] %v1276_v24  ;;  %v1346_v26 = vadd.f32 %v1345_v25, %v1344_v23 }
 0x171   : > { %1347 = vst [vmem:[%s423_s15] sm:$0xff] %v1346_v26 }
 0x172 PF: > { %p13_p11 = scmp.ge.s32.totalorder %s2085_s22, 4   ;;  %s2416_s18 = smov %s2030_s19 }
 0x173   : > { %s2417_s19 = smov %s2095_s25  ;;  %s2418_s20 = smov %s2085_s22 }
 0x174   :  { %15 = sbr.rel (!%p13_p11) target bundleno = 2 (0x2), region = 172 }

// kernel: upblock_forward.7
= control target key start
LH: loop header
LB: loop body
LE: loop exit
PB: predicated region body
PF: predicated region fallthrough
CT: control target
= control target key end

     0   :  { %s1227_s18 = smov 0   ;;  %s1229_s19 = smov 0   ;;  %s1628_s0 = inlined_call_operand.vmem [shape: f32[16,32,128], index: 0, kind: input, shape index: {}]   ;;  %s1629_s1 = inlined_call_operand.vmem [shape: f32[1,1,128], index: 1, kind: input, shape index: {}]   ;;  %s1630_s2 = inlined_call_operand.vmem [shape: f32[1,1,128], index: 2, kind: input, shape index: {}]   ;;  %s1631_s3 = inlined_call_operand.vmem [shape: bf16[128,128], index: 3, kind: input, shape index: {}]   ;;  %s1632_s4 = inlined_call_operand.vmem [shape: f32[1,128], index: 4, kind: input, shape index: {}]   ;;  %s1633_s5 = inlined_call_operand.vmem [shape: f32[16,32,128], index: 5, kind: output, shape index: {}]  }
   0x1   :  { %s1231_s20 = smov 0  }
   0x2 LB: > { %s1025_s21 = sadd.s32 4294967295, %s1195_s20   ;;  %s1244_s22 = sadd.s32 1, %s1195_s20   ;;  %s1195_s20 = sphi %s1231_s20, %s1637_s20   ;;  %s1191_s19 = sphi %s1229_s19, %s1636_s19   ;;  %s1187_s18 = sphi %s1227_s18, %s1635_s18  }
   0x3   : > { %s19_s23 = ssub.s32 %s1195_s20, %s1244_s22  ;;  %s22_s24 = sadd.s32 1, %s1191_s19 }
   0x4   : > { %p20_p0 = scmp.eq.s32.totalorder %s19_s23, 0  ;;  %p29_p1 = scmp.ne.s32.totalorder %s1191_s19, %s1187_s18 }
   0x5   : > { %p30_p2 = scmp.eq.s32.totalorder %s1195_s20, 0  ;;  %p143_p3 = scmp.eq.s32.totalorder %s1025_s21, 1 }
   0x6   : > { %s1255_s25 = scalar_select %p20_p0, %s1191_s19, %s22_s24  }
   0x7   : > { %p31_p4 = por %p30_p2, %p29_p1  ;;  %p1257_p5 = por %p143_p3, %p29_p1 }
   0x8   : > { %p1028_p6 = scmp.ge.s32.totalorder %s1195_s20, 2 }
   0xa   : > { %177 = sbr.rel (%p1028_p6) target bundleno = 37 (0x25), region = 32 }
  0x11   : > { %180 = sbr.rel (!%p31_p4) target bundleno = 37 (0x25), region = 36  ;;  %s182_s27 = sand.u32 (%p31_p4), 1, %s1191_s19  }
  0x12   : > { %s1051_s28 = sshll.u32 (%p31_p4), %s1195_s20, 4  ;;  %s1029_s29 = sshll.u32 (%p31_p4), %s182_s27, 8 }
  0x13   : > { %s1267_s7 = scalar_lea.vmem (%p31_p4), %s1628_s0, %s1051_s28  ;;  %s1272_s8 = scalar_lea.vmem (%p31_p4), [#allocation2], %s1029_s29 }
  0x14   : > { %v277_v0 = vld [vmem:[%s1267_s7] sm:$0xff] (%p31_p4)  ;;  %v279_v1 = vld [vmem:[%s1267_s7 + $0x8] sm:$0xff] (%p31_p4) }
  0x15   : > { %v281_v2 = vld [vmem:[%s1267_s7 + $0x20] sm:$0xff] (%p31_p4)  ;;  %278 = vst [vmem:[%s1272_s8] sm:$0xff] (%p31_p4), %v277_v0  ;;  %280 = vst [vmem:[%s1272_s8 + $0x8] sm:$0xff] (%p31_p4), %v279_v1  ;;  %v283_v3 = vld [vmem:[%s1267_s7 + $0x28] sm:$0xff] (%p31_p4) }
  0x16   : > { %282 = vst [vmem:[%s1272_s8 + $0x10] sm:$0xff] (%p31_p4), %v281_v2  ;;  %v285_v4 = vld [vmem:[%s1267_s7 + $0x40] sm:$0xff] (%p31_p4)  ;;  %v287_v5 = vld [vmem:[%s1267_s7 + $0x48] sm:$0xff] (%p31_p4)  ;;  %284 = vst [vmem:[%s1272_s8 + $0x18] sm:$0xff] (%p31_p4), %v283_v3 }
  0x17   : > { %286 = vst [vmem:[%s1272_s8 + $0x20] sm:$0xff] (%p31_p4), %v285_v4  ;;  %288 = vst [vmem:[%s1272_s8 + $0x28] sm:$0xff] (%p31_p4), %v287_v5  ;;  %v289_v6 = vld [vmem:[%s1267_s7 + $0x60] sm:$0xff] (%p31_p4)  ;;  %v291_v7 = vld [vmem:[%s1267_s7 + $0x68] sm:$0xff] (%p31_p4) }
  0x18   : > { %v293_v8 = vld [vmem:[%s1267_s7 + $0x80] sm:$0xff]  ;;  %290 = vst [vmem:[%s1272_s8 + $0x30] sm:$0xff] %v289_v6  ;;  %292 = vst [vmem:[%s1272_s8 + $0x38] sm:$0xff] %v291_v7  ;;  %v295_v9 = vld [vmem:[%s1267_s7 + $0x88] sm:$0xff] }
  0x19   : > { %294 = vst [vmem:[%s1272_s8 + $0x40] sm:$0xff] %v293_v8  ;;  %v297_v10 = vld [vmem:[%s1267_s7 + $0xa0] sm:$0xff]  ;;  %v299_v11 = vld [vmem:[%s1267_s7 + $0xa8] sm:$0xff]  ;;  %296 = vst [vmem:[%s1272_s8 + $0x48] sm:$0xff] %v295_v9 }
  0x1a   : > { %298 = vst [vmem:[%s1272_s8 + $0x50] sm:$0xff] %v297_v10  ;;  %300 = vst [vmem:[%s1272_s8 + $0x58] sm:$0xff] %v299_v11  ;;  %v301_v12 = vld [vmem:[%s1267_s7 + $0xc0] sm:$0xff]  ;;  %v303_v13 = vld [vmem:[%s1267_s7 + $0xc8] sm:$0xff] }
  0x1b   : > { %v305_v14 = vld [vmem:[%s1267_s7 + $0xe0] sm:$0xff]  ;;  %302 = vst [vmem:[%s1272_s8 + $0x60] sm:$0xff] %v301_v12  ;;  %304 = vst [vmem:[%s1272_s8 + $0x68] sm:$0xff] %v303_v13  ;;  %v307_v15 = vld [vmem:[%s1267_s7 + $0xe8] sm:$0xff] }
  0x1c   : > { %306 = vst [vmem:[%s1272_s8 + $0x70] sm:$0xff] %v305_v14  ;;  %v309_v16 = vld [vmem:[%s1267_s7 + $0x100] sm:$0xff]  ;;  %v311_v17 = vld [vmem:[%s1267_s7 + $0x108] sm:$0xff]  ;;  %308 = vst [vmem:[%s1272_s8 + $0x78] sm:$0xff] %v307_v15 }
  0x1d   : > { %310 = vst [vmem:[%s1272_s8 + $0x80] sm:$0xff] %v309_v16  ;;  %312 = vst [vmem:[%s1272_s8 + $0x88] sm:$0xff] %v311_v17  ;;  %v313_v18 = vld [vmem:[%s1267_s7 + $0x120] sm:$0xff]  ;;  %v315_v19 = vld [vmem:[%s1267_s7 + $0x128] sm:$0xff] }
  0x1e   : > { %v317_v20 = vld [vmem:[%s1267_s7 + $0x140] sm:$0xff]  ;;  %314 = vst [vmem:[%s1272_s8 + $0x90] sm:$0xff] %v313_v18  ;;  %316 = vst [vmem:[%s1272_s8 + $0x98] sm:$0xff] %v315_v19  ;;  %v319_v21 = vld [vmem:[%s1267_s7 + $0x148] sm:$0xff] }
  0x1f   : > { %318 = vst [vmem:[%s1272_s8 + $0xa0] sm:$0xff] %v317_v20  ;;  %v321_v22 = vld [vmem:[%s1267_s7 + $0x160] sm:$0xff]  ;;  %v323_v23 = vld [vmem:[%s1267_s7 + $0x168] sm:$0xff]  ;;  %320 = vst [vmem:[%s1272_s8 + $0xa8] sm:$0xff] %v319_v21 }
  0x20   : > { %322 = vst [vmem:[%s1272_s8 + $0xb0] sm:$0xff] %v321_v22  ;;  %324 = vst [vmem:[%s1272_s8 + $0xb8] sm:$0xff] %v323_v23  ;;  %v325_v24 = vld [vmem:[%s1267_s7 + $0x180] sm:$0xff]  ;;  %v327_v25 = vld [vmem:[%s1267_s7 + $0x188] sm:$0xff] }
  0x21   : > { %v329_v26 = vld [vmem:[%s1267_s7 + $0x1a0] sm:$0xff]  ;;  %326 = vst [vmem:[%s1272_s8 + $0xc0] sm:$0xff] %v325_v24  ;;  %328 = vst [vmem:[%s1272_s8 + $0xc8] sm:$0xff] %v327_v25  ;;  %v331_v27 = vld [vmem:[%s1267_s7 + $0x1a8] sm:$0xff] }
  0x22   : > { %330 = vst [vmem:[%s1272_s8 + $0xd0] sm:$0xff] %v329_v26  ;;  %v333_v28 = vld [vmem:[%s1267_s7 + $0x1c0] sm:$0xff]  ;;  %v335_v29 = vld [vmem:[%s1267_s7 + $0x1c8] sm:$0xff]  ;;  %332 = vst [vmem:[%s1272_s8 + $0xd8] sm:$0xff] %v331_v27 }
  0x23   : > { %334 = vst [vmem:[%s1272_s8 + $0xe0] sm:$0xff] %v333_v28  ;;  %336 = vst [vmem:[%s1272_s8 + $0xe8] sm:$0xff] %v335_v29  ;;  %v337_v30 = vld [vmem:[%s1267_s7 + $0x1e0] sm:$0xff]  ;;  %v339_v31 = vld [vmem:[%s1267_s7 + $0x1e8] sm:$0xff] }
  0x24   : > { %338 = vst [vmem:[%s1272_s8 + $0xf0] sm:$0xff] %v337_v30  ;;  %340 = vst [vmem:[%s1272_s8 + $0xf8] sm:$0xff] %v339_v31 }
  0x25 PF: > { %p1032_p7 = scmp.ge.s32.totalorder %s1195_s20, 1  ;;  %p345_p8 = scmp.lt.s32.totalorder %s1195_s20, 3 }
  0x27   : > { %p346_p9 = pnand %p1032_p7, %p345_p8 }
  0x28   : > { %v1165_v32 = vld [vmem:[%s1631_s3] sm:$0xff] (!%p346_p9)   ;;  %s352_s11 = sand.u32 (!%p346_p9), 1, %s1187_s18   ;;  %v1166_v33 = vld [vmem:[%s1631_s3 + $0x8] sm:$0xff] (!%p346_p9)   ;;  %v1167_v34 = vld [vmem:[%s1631_s3 + $0x10] sm:$0xff] (!%p346_p9)  }
  0x29   : > { %349 = sbr.rel (%p346_p9) target bundleno = 324 (0x144), region = 74  ;;  %1077 = vmatprep.subr.bf16.mxu0 (!%p346_p9), %v1165_v32  ;;  %1125 = vmatprep.subr.bf16.mxu1 (!%p346_p9), %v1165_v32  ;;  %s1344_s14 = sshll.u32 (!%p346_p9), %s352_s11, 8  ;;  %v1168_v35 = vld [vmem:[%s1631_s3 + $0x18] sm:$0xff] (!%p346_p9)   ;;  %v1360_v38 = vld [vmem:[%s1629_s1] ss:$0 sm:$0xff] (!%p346_p9)  ;;  %v1170_v62 = vld [vmem:[%s1631_s3 + $0x28] sm:$0xff] (!%p346_p9)  }
  0x2a   : > { %1078 = vmatpush3.bf16.msra.mxu0 (!%p346_p9), %v1165_v32  ;;  %1133 = vmatpush3.bf16.msra.mxu1 (!%p346_p9), %v1165_v32  ;;  %s1353_s23 = scalar_lea.vmem (!%p346_p9), [#allocation2], %s1344_s14  ;;  %v1367_v41 = vld [vmem:[%s1630_s2] ss:$0 sm:$0xff] (!%p346_p9)  ;;  %v1171_v10 = vld [vmem:[%s1631_s3 + $0x30] sm:$0xff] (!%p346_p9)   ;;  %v1172_v28 = vld [vmem:[%s1631_s3 + $0x38] sm:$0xff] (!%p346_p9)   ;;  %s1483_s16 = scalar_lea.vmem (!%p346_p9), [#allocation3], %s1344_s14 }
  0x2b   : > { %1079 = vmatprep.subr.bf16.mxu0 (!%p346_p9), %v1166_v33  ;;  %1126 = vmatprep.subr.bf16.mxu1 (!%p346_p9), %v1166_v33  ;;  %v381_v36 = vld [vmem:[%s1353_s23] sm:$0xff] (!%p346_p9)  ;;  %v382_v37 = vld [vmem:[%s1353_s23 + $0x8] sm:$0xff] (!%p346_p9)  ;;  %v383_v53 = vld [vmem:[%s1353_s23 + $0x10] sm:$0xff] (!%p346_p9) }
  0x2c   : > { %v420_v39 = vmul.f32 (!%p346_p9), %v1360_v38, %v381_v36  ;;  %v421_v40 = vmul.f32 (!%p346_p9), %v1360_v38, %v382_v37  ;;  %v397_v42 = vld [vmem:[%s1353_s23 + $0x80] sm:$0xff] (!%p346_p9)  ;;  %v398_v43 = vld [vmem:[%s1353_s23 + $0x88] sm:$0xff] (!%p346_p9)  ;;  %v384_v56 = vld [vmem:[%s1353_s23 + $0x18] sm:$0xff] (!%p346_p9)  ;;  %v422_v0 = vmul.f32 (!%p346_p9), %v1360_v38, %v383_v53 }
  0x2d   : > { %v436_v44 = vmul.f32 (!%p346_p9), %v1360_v38, %v397_v42  ;;  %v437_v45 = vmul.f32 (!%p346_p9), %v1360_v38, %v398_v43  ;;  %v1169_v48 = vld [vmem:[%s1631_s3 + $0x20] sm:$0xff] (!%p346_p9)   ;;  %v399_v57 = vld [vmem:[%s1353_s23 + $0x90] sm:$0xff] (!%p346_p9)  ;;  %v400_v58 = vld [vmem:[%s1353_s23 + $0x98] sm:$0xff] (!%p346_p9)  ;;  %v423_v3 = vmul.f32 (!%p346_p9), %v1360_v38, %v384_v56 }
  0x2e   : > { %1080 = vmatpush3.bf16.msra.mxu0 (!%p346_p9), %v1166_v33  ;;  %1134 = vmatpush3.bf16.msra.mxu1 (!%p346_p9), %v1166_v33  ;;  %v459_v46 = vadd.f32 (!%p346_p9), %v1367_v41, %v420_v39  ;;  %v460_v47 = vadd.f32 (!%p346_p9), %v1367_v41, %v421_v40  ;;  %v385_v60 = vld [vmem:[%s1353_s23 + $0x20] sm:$0xff] (!%p346_p9)  ;;  %v386_v61 = vld [vmem:[%s1353_s23 + $0x28] sm:$0xff] (!%p346_p9)  ;;  %v438_v4 = vmul.f32 (!%p346_p9), %v1360_v38, %v399_v57  ;;  %v387_v12 = vld [vmem:[%s1353_s23 + $0x30] sm:$0xff] (!%p346_p9) }
  0x2f   : > { %1081 = vmatprep.subr.bf16.mxu0 (!%p346_p9), %v1167_v34  ;;  %1127 = vmatprep.subr.bf16.mxu1 (!%p346_p9), %v1167_v34  ;;  %v475_v49 = vadd.f32 (!%p346_p9), %v1367_v41, %v436_v44  ;;  %v476_v50 = vadd.f32 (!%p346_p9), %v1367_v41, %v437_v45  ;;  %v401_v1 = vld [vmem:[%s1353_s23 + $0xa0] sm:$0xff] (!%p346_p9)  ;;  %v402_v2 = vld [vmem:[%s1353_s23 + $0xa8] sm:$0xff] (!%p346_p9)  ;;  %v439_v5 = vmul.f32 (!%p346_p9), %v1360_v38, %v400_v58  ;;  %v388_v16 = vld [vmem:[%s1353_s23 + $0x38] sm:$0xff] (!%p346_p9) }
  0x30   : > { %v491_v51 = vmax.f32 %v459_v46, 0.0  ;;  %v492_v52 = vmax.f32 %v460_v47, 0.0  ;;  %v424_v6 = vmul.f32 %v1360_v38, %v385_v60  ;;  %v425_v7 = vmul.f32 %v1360_v38, %v386_v61  ;;  %v403_v17 = vld [vmem:[%s1353_s23 + $0xb0] sm:$0xff]  ;;  %v404_v18 = vld [vmem:[%s1353_s23 + $0xb8] sm:$0xff]  ;;  %v389_v21 = vld [vmem:[%s1353_s23 + $0x40] sm:$0xff]  ;;  %s1052_s14 = sshll.u32 (%p1257_p5), %s1025_s21, 4 }
  0x31   : > { %v507_v54 = vmax.f32 %v475_v49, 0.0  ;;  %v508_v55 = vmax.f32 %v476_v50, 0.0  ;;  %v440_v8 = vmul.f32 %v1360_v38, %v401_v1  ;;  %v441_v9 = vmul.f32 %v1360_v38, %v402_v2  ;;  %v390_v25 = vld [vmem:[%s1353_s23 + $0x48] sm:$0xff]  ;;  %v405_v26 = vld [vmem:[%s1353_s23 + $0xc0] sm:$0xff]  ;;  %v392_v57 = vld [vmem:[%s1353_s23 + $0x58] sm:$0xff]  ;;  %s1555_s26 = scalar_lea.vmem (%p1257_p5), %s1633_s5, %s1052_s14 }
  0x32   : > { %1082 = vmatpush3.bf16.msra.mxu0 %v1167_v34  ;;  %1135 = vmatpush3.bf16.msra.mxu1 %v1167_v34  ;;  %v523_v59 = vpack.c.bf16 %v492_v52, %v491_v51  ;;  %v461_v11 = vadd.f32 %v1367_v41, %v422_v0  ;;  %v462_v13 = vadd.f32 %v1367_v41, %v423_v3  ;;  %v406_v27 = vld [vmem:[%s1353_s23 + $0xc8] sm:$0xff]  ;;  %v391_v52 = vld [vmem:[%s1353_s23 + $0x50] sm:$0xff] }
  0x33   : > { %1083 = vmatprep.subr.bf16.mxu0 %v1168_v35  ;;  %1128 = vmatprep.subr.bf16.mxu1 %v1168_v35  ;;  %v531_v63 = vpack.c.bf16 %v508_v55, %v507_v54  ;;  %v477_v14 = vadd.f32 %v1367_v41, %v438_v4  ;;  %v478_v15 = vadd.f32 %v1367_v41, %v439_v5  ;;  %v407_v58 = vld [vmem:[%s1353_s23 + $0xd0] sm:$0xff]  ;;  %v394_v4 = vld [vmem:[%s1353_s23 + $0x68] sm:$0xff]  ;;  %v409_v5 = vld [vmem:[%s1353_s23 + $0xe0] sm:$0xff] }
  0x34   : > { %1093 = vmatprep.mubr.bf16.mxu0 %v523_v59  ;;  %v463_v19 = vadd.f32 %v1367_v41, %v424_v6  ;;  %v464_v20 = vadd.f32 %v1367_v41, %v425_v7  ;;  %v479_v22 = vadd.f32 %v1367_v41, %v440_v8  ;;  %v480_v23 = vadd.f32 %v1367_v41, %v441_v9  ;;  %v408_v59 = vld [vmem:[%s1353_s23 + $0xd8] sm:$0xff]  ;;  %v410_v6 = vld [vmem:[%s1353_s23 + $0xe8] sm:$0xff] }
  0x35   : > { %1109 = vmatprep.mubr.bf16.mxu1 %v531_v63  ;;  %v426_v24 = vmul.f32 %v1360_v38, %v387_v12  ;;  %v493_v29 = vmax.f32 %v461_v11, 0.0  ;;  %v427_v30 = vmul.f32 %v1360_v38, %v388_v16  ;;  %v442_v31 = vmul.f32 %v1360_v38, %v403_v17  ;;  %v393_v63 = vld [vmem:[%s1353_s23 + $0x60] sm:$0xff] }
  0x36   : > { %1084 = vmatpush3.bf16.msra.mxu0 %v1168_v35  ;;  %1136 = vmatpush3.bf16.msra.mxu1 %v1168_v35  ;;  %v443_v32 = vmul.f32 %v1360_v38, %v404_v18  ;;  %v494_v33 = vmax.f32 %v462_v13, 0.0  ;;  %v509_v34 = vmax.f32 %v477_v14, 0.0  ;;  %v510_v35 = vmax.f32 %v478_v15, 0.0 }
  0x37   : > { %1085 = vmatprep.subr.bf16.mxu0 %v1169_v48  ;;  %1129 = vmatprep.subr.bf16.mxu1 %v1169_v48  ;;  %v428_v36 = vmul.f32 %v1360_v38, %v389_v21  ;;  %v495_v37 = vmax.f32 %v463_v19, 0.0  ;;  %v429_v39 = vmul.f32 %v1360_v38, %v390_v25  ;;  %v444_v40 = vmul.f32 %v1360_v38, %v405_v26  ;;  %v395_v26 = vld [vmem:[%s1353_s23 + $0x70] sm:$0xff] }
  0x38   : > { %v445_v42 = vmul.f32 %v1360_v38, %v406_v27  ;;  %v496_v43 = vmax.f32 %v464_v20, 0.0  ;;  %v511_v44 = vmax.f32 %v479_v22, 0.0  ;;  %v512_v45 = vmax.f32 %v480_v23, 0.0 }
  0x39   : > { %v465_v46 = vadd.f32 %v1367_v41, %v426_v24  ;;  %v466_v47 = vadd.f32 %v1367_v41, %v427_v30  ;;  %v482_v49 = vadd.f32 %v1367_v41, %v443_v32  ;;  %v524_v50 = vpack.c.bf16 %v494_v33, %v493_v29  ;;  %v411_v32 = vld [vmem:[%s1353_s23 + $0xf0] sm:$0xff]  ;;  %v412_v33 = vld [vmem:[%s1353_s23 + $0xf8] sm:$0xff] }
  0x3a   : > { %1086 = vmatpush3.bf16.msra.mxu0 %v1169_v48  ;;  %1137 = vmatpush3.bf16.msra.mxu1 %v1169_v48  ;;  %v481_v48 = vadd.f32 %v1367_v41, %v442_v31  ;;  %v467_v51 = vadd.f32 %v1367_v41, %v428_v36  ;;  %v532_v53 = vpack.c.bf16 %v510_v35, %v509_v34  ;;  %v396_v31 = vld [vmem:[%s1353_s23 + $0x78] sm:$0xff] }
  0x3b   : > { %1087 = vmatprep.subr.bf16.mxu0 %v1170_v62  ;;  %1130 = vmatprep.subr.bf16.mxu1 %v1170_v62  ;;  %v468_v54 = vadd.f32 %v1367_v41, %v429_v39  ;;  %v483_v55 = vadd.f32 %v1367_v41, %v444_v40  ;;  %v484_v56 = vadd.f32 %v1367_v41, %v445_v42  ;;  %v498_v0 = vmax.f32 %v466_v47, 0.0 }
  0x3c   : > { %v525_v60 = vpack.c.bf16 %v496_v43, %v495_v37  ;;  %v533_v61 = vpack.c.bf16 %v512_v45, %v511_v44  ;;  %v513_v1 = vmax.f32 %v481_v48, 0.0  ;;  %v514_v2 = vmax.f32 %v482_v49, 0.0 }
  0x3d   : > { %v430_v3 = vmul.f32 %v1360_v38, %v391_v52  ;;  %v499_v7 = vmax.f32 %v467_v51, 0.0  ;;  %v431_v8 = vmul.f32 %v1360_v38, %v392_v57  ;;  %v446_v9 = vmul.f32 %v1360_v38, %v407_v58 }
  0x3e   : > { %1088 = vmatpush3.bf16.msra.mxu0 %v1170_v62  ;;  %1138 = vmatpush3.bf16.msra.mxu1 %v1170_v62  ;;  %v497_v62 = vmax.f32 %v465_v46, 0.0  ;;  %v500_v11 = vmax.f32 %v468_v54, 0.0  ;;  %v515_v12 = vmax.f32 %v483_v55, 0.0  ;;  %v516_v13 = vmax.f32 %v484_v56, 0.0 }
  0x3f   : > { %1089 = vmatprep.subr.bf16.mxu0 %v1171_v10  ;;  %1131 = vmatprep.subr.bf16.mxu1 %v1171_v10  ;;  %v432_v14 = vmul.f32 %v1360_v38, %v393_v63  ;;  %v433_v15 = vmul.f32 %v1360_v38, %v394_v4  ;;  %v448_v16 = vmul.f32 %v1360_v38, %v409_v5 }
  0x40   : > { %v449_v17 = vmul.f32 %v1360_v38, %v410_v6  ;;  %v469_v18 = vadd.f32 %v1367_v41, %v430_v3  ;;  %v470_v19 = vadd.f32 %v1367_v41, %v431_v8  ;;  %v485_v20 = vadd.f32 %v1367_v41, %v446_v9 }
  0x41   : > { %v526_v22 = vpack.c.bf16 %v498_v0, %v497_v62  ;;  %v534_v23 = vpack.c.bf16 %v514_v2, %v513_v1  ;;  %v527_v24 = vpack.c.bf16 %v500_v11, %v499_v7  ;;  %v535_v25 = vpack.c.bf16 %v516_v13, %v515_v12 }
  0x42   : > { %1090 = vmatpush3.bf16.msra.mxu0 %v1171_v10  ;;  %1139 = vmatpush3.bf16.msra.mxu1 %v1171_v10  ;;  %v447_v10 = vmul.f32 %v1360_v38, %v408_v59  ;;  %v471_v27 = vadd.f32 %v1367_v41, %v432_v14  ;;  %v487_v29 = vadd.f32 %v1367_v41, %v448_v16  ;;  %v501_v34 = vmax.f32 %v469_v18, 0.0 }
  0x43   : > { %1091 = vmatprep.subr.bf16.mxu0 %v1172_v28  ;;  %1132 = vmatprep.subr.bf16.mxu1 %v1172_v28  ;;  %v488_v30 = vadd.f32 %v1367_v41, %v449_v17  ;;  %v502_v35 = vmax.f32 %v470_v19, 0.0  ;;  %v517_v36 = vmax.f32 %v485_v20, 0.0  ;;  %v434_v39 = vmul.f32 %v1360_v38, %v395_v26 }
  0x44   : > { %v486_v21 = vadd.f32 %v1367_v41, %v447_v10  ;;  %v435_v40 = vmul.f32 %v1360_v38, %v396_v31  ;;  %v450_v42 = vmul.f32 %v1360_v38, %v411_v32  ;;  %v451_v43 = vmul.f32 %v1360_v38, %v412_v33 }
  0x45   : > { %v503_v44 = vmax.f32 %v471_v27, 0.0  ;;  %v519_v46 = vmax.f32 %v487_v29, 0.0  ;;  %v520_v47 = vmax.f32 %v488_v30, 0.0  ;;  %v528_v48 = vpack.c.bf16 %v502_v35, %v501_v34 }
  0x46   : > { %1092 = vmatpush3.bf16.msra.mxu0 %v1172_v28  ;;  %1140 = vmatpush3.bf16.msra.mxu1 %v1172_v28  ;;  %v472_v28 = vadd.f32 %v1367_v41, %v433_v15  ;;  %v518_v37 = vmax.f32 %v486_v21, 0.0  ;;  %v474_v51 = vadd.f32 %v1367_v41, %v435_v40  ;;  %v489_v52 = vadd.f32 %v1367_v41, %v450_v42 }
  0x47   : > { %v537_v55 = vpack.c.bf16 %v520_v47, %v519_v46 }
  0x48   : > { %v504_v45 = vmax.f32 %v472_v28, 0.0  ;;  %v536_v49 = vpack.c.bf16 %v518_v37, %v517_v36  ;;  %v506_v56 = vmax.f32 %v474_v51, 0.0  ;;  %v521_v57 = vmax.f32 %v489_v52, 0.0 }
  0x49   : > { %1094 = vmatmul.mubr.bf16.vlgmr.msra.gmra.mrb[0].mxu0 %v524_v50  ;;  %1110 = vmatmul.mubr.bf16.vlgmr.msra.gmra.mrb[0].mxu1 %v532_v53  ;;  %v473_v50 = vadd.f32 %v1367_v41, %v434_v39  ;;  %v490_v53 = vadd.f32 %v1367_v41, %v451_v43 }
  0x4a   : > { %1097 = vmatprep.mubr.bf16.mxu0 %v525_v60  ;;  %1113 = vmatprep.mubr.bf16.mxu1 %v533_v61  ;;  %v529_v54 = vpack.c.bf16 %v504_v45, %v503_v44  ;;  %v1476_v61 = vld [vmem:[%s1632_s4] ss:$0 sm:$0xff] }
  0x4b   : > { %v505_v38 = vmax.f32 %v473_v50, 0.0  ;;  %v522_v58 = vmax.f32 %v490_v53, 0.0 }
  0x4d   : > { %v530_v59 = vpack.c.bf16 %v506_v56, %v505_v38  ;;  %v538_v60 = vpack.c.bf16 %v522_v58, %v521_v57 }
  0x51   : > { %1098 = vmatmul.mubr.bf16.gmra.mrb[4].mxu0 %v526_v22  ;;  %1114 = vmatmul.mubr.bf16.gmra.mrb[4].mxu1 %v534_v23 }
  0x52   : > { %1101 = vmatprep.mubr.bf16.mxu0 %v527_v24  ;;  %1117 = vmatprep.mubr.bf16.mxu1 %v535_v25 }
  0x59   : > { %1102 = vmatmul.mubr.bf16.gmra.mrb[8].mxu0 %v528_v48  ;;  %1118 = vmatmul.mubr.bf16.gmra.mrb[8].mxu1 %v536_v49 }
  0x5a   : > { %1105 = vmatprep.mubr.bf16.mxu0 %v529_v54  ;;  %1121 = vmatprep.mubr.bf16.mxu1 %v537_v55 }
  0x61   : > { %1106 = vmatmul.mubr.bf16.gmra.mrb[12].mxu0 %v530_v59  ;;  %1122 = vmatmul.mubr.bf16.gmra.mrb[12].mxu1 %v538_v60 }
 0x11c   : > { %v1095_v41 = vpop.f32.mrb[0].mxu0  ;;  %v1111_v62 = vpop.f32.mrb[0].mxu1 }
 0x11d   : > { %v653_v63 = vadd.f32 %v1095_v41, %v1476_v61  ;;  %v717_v0 = vadd.f32 %v1111_v62, %v1476_v61  ;;  %v644_v1 = vpop.f32.mrb[1].mxu0  ;;  %v708_v2 = vpop.f32.mrb[1].mxu1 }
 0x11e   : > { %v645_v3 = vadd.f32 %v1476_v61, %v644_v1  ;;  %v709_v4 = vadd.f32 %v1476_v61, %v708_v2  ;;  %v1096_v5 = vpop.f32.mrb[2].mxu0  ;;  %v1112_v6 = vpop.f32.mrb[2].mxu1 }
 0x11f   : > { %773 = vst [vmem:[%s1483_s16 + $0x10] sm:$0xff] %v653_v63  ;;  %789 = vst [vmem:[%s1483_s16 + $0x90] sm:$0xff] %v717_v0  ;;  %v656_v7 = vadd.f32 %v1096_v5, %v1476_v61  ;;  %v720_v8 = vadd.f32 %v1112_v6, %v1476_v61  ;;  %v647_v9 = vpop.f32.mrb[3].mxu0  ;;  %v711_v10 = vpop.f32.mrb[3].mxu1 }
 0x120   : > { %771 = vst [vmem:[%s1483_s16] sm:$0xff] %v645_v3  ;;  %787 = vst [vmem:[%s1483_s16 + $0x80] sm:$0xff] %v709_v4  ;;  %v648_v11 = vadd.f32 %v1476_v61, %v647_v9  ;;  %v712_v12 = vadd.f32 %v1476_v61, %v711_v10 }
 0x121   : > { %774 = vst [vmem:[%s1483_s16 + $0x18] sm:$0xff] %v656_v7  ;;  %790 = vst [vmem:[%s1483_s16 + $0x98] sm:$0xff] %v720_v8 }
 0x122   : > { %772 = vst [vmem:[%s1483_s16 + $0x8] sm:$0xff] %v648_v11  ;;  %788 = vst [vmem:[%s1483_s16 + $0x88] sm:$0xff] %v712_v12 }
 0x124   : > { %v1099_v13 = vpop.f32.mrb[4].mxu0  ;;  %v1115_v14 = vpop.f32.mrb[4].mxu1 }
 0x125   : > { %v669_v15 = vadd.f32 %v1099_v13, %v1476_v61  ;;  %v733_v16 = vadd.f32 %v1115_v14, %v1476_v61  ;;  %v660_v17 = vpop.f32.mrb[5].mxu0  ;;  %v724_v18 = vpop.f32.mrb[5].mxu1 }
 0x126   : > { %v661_v19 = vadd.f32 %v1476_v61, %v660_v17  ;;  %v725_v20 = vadd.f32 %v1476_v61, %v724_v18  ;;  %v1100_v21 = vpop.f32.mrb[6].mxu0  ;;  %v1116_v22 = vpop.f32.mrb[6].mxu1  ;;  %v906_v63 = vld [vmem:[%s1483_s16 + $0x10] sm:$0xff] (%p1257_p5) }
 0x127   : > { %777 = vst [vmem:[%s1483_s16 + $0x30] sm:$0xff] %v669_v15  ;;  %793 = vst [vmem:[%s1483_s16 + $0xb0] sm:$0xff] %v733_v16  ;;  %v672_v23 = vadd.f32 %v1100_v21, %v1476_v61  ;;  %v736_v24 = vadd.f32 %v1116_v22, %v1476_v61  ;;  %v663_v25 = vpop.f32.mrb[7].mxu0  ;;  %v727_v26 = vpop.f32.mrb[7].mxu1  ;;  %v934_v13 = vld [vmem:[%s1483_s16 + $0x80] sm:$0xff] (%p1257_p5)  ;;  %v938_v15 = vld [vmem:[%s1483_s16 + $0x90] sm:$0xff] (%p1257_p5) }
 0x128   : > { %775 = vst [vmem:[%s1483_s16 + $0x20] sm:$0xff] %v661_v19  ;;  %791 = vst [vmem:[%s1483_s16 + $0xa0] sm:$0xff] %v725_v20  ;;  %v664_v27 = vadd.f32 %v1476_v61, %v663_v25  ;;  %v728_v28 = vadd.f32 %v1476_v61, %v727_v26  ;;  %v908_v0 = vld [vmem:[%s1483_s16 + $0x18] sm:$0xff] (%p1257_p5) }
 0x129   : > { %778 = vst [vmem:[%s1483_s16 + $0x38] sm:$0xff] %v672_v23  ;;  %794 = vst [vmem:[%s1483_s16 + $0xb8] sm:$0xff] %v736_v24  ;;  %v904_v62 = vld [vmem:[%s1483_s16 + $0x8] sm:$0xff] (%p1257_p5)  ;;  %v940_v16 = vld [vmem:[%s1483_s16 + $0x98] sm:$0xff] (%p1257_p5) }
 0x12a   : > { %776 = vst [vmem:[%s1483_s16 + $0x28] sm:$0xff] %v664_v27  ;;  %792 = vst [vmem:[%s1483_s16 + $0xa8] sm:$0xff] %v728_v28  ;;  %v936_v14 = vld [vmem:[%s1483_s16 + $0x88] sm:$0xff] (%p1257_p5) }
 0x12b   : > { %905 = vst [vmem:[%s1555_s26 + $0x8] sm:$0xff] (%p1257_p5), %v904_v62  ;;  %907 = vst [vmem:[%s1555_s26 + $0x20] sm:$0xff] (%p1257_p5), %v906_v63 }
 0x12c   : > { %v1103_v29 = vpop.f32.mrb[8].mxu0  ;;  %v1119_v30 = vpop.f32.mrb[8].mxu1  ;;  %909 = vst [vmem:[%s1555_s26 + $0x28] sm:$0xff] (%p1257_p5), %v908_v0  ;;  %935 = vst [vmem:[%s1555_s26 + $0x100] sm:$0xff] (%p1257_p5), %v934_v13 }
 0x12d   : > { %v685_v31 = vadd.f32 %v1103_v29, %v1476_v61  ;;  %v749_v32 = vadd.f32 %v1119_v30, %v1476_v61  ;;  %v676_v33 = vpop.f32.mrb[9].mxu0  ;;  %v740_v34 = vpop.f32.mrb[9].mxu1  ;;  %937 = vst [vmem:[%s1555_s26 + $0x108] sm:$0xff] (%p1257_p5), %v936_v14  ;;  %939 = vst [vmem:[%s1555_s26 + $0x120] sm:$0xff] (%p1257_p5), %v938_v15 }
 0x12e   : > { %v677_v35 = vadd.f32 %v1476_v61, %v676_v33  ;;  %v741_v36 = vadd.f32 %v1476_v61, %v740_v34  ;;  %v1104_v37 = vpop.f32.mrb[10].mxu0  ;;  %v1120_v39 = vpop.f32.mrb[10].mxu1  ;;  %v914_v3 = vld [vmem:[%s1483_s16 + $0x30] sm:$0xff] (%p1257_p5)  ;;  %941 = vst [vmem:[%s1555_s26 + $0x128] sm:$0xff] (%p1257_p5), %v940_v16 }
 0x12f   : > { %781 = vst [vmem:[%s1483_s16 + $0x50] sm:$0xff] %v685_v31  ;;  %797 = vst [vmem:[%s1483_s16 + $0xd0] sm:$0xff] %v749_v32  ;;  %v688_v40 = vadd.f32 %v1104_v37, %v1476_v61  ;;  %v752_v42 = vadd.f32 %v1120_v39, %v1476_v61  ;;  %v679_v43 = vpop.f32.mrb[11].mxu0  ;;  %v743_v44 = vpop.f32.mrb[11].mxu1  ;;  %v910_v1 = vld [vmem:[%s1483_s16 + $0x20] sm:$0xff] (%p1257_p5)  ;;  %v946_v19 = vld [vmem:[%s1483_s16 + $0xb0] sm:$0xff] (%p1257_p5) }
 0x130   : > { %779 = vst [vmem:[%s1483_s16 + $0x40] sm:$0xff] %v677_v35  ;;  %795 = vst [vmem:[%s1483_s16 + $0xc0] sm:$0xff] %v741_v36  ;;  %v680_v45 = vadd.f32 %v1476_v61, %v679_v43  ;;  %v744_v46 = vadd.f32 %v1476_v61, %v743_v44  ;;  %v916_v4 = vld [vmem:[%s1483_s16 + $0x38] sm:$0xff] (%p1257_p5)  ;;  %v942_v17 = vld [vmem:[%s1483_s16 + $0xa0] sm:$0xff] (%p1257_p5) }
 0x131   : > { %782 = vst [vmem:[%s1483_s16 + $0x58] sm:$0xff] %v688_v40  ;;  %798 = vst [vmem:[%s1483_s16 + $0xd8] sm:$0xff] %v752_v42  ;;  %v912_v2 = vld [vmem:[%s1483_s16 + $0x28] sm:$0xff] (%p1257_p5)  ;;  %v948_v20 = vld [vmem:[%s1483_s16 + $0xb8] sm:$0xff] (%p1257_p5) }
 0x132   : > { %780 = vst [vmem:[%s1483_s16 + $0x48] sm:$0xff] %v680_v45  ;;  %796 = vst [vmem:[%s1483_s16 + $0xc8] sm:$0xff] %v744_v46  ;;  %v944_v18 = vld [vmem:[%s1483_s16 + $0xa8] sm:$0xff] (%p1257_p5) }
 0x133   : > { %911 = vst [vmem:[%s1555_s26 + $0x40] sm:$0xff] (%p1257_p5), %v910_v1  ;;  %913 = vst [vmem:[%s1555_s26 + $0x48] sm:$0xff] (%p1257_p5), %v912_v2 }
 0x134   : > { %v1107_v47 = vpop.f32.mrb[12].mxu0  ;;  %v1123_v48 = vpop.f32.mrb[12].mxu1  ;;  %809 = sbr.rel (!%p1257_p5) target bundleno = 324 (0x144), region = 82  ;;  %915 = vst [vmem:[%s1555_s26 + $0x60] sm:$0xff] (%p1257_p5), %v914_v3  ;;  %917 = vst [vmem:[%s1555_s26 + $0x68] sm:$0xff] (%p1257_p5), %v916_v4 }
 0x135   : > { %v701_v49 = vadd.f32 %v1107_v47, %v1476_v61  ;;  %v765_v50 = vadd.f32 %v1123_v48, %v1476_v61  ;;  %v692_v51 = vpop.f32.mrb[13].mxu0  ;;  %v756_v52 = vpop.f32.mrb[13].mxu1  ;;  %943 = vst [vmem:[%s1555_s26 + $0x140] sm:$0xff] (%p1257_p5), %v942_v17  ;;  %945 = vst [vmem:[%s1555_s26 + $0x148] sm:$0xff] (%p1257_p5), %v944_v18 }
 0x136   : > { %v693_v53 = vadd.f32 %v1476_v61, %v692_v51  ;;  %v757_v54 = vadd.f32 %v1476_v61, %v756_v52  ;;  %v1108_v55 = vpop.f32.mrb[14].mxu0  ;;  %v1124_v38 = vpop.f32.mrb[14].mxu1  ;;  %v922_v7 = vld [vmem:[%s1483_s16 + $0x50] sm:$0xff] (%p1257_p5)  ;;  %947 = vst [vmem:[%s1555_s26 + $0x160] sm:$0xff] (%p1257_p5), %v946_v19  ;;  %949 = vst [vmem:[%s1555_s26 + $0x168] sm:$0xff] (%p1257_p5), %v948_v20 }
 0x137   : > { %785 = vst [vmem:[%s1483_s16 + $0x70] sm:$0xff] %v701_v49  ;;  %801 = vst [vmem:[%s1483_s16 + $0xf0] sm:$0xff] %v765_v50  ;;  %v704_v56 = vadd.f32 %v1108_v55, %v1476_v61  ;;  %v768_v57 = vadd.f32 %v1124_v38, %v1476_v61  ;;  %v695_v58 = vpop.f32.mrb[15].mxu0  ;;  %v759_v59 = vpop.f32.mrb[15].mxu1  ;;  %v918_v5 = vld [vmem:[%s1483_s16 + $0x40] sm:$0xff] (%p1257_p5)  ;;  %v954_v23 = vld [vmem:[%s1483_s16 + $0xd0] sm:$0xff] (%p1257_p5) }
 0x138   : > { %783 = vst [vmem:[%s1483_s16 + $0x60] sm:$0xff] %v693_v53  ;;  %799 = vst [vmem:[%s1483_s16 + $0xe0] sm:$0xff] %v757_v54  ;;  %v696_v60 = vadd.f32 %v1476_v61, %v695_v58  ;;  %v760_v41 = vadd.f32 %v1476_v61, %v759_v59  ;;  %v902_v61 = vld [vmem:[%s1483_s16] sm:$0xff] (%p1257_p5)  ;;  %v924_v8 = vld [vmem:[%s1483_s16 + $0x58] sm:$0xff] (%p1257_p5) }
 0x139   : > { %786 = vst [vmem:[%s1483_s16 + $0x78] sm:$0xff] %v704_v56  ;;  %802 = vst [vmem:[%s1483_s16 + $0xf8] sm:$0xff] %v768_v57  ;;  %v920_v6 = vld [vmem:[%s1483_s16 + $0x48] sm:$0xff] (%p1257_p5)  ;;  %v950_v21 = vld [vmem:[%s1483_s16 + $0xc0] sm:$0xff] (%p1257_p5) }
 0x13a   : > { %784 = vst [vmem:[%s1483_s16 + $0x68] sm:$0xff] %v696_v60  ;;  %800 = vst [vmem:[%s1483_s16 + $0xe8] sm:$0xff] %v760_v41  ;;  %v952_v22 = vld [vmem:[%s1483_s16 + $0xc8] sm:$0xff] (%p1257_p5)  ;;  %v956_v24 = vld [vmem:[%s1483_s16 + $0xd8] sm:$0xff] (%p1257_p5) }
 0x13b   : > { %903 = vst [vmem:[%s1555_s26] sm:$0xff] %v902_v61  ;;  %919 = vst [vmem:[%s1555_s26 + $0x80] sm:$0xff] %v918_v5 }
 0x13c   : > { %921 = vst [vmem:[%s1555_s26 + $0x88] sm:$0xff] %v920_v6  ;;  %923 = vst [vmem:[%s1555_s26 + $0xa0] sm:$0xff] %v922_v7 }
 0x13d   : > { %925 = vst [vmem:[%s1555_s26 + $0xa8] sm:$0xff] %v924_v8  ;;  %951 = vst [vmem:[%s1555_s26 + $0x180] sm:$0xff] %v950_v21 }
 0x13e   : > { %v930_v11 = vld [vmem:[%s1483_s16 + $0x70] sm:$0xff]  ;;  %953 = vst [vmem:[%s1555_s26 + $0x188] sm:$0xff] %v952_v22  ;;  %955 = vst [vmem:[%s1555_s26 + $0x1a0] sm:$0xff] %v954_v23 }
 0x13f   : > { %v926_v9 = vld [vmem:[%s1483_s16 + $0x60] sm:$0xff]  ;;  %931 = vst [vmem:[%s1555_s26 + $0xe0] sm:$0xff] %v930_v11  ;;  %957 = vst [vmem:[%s1555_s26 + $0x1a8] sm:$0xff] %v956_v24  ;;  %v962_v27 = vld [vmem:[%s1483_s16 + $0xf0] sm:$0xff] }
 0x140   : > { %927 = vst [vmem:[%s1555_s26 + $0xc0] sm:$0xff] %v926_v9  ;;  %v932_v12 = vld [vmem:[%s1483_s16 + $0x78] sm:$0xff]  ;;  %v958_v25 = vld [vmem:[%s1483_s16 + $0xe0] sm:$0xff]  ;;  %963 = vst [vmem:[%s1555_s26 + $0x1e0] sm:$0xff] %v962_v27 }
 0x141   : > { %v928_v10 = vld [vmem:[%s1483_s16 + $0x68] sm:$0xff]  ;;  %933 = vst [vmem:[%s1555_s26 + $0xe8] sm:$0xff] %v932_v12  ;;  %959 = vst [vmem:[%s1555_s26 + $0x1c0] sm:$0xff] %v958_v25  ;;  %v964_v28 = vld [vmem:[%s1483_s16 + $0xf8] sm:$0xff] }
 0x142   : > { %929 = vst [vmem:[%s1555_s26 + $0xc8] sm:$0xff] %v928_v10  ;;  %v960_v26 = vld [vmem:[%s1483_s16 + $0xe8] sm:$0xff]  ;;  %965 = vst [vmem:[%s1555_s26 + $0x1e8] sm:$0xff] %v964_v28 }
 0x143   : > { %961 = vst [vmem:[%s1555_s26 + $0x1c8] sm:$0xff] %v960_v26 }
 0x144 PF: > { %p12_p10 = scmp.ge.s32.totalorder %s1244_s22, 4   ;;  %s1635_s18 = smov %s1191_s19 }
 0x145   : > { %s1636_s19 = smov %s1255_s25  ;;  %s1637_s20 = smov %s1244_s22 }
 0x146   :  { %14 = sbr.rel (!%p12_p10) target bundleno = 2 (0x2), region = 151 }

// kernel: upblock_forward.6
= control target key start
LH: loop header
LB: loop body
LE: loop exit
PB: predicated region body
PF: predicated region fallthrough
CT: control target
= control target key end

     0   :  { %s4084_s18 = smov 0   ;;  %s4086_s19 = smov 0   ;;  %s5262_s0 = inlined_call_operand.vmem [shape: bf16[18,32,384], index: 0, kind: input, shape index: {}]   ;;  %s5263_s1 = inlined_call_operand.vmem [shape: bf16[3,384,128], index: 1, kind: input, shape index: {}]   ;;  %s5264_s2 = inlined_call_operand.vmem [shape: f32[1,128], index: 2, kind: input, shape index: {}]   ;;  %s5265_s3 = inlined_call_operand.vmem [shape: f32[16,32,128], index: 3, kind: output, shape index: {0}]   ;;  %s5266_s4 = inlined_call_operand.vmem [shape: f32[16,128], index: 4, kind: output, shape index: {1}]   ;;  %s5267_s5 = inlined_call_operand.vmem [shape: f32[16,128], index: 5, kind: output, shape index: {2}]  }
   0x1   :  { %s4088_s20 = smov 0  }
   0x2 LB: > { %s4100_s21 = sadd.s32 4294967295, %s4052_s20   ;;  %s4103_s22 = sadd.s32 1, %s4052_s20   ;;  %s4052_s20 = sphi %s4088_s20, %s5275_s20   ;;  %s4048_s19 = sphi %s4086_s19, %s5274_s19   ;;  %s4044_s18 = sphi %s4084_s18, %s5273_s18  }
   0x3   : > { %s20_s23 = ssub.s32 %s4052_s20, %s4103_s22  ;;  %s23_s24 = sadd.s32 1, %s4048_s19 }
   0x4   : > { %p21_p0 = scmp.eq.s32.totalorder %s20_s23, 0  ;;  %p30_p1 = scmp.ne.s32.totalorder %s4048_s19, %s4044_s18 }
   0x5   : > { %p31_p2 = scmp.eq.s32.totalorder %s4052_s20, 0  ;;  %p102_p3 = scmp.eq.s32.totalorder %s4100_s21, 1 }
   0x6   : > { %s4113_s25 = scalar_select %p21_p0, %s4048_s19, %s23_s24  }
   0x7   : > { %p32_p4 = por %p31_p2, %p30_p1  ;;  %p4115_p5 = por %p102_p3, %p30_p1 }
   0x8   : > { %p2821_p6 = scmp.ge.s32.totalorder %s4052_s20, 2 }
   0xa   : > { %182 = sbr.rel (%p2821_p6) target bundleno = 64 (0x40), region = 24 }
  0x11   : > { %185 = sbr.rel (!%p32_p4) target bundleno = 64 (0x40), region = 28  ;;  %s187_s27 = sand.u32 (%p32_p4), 1, %s4048_s19  }
  0x12   : > { %s3859_s28 = smul.u32 (%p32_p4), 24, %s4052_s20 }
  0x13   : > { %s3858_s29 = smul.u32 (%p32_p4), 432, %s187_s27 }
  0x14   : > { %s4125_s7 = scalar_lea.vmem (%p32_p4), %s5262_s0, %s3859_s28 }
  0x15   : > { %v208_v0 = vld [vmem:[%s4125_s7] sm:$0xff] (%p32_p4)  ;;  %v210_v1 = vld [vmem:[%s4125_s7 + $0xc] sm:$0xff] (%p32_p4)  ;;  %s4130_s8 = scalar_lea.vmem (%p32_p4), [#allocation2], %s3858_s29  ;;  %v2825_v36 = vld [vmem:[%s4125_s7 + $0x8] sm:$0xf] (%p32_p4) }
  0x16   : > { %v212_v2 = vld [vmem:[%s4125_s7 + $0x30] sm:$0xff] (%p32_p4)  ;;  %209 = vst [vmem:[%s4130_s8] sm:$0xff] (%p32_p4), %v208_v0  ;;  %211 = vst [vmem:[%s4130_s8 + $0xc] sm:$0xff] (%p32_p4), %v210_v1  ;;  %v214_v3 = vld [vmem:[%s4125_s7 + $0x3c] sm:$0xff] (%p32_p4) }
  0x17   : > { %213 = vst [vmem:[%s4130_s8 + $0x18] sm:$0xff] (%p32_p4), %v212_v2  ;;  %v216_v4 = vld [vmem:[%s4125_s7 + $0x60] sm:$0xff] (%p32_p4)  ;;  %v218_v5 = vld [vmem:[%s4125_s7 + $0x6c] sm:$0xff] (%p32_p4)  ;;  %215 = vst [vmem:[%s4130_s8 + $0x24] sm:$0xff] (%p32_p4), %v214_v3 }
  0x18   : > { %217 = vst [vmem:[%s4130_s8 + $0x30] sm:$0xff] %v216_v4  ;;  %219 = vst [vmem:[%s4130_s8 + $0x3c] sm:$0xff] %v218_v5  ;;  %v220_v6 = vld [vmem:[%s4125_s7 + $0x90] sm:$0xff]  ;;  %v222_v7 = vld [vmem:[%s4125_s7 + $0x9c] sm:$0xff] }
  0x19   : > { %v224_v8 = vld [vmem:[%s4125_s7 + $0xc0] sm:$0xff]  ;;  %221 = vst [vmem:[%s4130_s8 + $0x48] sm:$0xff] %v220_v6  ;;  %223 = vst [vmem:[%s4130_s8 + $0x54] sm:$0xff] %v222_v7  ;;  %v226_v9 = vld [vmem:[%s4125_s7 + $0xcc] sm:$0xff] }
  0x1a   : > { %225 = vst [vmem:[%s4130_s8 + $0x60] sm:$0xff] %v224_v8  ;;  %v228_v10 = vld [vmem:[%s4125_s7 + $0xf0] sm:$0xff]  ;;  %v230_v11 = vld [vmem:[%s4125_s7 + $0xfc] sm:$0xff]  ;;  %227 = vst [vmem:[%s4130_s8 + $0x6c] sm:$0xff] %v226_v9 }
  0x1b   : > { %229 = vst [vmem:[%s4130_s8 + $0x78] sm:$0xff] %v228_v10  ;;  %231 = vst [vmem:[%s4130_s8 + $0x84] sm:$0xff] %v230_v11  ;;  %v232_v12 = vld [vmem:[%s4125_s7 + $0x120] sm:$0xff]  ;;  %v234_v13 = vld [vmem:[%s4125_s7 + $0x12c] sm:$0xff] }
  0x1c   : > { %v236_v14 = vld [vmem:[%s4125_s7 + $0x150] sm:$0xff]  ;;  %233 = vst [vmem:[%s4130_s8 + $0x90] sm:$0xff] %v232_v12  ;;  %235 = vst [vmem:[%s4130_s8 + $0x9c] sm:$0xff] %v234_v13  ;;  %v238_v15 = vld [vmem:[%s4125_s7 + $0x15c] sm:$0xff] }
  0x1d   : > { %237 = vst [vmem:[%s4130_s8 + $0xa8] sm:$0xff] %v236_v14  ;;  %v240_v16 = vld [vmem:[%s4125_s7 + $0x180] sm:$0xff]  ;;  %v242_v17 = vld [vmem:[%s4125_s7 + $0x18c] sm:$0xff]  ;;  %239 = vst [vmem:[%s4130_s8 + $0xb4] sm:$0xff] %v238_v15 }
  0x1e   : > { %241 = vst [vmem:[%s4130_s8 + $0xc0] sm:$0xff] %v240_v16  ;;  %243 = vst [vmem:[%s4130_s8 + $0xcc] sm:$0xff] %v242_v17  ;;  %v244_v18 = vld [vmem:[%s4125_s7 + $0x1b0] sm:$0xff]  ;;  %v246_v19 = vld [vmem:[%s4125_s7 + $0x1bc] sm:$0xff] }
  0x1f   : > { %v248_v20 = vld [vmem:[%s4125_s7 + $0x1e0] sm:$0xff]  ;;  %245 = vst [vmem:[%s4130_s8 + $0xd8] sm:$0xff] %v244_v18  ;;  %247 = vst [vmem:[%s4130_s8 + $0xe4] sm:$0xff] %v246_v19  ;;  %v250_v21 = vld [vmem:[%s4125_s7 + $0x1ec] sm:$0xff] }
  0x20   : > { %249 = vst [vmem:[%s4130_s8 + $0xf0] sm:$0xff] %v248_v20  ;;  %v252_v22 = vld [vmem:[%s4125_s7 + $0x210] sm:$0xff]  ;;  %v254_v23 = vld [vmem:[%s4125_s7 + $0x21c] sm:$0xff]  ;;  %251 = vst [vmem:[%s4130_s8 + $0xfc] sm:$0xff] %v250_v21 }
  0x21   : > { %253 = vst [vmem:[%s4130_s8 + $0x108] sm:$0xff] %v252_v22  ;;  %255 = vst [vmem:[%s4130_s8 + $0x114] sm:$0xff] %v254_v23  ;;  %v256_v24 = vld [vmem:[%s4125_s7 + $0x240] sm:$0xff]  ;;  %v258_v25 = vld [vmem:[%s4125_s7 + $0x24c] sm:$0xff] }
  0x22   : > { %v260_v26 = vld [vmem:[%s4125_s7 + $0x270] sm:$0xff]  ;;  %257 = vst [vmem:[%s4130_s8 + $0x120] sm:$0xff] %v256_v24  ;;  %259 = vst [vmem:[%s4130_s8 + $0x12c] sm:$0xff] %v258_v25  ;;  %v262_v27 = vld [vmem:[%s4125_s7 + $0x27c] sm:$0xff] }
  0x23   : > { %261 = vst [vmem:[%s4130_s8 + $0x138] sm:$0xff] %v260_v26  ;;  %v264_v28 = vld [vmem:[%s4125_s7 + $0x2a0] sm:$0xff]  ;;  %v266_v29 = vld [vmem:[%s4125_s7 + $0x2ac] sm:$0xff]  ;;  %263 = vst [vmem:[%s4130_s8 + $0x144] sm:$0xff] %v262_v27 }
  0x24   : > { %265 = vst [vmem:[%s4130_s8 + $0x150] sm:$0xff] %v264_v28  ;;  %267 = vst [vmem:[%s4130_s8 + $0x15c] sm:$0xff] %v266_v29  ;;  %v268_v30 = vld [vmem:[%s4125_s7 + $0x2d0] sm:$0xff]  ;;  %v270_v31 = vld [vmem:[%s4125_s7 + $0x2dc] sm:$0xff] }
  0x25   : > { %v272_v32 = vld [vmem:[%s4125_s7 + $0x300] sm:$0xff]  ;;  %269 = vst [vmem:[%s4130_s8 + $0x168] sm:$0xff] %v268_v30  ;;  %271 = vst [vmem:[%s4130_s8 + $0x174] sm:$0xff] %v270_v31  ;;  %v274_v33 = vld [vmem:[%s4125_s7 + $0x30c] sm:$0xff] }
  0x26   : > { %273 = vst [vmem:[%s4130_s8 + $0x180] sm:$0xff] %v272_v32  ;;  %v276_v34 = vld [vmem:[%s4125_s7 + $0x330] sm:$0xff]  ;;  %v278_v35 = vld [vmem:[%s4125_s7 + $0x33c] sm:$0xff]  ;;  %275 = vst [vmem:[%s4130_s8 + $0x18c] sm:$0xff] %v274_v33 }
  0x27   : > { %277 = vst [vmem:[%s4130_s8 + $0x198] sm:$0xff] %v276_v34  ;;  %279 = vst [vmem:[%s4130_s8 + $0x1a4] sm:$0xff] %v278_v35  ;;  %v2827_v37 = vld [vmem:[%s4125_s7 + $0x14] sm:$0xf]  ;;  %v2829_v38 = vld [vmem:[%s4125_s7 + $0x38] sm:$0xf] }
  0x28   : > { %2826 = vst [vmem:[%s4130_s8 + $0x8] sm:$0xf] %v2825_v36  ;;  %2828 = vst [vmem:[%s4130_s8 + $0x14] sm:$0xf] %v2827_v37  ;;  %v2831_v39 = vld [vmem:[%s4125_s7 + $0x44] sm:$0xf] }
  0x29   : > { %2830 = vst [vmem:[%s4130_s8 + $0x20] sm:$0xf] %v2829_v38  ;;  %v2833_v40 = vld [vmem:[%s4125_s7 + $0x68] sm:$0xf]  ;;  %v2835_v41 = vld [vmem:[%s4125_s7 + $0x74] sm:$0xf] }
  0x2a   : > { %2832 = vst [vmem:[%s4130_s8 + $0x2c] sm:$0xf] %v2831_v39  ;;  %2834 = vst [vmem:[%s4130_s8 + $0x38] sm:$0xf] %v2833_v40  ;;  %v2837_v42 = vld [vmem:[%s4125_s7 + $0x98] sm:$0xf] }
  0x2b   : > { %2836 = vst [vmem:[%s4130_s8 + $0x44] sm:$0xf] %v2835_v41  ;;  %v2839_v43 = vld [vmem:[%s4125_s7 + $0xa4] sm:$0xf]  ;;  %v2841_v44 = vld [vmem:[%s4125_s7 + $0xc8] sm:$0xf] }
  0x2c   : > { %2838 = vst [vmem:[%s4130_s8 + $0x50] sm:$0xf] %v2837_v42  ;;  %2840 = vst [vmem:[%s4130_s8 + $0x5c] sm:$0xf] %v2839_v43  ;;  %v2843_v45 = vld [vmem:[%s4125_s7 + $0xd4] sm:$0xf] }
  0x2d   : > { %2842 = vst [vmem:[%s4130_s8 + $0x68] sm:$0xf] %v2841_v44  ;;  %v2845_v46 = vld [vmem:[%s4125_s7 + $0xf8] sm:$0xf]  ;;  %v2847_v47 = vld [vmem:[%s4125_s7 + $0x104] sm:$0xf] }
  0x2e   : > { %2844 = vst [vmem:[%s4130_s8 + $0x74] sm:$0xf] %v2843_v45  ;;  %2846 = vst [vmem:[%s4130_s8 + $0x80] sm:$0xf] %v2845_v46  ;;  %v2849_v48 = vld [vmem:[%s4125_s7 + $0x128] sm:$0xf] }
  0x2f   : > { %2848 = vst [vmem:[%s4130_s8 + $0x8c] sm:$0xf] %v2847_v47  ;;  %v2851_v49 = vld [vmem:[%s4125_s7 + $0x134] sm:$0xf]  ;;  %v2853_v50 = vld [vmem:[%s4125_s7 + $0x158] sm:$0xf] }
  0x30   : > { %2850 = vst [vmem:[%s4130_s8 + $0x98] sm:$0xf] %v2849_v48  ;;  %2852 = vst [vmem:[%s4130_s8 + $0xa4] sm:$0xf] %v2851_v49  ;;  %v2855_v51 = vld [vmem:[%s4125_s7 + $0x164] sm:$0xf] }
  0x31   : > { %2854 = vst [vmem:[%s4130_s8 + $0xb0] sm:$0xf] %v2853_v50  ;;  %v2857_v52 = vld [vmem:[%s4125_s7 + $0x188] sm:$0xf]  ;;  %v2859_v53 = vld [vmem:[%s4125_s7 + $0x194] sm:$0xf] }
  0x32   : > { %2856 = vst [vmem:[%s4130_s8 + $0xbc] sm:$0xf] %v2855_v51  ;;  %2858 = vst [vmem:[%s4130_s8 + $0xc8] sm:$0xf] %v2857_v52  ;;  %v2861_v54 = vld [vmem:[%s4125_s7 + $0x1b8] sm:$0xf] }
  0x33   : > { %2860 = vst [vmem:[%s4130_s8 + $0xd4] sm:$0xf] %v2859_v53  ;;  %v2863_v55 = vld [vmem:[%s4125_s7 + $0x1c4] sm:$0xf]  ;;  %v2865_v56 = vld [vmem:[%s4125_s7 + $0x1e8] sm:$0xf] }
  0x34   : > { %2862 = vst [vmem:[%s4130_s8 + $0xe0] sm:$0xf] %v2861_v54  ;;  %2864 = vst [vmem:[%s4130_s8 + $0xec] sm:$0xf] %v2863_v55  ;;  %v2867_v57 = vld [vmem:[%s4125_s7 + $0x1f4] sm:$0xf] }
  0x35   : > { %2866 = vst [vmem:[%s4130_s8 + $0xf8] sm:$0xf] %v2865_v56  ;;  %v2869_v58 = vld [vmem:[%s4125_s7 + $0x218] sm:$0xf]  ;;  %v2871_v59 = vld [vmem:[%s4125_s7 + $0x224] sm:$0xf] }
  0x36   : > { %2868 = vst [vmem:[%s4130_s8 + $0x104] sm:$0xf] %v2867_v57  ;;  %2870 = vst [vmem:[%s4130_s8 + $0x110] sm:$0xf] %v2869_v58  ;;  %v2873_v60 = vld [vmem:[%s4125_s7 + $0x248] sm:$0xf] }
  0x37   : > { %2872 = vst [vmem:[%s4130_s8 + $0x11c] sm:$0xf] %v2871_v59  ;;  %v2875_v61 = vld [vmem:[%s4125_s7 + $0x254] sm:$0xf]  ;;  %v2877_v62 = vld [vmem:[%s4125_s7 + $0x278] sm:$0xf] }
  0x38   : > { %2874 = vst [vmem:[%s4130_s8 + $0x128] sm:$0xf] %v2873_v60  ;;  %2876 = vst [vmem:[%s4130_s8 + $0x134] sm:$0xf] %v2875_v61  ;;  %v2879_v63 = vld [vmem:[%s4125_s7 + $0x284] sm:$0xf] }
  0x39   : > { %2878 = vst [vmem:[%s4130_s8 + $0x140] sm:$0xf] %v2877_v62  ;;  %v2881_v0 = vld [vmem:[%s4125_s7 + $0x2a8] sm:$0xf]  ;;  %v2883_v1 = vld [vmem:[%s4125_s7 + $0x2b4] sm:$0xf] }
  0x3a   : > { %2880 = vst [vmem:[%s4130_s8 + $0x14c] sm:$0xf] %v2879_v63  ;;  %2882 = vst [vmem:[%s4130_s8 + $0x158] sm:$0xf] %v2881_v0  ;;  %v2885_v2 = vld [vmem:[%s4125_s7 + $0x2d8] sm:$0xf] }
  0x3b   : > { %2884 = vst [vmem:[%s4130_s8 + $0x164] sm:$0xf] %v2883_v1  ;;  %v2887_v3 = vld [vmem:[%s4125_s7 + $0x2e4] sm:$0xf]  ;;  %v2889_v4 = vld [vmem:[%s4125_s7 + $0x308] sm:$0xf] }
  0x3c   : > { %2886 = vst [vmem:[%s4130_s8 + $0x170] sm:$0xf] %v2885_v2  ;;  %2888 = vst [vmem:[%s4130_s8 + $0x17c] sm:$0xf] %v2887_v3  ;;  %v2891_v5 = vld [vmem:[%s4125_s7 + $0x314] sm:$0xf] }
  0x3d   : > { %2890 = vst [vmem:[%s4130_s8 + $0x188] sm:$0xf] %v2889_v4  ;;  %v2893_v6 = vld [vmem:[%s4125_s7 + $0x338] sm:$0xf]  ;;  %v2895_v7 = vld [vmem:[%s4125_s7 + $0x344] sm:$0xf] }
  0x3e   : > { %2892 = vst [vmem:[%s4130_s8 + $0x194] sm:$0xf] %v2891_v5  ;;  %2894 = vst [vmem:[%s4130_s8 + $0x1a0] sm:$0xf] %v2893_v6 }
  0x3f   : > { %2896 = vst [vmem:[%s4130_s8 + $0x1ac] sm:$0xf] %v2895_v7 }
  0x40 PF: > { %p2897_p7 = scmp.ge.s32.totalorder %s4052_s20, 1  ;;  %p363_p8 = scmp.lt.s32.totalorder %s4052_s20, 3 }
  0x42   : > { %p364_p9 = pnand %p2897_p7, %p363_p8 }
  0x44   : > { %367 = sbr.rel (%p364_p9) target bundleno = 630 (0x276), region = 54 }
  0x4b   : > { %v3885_v8 = vld [vmem:[%s5263_s1 + $0x100] sm:$0xff]   ;;  %v3888_v11 = vld [vmem:[%s5263_s1 + $0x108] sm:$0xff]   ;;  %v3891_v14 = vld [vmem:[%s5263_s1 + $0x110] sm:$0xff]   ;;  %s370_s24 = sand.u32 1, %s4044_s18   ;;  %p406_p10 = scmp.lt.s32.totalorder %s4100_s21, 1 }
  0x4c   : > { %v4281_v9 = vld [vmem:[%s5263_s1 + $0x140] sm:$0xff]   ;;  %3130 = vmatprep.subr.bf16.mxu0 %v3885_v8  ;;  %v4294_v12 = vld [vmem:[%s5263_s1 + $0x148] sm:$0xff]   ;;  %v4306_v15 = vld [vmem:[%s5263_s1 + $0x150] sm:$0xff]   ;;  %s3860_s6 = smul.u32 432, %s370_s24  ;;  %s3129_s7 = sshll.u32 (%p4115_p5), %s4100_s21, 4 }
  0x4d   : > { %v3887_v10 = vld [vmem:[%s5263_s1 + $0xc0] sm:$0xff]   ;;  %3682 = vmatprep.subr.bf16.mxu1 %v4281_v9  ;;  %v3890_v13 = vld [vmem:[%s5263_s1 + $0xc8] sm:$0xff]   ;;  %v3893_v16 = vld [vmem:[%s5263_s1 + $0xd0] sm:$0xff]   ;;  %s5189_s10 = scalar_lea.vmem (%p4115_p5), %s5265_s3, %s3129_s7 }
  0x4e   : > { %3131 = vmatpush3.bf16.msra.mxu0 %v3887_v10  ;;  %3690 = vmatpush3.bf16.msra.mxu1 %v4281_v9  ;;  %v3894_v17 = vld [vmem:[%s5263_s1 + $0x118] sm:$0xff]   ;;  %v3897_v20 = vld [vmem:[%s5263_s1 + $0x120] sm:$0xff]   ;;  %v3900_v23 = vld [vmem:[%s5263_s1 + $0x128] sm:$0xff]   ;;  %s4375_s23 = scalar_lea.vmem [#allocation2], %s3860_s6 }
  0x4f   : > { %3132 = vmatprep.subr.bf16.mxu0 %v3888_v11  ;;  %3683 = vmatprep.subr.bf16.mxu1 %v4294_v12  ;;  %v4319_v18 = vld [vmem:[%s5263_s1 + $0x158] sm:$0xff]   ;;  %v4332_v21 = vld [vmem:[%s5263_s1 + $0x160] sm:$0xff]   ;;  %v4346_v24 = vld [vmem:[%s5263_s1 + $0x168] sm:$0xff]  }
  0x50   : > { %v3896_v19 = vld [vmem:[%s5263_s1 + $0xd8] sm:$0xff]   ;;  %v3899_v22 = vld [vmem:[%s5263_s1 + $0xe0] sm:$0xff]   ;;  %v3902_v25 = vld [vmem:[%s5263_s1 + $0xe8] sm:$0xff]  }
  0x51   : > { %v3903_v26 = vld [vmem:[%s5263_s1 + $0x130] sm:$0xff]   ;;  %v3906_v29 = vld [vmem:[%s5263_s1 + $0x138] sm:$0xff]   ;;  %v3914_v34 = vld [vmem:[%s5263_s1 + $0x40] sm:$0xff]  }
  0x52   : > { %3133 = vmatpush3.bf16.msra.mxu0 %v3890_v13  ;;  %3691 = vmatpush3.bf16.msra.mxu1 %v4294_v12  ;;  %v4361_v27 = vld [vmem:[%s5263_s1 + $0x170] sm:$0xff]   ;;  %v4373_v30 = vld [vmem:[%s5263_s1 + $0x178] sm:$0xff]   ;;  %v3915_v37 = vld [vmem:[%s5263_s1] sm:$0xff]  }
  0x53   : > { %3134 = vmatprep.subr.bf16.mxu0 %v3891_v14  ;;  %3684 = vmatprep.subr.bf16.mxu1 %v4306_v15  ;;  %v3905_v28 = vld [vmem:[%s5263_s1 + $0xf0] sm:$0xff]   ;;  %v4379_v31 = vld [vmem:[%s4375_s23 + $0x1c] ss:$12 sps:$4 sm:$0xff]   ;;  %v4439_v47 = vld [vmem:[%s4375_s23 + $0x4c] ss:$12 sps:$4 sm:$0xff]  }
  0x54   : > { %v4382_v32 = vld [vmem:[%s4375_s23 + $0xe0] ss:$12 sps:$4 sm:$0xff]   ;;  %1016 = vmatprep.mubr.bf16.mxu0 %v4379_v31  ;;  %v4394_v35 = vld [vmem:[%s4375_s23 + $0x18] ss:$12 sps:$4 sm:$0xff]   ;;  %v4412_v40 = vld [vmem:[%s4375_s23 + $0x110] ss:$12 sps:$4 sm:$0xff]  }
  0x55   : > { %v3908_v33 = vld [vmem:[%s5263_s1 + $0xf8] sm:$0xff]   ;;  %3570 = vmatprep.mubr.bf16.mxu1 %v4382_v32  ;;  %v3916_v38 = vld [vmem:[%s5263_s1 + $0x48] sm:$0xff]   ;;  %v4409_v39 = vld [vmem:[%s4375_s23 + $0x34] ss:$12 sps:$4 sm:$0xff]  }
  0x56   : > { %3135 = vmatpush3.bf16.msra.mxu0 %v3893_v16  ;;  %3692 = vmatpush3.bf16.msra.mxu1 %v4306_v15  ;;  %v4398_v36 = vld [vmem:[%s4375_s23 + $0xf8] ss:$12 sps:$4 sm:$0xff]   ;;  %v4422_v42 = vld [vmem:[%s4375_s23 + $0x30] ss:$12 sps:$4 sm:$0xff]   ;;  %v4429_v44 = vld [vmem:[%s4375_s23 + $0x128] ss:$12 sps:$4 sm:$0xff]  }
  0x57   : > { %3136 = vmatprep.subr.bf16.mxu0 %v3894_v17  ;;  %3685 = vmatprep.subr.bf16.mxu1 %v4319_v18  ;;  %v3917_v41 = vld [vmem:[%s5263_s1 + $0x8] sm:$0xff]   ;;  %v3923_v43 = vld [vmem:[%s5263_s1 + $0x50] sm:$0xff]   ;;  %v3925_v46 = vld [vmem:[%s5263_s1 + $0x58] sm:$0xff]  }
  0x58   : > { %v3924_v45 = vld [vmem:[%s5263_s1 + $0x10] sm:$0xff]   ;;  %v3926_v49 = vld [vmem:[%s5263_s1 + $0x18] sm:$0xff]   ;;  %v3932_v52 = vld [vmem:[%s5263_s1 + $0x60] sm:$0xff]  }
  0x59   : > { %v4443_v48 = vld [vmem:[%s4375_s23 + $0x140] ss:$12 sps:$4 sm:$0xff]   ;;  %v4454_v50 = vld [vmem:[%s4375_s23 + $0x48] ss:$12 sps:$4 sm:$0xff]   ;;  %v4457_v51 = vld [vmem:[%s4375_s23 + $0x158] ss:$12 sps:$4 sm:$0xff]  }
  0x5a   : > { %3137 = vmatpush3.bf16.msra.mxu0 %v3896_v19  ;;  %3693 = vmatpush3.bf16.msra.mxu1 %v4319_v18  ;;  %v3933_v53 = vld [vmem:[%s5263_s1 + $0x20] sm:$0xff]   ;;  %v3934_v54 = vld [vmem:[%s5263_s1 + $0x68] sm:$0xff]   ;;  %v3941_v58 = vld [vmem:[%s5263_s1 + $0x70] sm:$0xff]  }
  0x5b   : > { %3138 = vmatprep.subr.bf16.mxu0 %v3897_v20  ;;  %3686 = vmatprep.subr.bf16.mxu1 %v4332_v21  ;;  %v4471_v55 = vld [vmem:[%s4375_s23 + $0x64] ss:$12 sps:$4 sm:$0xff]   ;;  %v3935_v57 = vld [vmem:[%s5263_s1 + $0x28] sm:$0xff]   ;;  %v3943_v62 = vld [vmem:[%s5263_s1 + $0x78] sm:$0xff]  }
  0x5c   : > { %v4474_v56 = vld [vmem:[%s4375_s23 + $0x170] ss:$12 sps:$4 sm:$0xff]   ;;  %v4488_v59 = vld [vmem:[%s4375_s23 + $0x60] ss:$12 sps:$4 sm:$0xff]   ;;  %v4492_v60 = vld [vmem:[%s4375_s23 + $0x188] ss:$12 sps:$4 sm:$0xff]  }
  0x5d   : > { %v3942_v61 = vld [vmem:[%s5263_s1 + $0x30] sm:$0xff]   ;;  %v4502_v63 = vld [vmem:[%s4375_s23 + $0x7c] ss:$12 sps:$4 sm:$0xff]   ;;  %v3951_v2 = vld [vmem:[%s5263_s1 + $0x80] sm:$0xff]  }
  0x5e   : > { %3139 = vmatpush3.bf16.msra.mxu0 %v3899_v22  ;;  %3694 = vmatpush3.bf16.msra.mxu1 %v4332_v21  ;;  %v3949_v0 = vld [vmem:[%s4375_s23 + $0x4] ss:$12 sps:$4 sm:$0xff]   ;;  %v3944_v1 = vld [vmem:[%s5263_s1 + $0x38] sm:$0xff]   ;;  %v4522_v5 = vld [vmem:[%s4375_s23 + $0x94] ss:$12 sps:$4 sm:$0xff]  }
  0x5f   : > { %3140 = vmatprep.subr.bf16.mxu0 %v3900_v23  ;;  %3687 = vmatprep.subr.bf16.mxu1 %v4346_v24  ;;  %v3947_v3 = vld [vmem:[%s4375_s23] ss:$12 sps:$4 sm:$0xff]   ;;  %v4518_v4 = vld [vmem:[%s4375_s23 + $0x78] ss:$12 sps:$4 sm:$0xff]   ;;  %v4536_v8 = vld [vmem:[%s4375_s23 + $0x90] ss:$12 sps:$4 sm:$0xff]  }
  0x60   : > { %v3958_v6 = vld [vmem:[%s5263_s1 + $0x88] sm:$0xff]   ;;  %v3965_v7 = vld [vmem:[%s5263_s1 + $0x90] sm:$0xff]   ;;  %v3972_v10 = vld [vmem:[%s5263_s1 + $0x98] sm:$0xff]  }
  0x61   : > { %v4550_v11 = vld [vmem:[%s4375_s23 + $0xa8] ss:$12 sps:$4 sm:$0xff]   ;;  %v4556_v13 = vld [vmem:[%s4375_s23 + $0xc4] ss:$12 sps:$4 sm:$0xff]   ;;  %v4572_v17 = vld [vmem:[%s4375_s23 + $0xc0] ss:$12 sps:$4 sm:$0xff]  }
  0x62   : > { %3141 = vmatpush3.bf16.msra.mxu0 %v3902_v25  ;;  %3695 = vmatpush3.bf16.msra.mxu1 %v4346_v24  ;;  %v3993_v14 = vld [vmem:[%s5263_s1 + $0x1c0] sm:$0xff]   ;;  %v3992_v16 = vld [vmem:[%s5263_s1 + $0xb0] sm:$0xff]   ;;  %v4005_v19 = vld [vmem:[%s5263_s1 + $0xb8] sm:$0xff]  }
  0x63   : > { %3142 = vmatprep.subr.bf16.mxu0 %v3903_v26  ;;  %3688 = vmatprep.subr.bf16.mxu1 %v4361_v27  ;;  %v4585_v20 = vld [vmem:[%s4375_s23 + $0xd8] ss:$12 sps:$4 sm:$0xff]   ;;  %v4595_v22 = vld [vmem:[%s4375_s23 + $0xf0] ss:$12 sps:$4 sm:$0xff]   ;;  %v4611_v25 = vld [vmem:[%s4375_s23 + $0x108] ss:$12 sps:$4 sm:$0xff]  }
  0x64   : > { %v4598_v23 = vld [vmem:[%s4375_s23 + $0x10c] ss:$12 sps:$4 sm:$0xff]   ;;  %v4614_v26 = vld [vmem:[%s4375_s23 + $0x124] ss:$12 sps:$4 sm:$0xff]  }
  0x66   : > { %3143 = vmatpush3.bf16.msra.mxu0 %v3905_v28  ;;  %3696 = vmatpush3.bf16.msra.mxu1 %v4361_v27  ;;  %v4624_v28 = vld [vmem:[%s4375_s23 + $0x13c] ss:$12 sps:$4 sm:$0xff]  }
  0x67   : > { %3144 = vmatprep.subr.bf16.mxu0 %v3906_v29  ;;  %3689 = vmatprep.subr.bf16.mxu1 %v4373_v30  ;;  %v4631_v29 = vld [vmem:[%s4375_s23 + $0x138] ss:$12 sps:$4 sm:$0xff]  }
  0x6a   : > { %3145 = vmatpush3.bf16.msra.mxu0 %v3908_v33  ;;  %3697 = vmatpush3.bf16.msra.mxu1 %v4373_v30  ;;  %v4644_v33 = vld [vmem:[%s4375_s23 + $0x16c] ss:$12 sps:$4 sm:$0xff]  }
  0x6b   : > { %3538 = vmatprep.subr.bf16.mxu0 %v4281_v9  ;;  %3266 = vmatprep.subr.bf16.mxu1 %v3914_v34  ;;  %v4651_v34 = vld [vmem:[%s4375_s23 + $0x168] ss:$12 sps:$4 sm:$0xff]  }
  0x6d   : > { %1017 = vmatmul.mubr.bf16.vlgmr.msra.gmra.mrb[0].mxu0 %v4394_v35  ;;  %3571 = vmatmul.mubr.bf16.vlgmr.msra.gmra.mrb[0].mxu1 %v4398_v36 }
  0x6e   : > { %3539 = vmatpush3.bf16.msra.mxu0 %v4281_v9  ;;  %3267 = vmatpush3.bf16.msra.mxu1 %v3915_v37  ;;  %v4540_v9 = vld [vmem:[%s4375_s23 + $0xac] ss:$12 sps:$4 sm:$0xff]  }
  0x6f   : > { %3268 = vmatprep.subr.bf16.mxu1 %v3916_v38  ;;  %1024 = vmatprep.mubr.bf16.mxu0 %v4409_v39  ;;  %v4661_v37 = vld [vmem:[%s4375_s23 + $0x180] ss:$12 sps:$4 sm:$0xff]  }
  0x70   : > { %3574 = vmatprep.mubr.bf16.mxu1 %v4412_v40  ;;  %3540 = vmatprep.subr.bf16.mxu0 %v4294_v12  ;;  %v3990_v38 = vld [vmem:[%s4375_s23 + $0x20] ss:$12 sps:$4 sm:$0xff]  }
  0x72   : > { %3269 = vmatpush3.bf16.msra.mxu1 %v3917_v41  ;;  %3541 = vmatpush3.bf16.msra.mxu0 %v4294_v12  ;;  %v3979_v12 = vld [vmem:[%s5263_s1 + $0xa0] sm:$0xff]  }
  0x73   : > { %3270 = vmatprep.subr.bf16.mxu1 %v3923_v43  ;;  %3542 = vmatprep.subr.bf16.mxu0 %v4306_v15  ;;  %v4668_v41 = vld [vmem:[%s4375_s23 + $0x38] ss:$12 sps:$4 sm:$0xff]  }
  0x74   : > { %v3994_v43 = vld [vmem:[%s5263_s1 + $0x180] sm:$0xff]  }
  0x75   : > { %1025 = vmatmul.mubr.bf16.gmra.mrb[4].mxu0 %v4422_v42  ;;  %3575 = vmatmul.mubr.bf16.gmra.mrb[4].mxu1 %v4429_v44 }
  0x76   : > { %3271 = vmatpush3.bf16.msra.mxu1 %v3924_v45  ;;  %1032 = vmatprep.mubr.bf16.mxu0 %v4439_v47  ;;  %v4674_v45 = vld [vmem:[%s4375_s23 + $0x50] ss:$12 sps:$4 sm:$0xff]  }
  0x77   : > { %3272 = vmatprep.subr.bf16.mxu1 %v3925_v46  ;;  %3578 = vmatprep.mubr.bf16.mxu1 %v4443_v48  ;;  %v3995_v46 = vld [vmem:[%s5263_s1 + $0x1c8] sm:$0xff]  }
  0x78   : > { %3543 = vmatpush3.bf16.msra.mxu0 %v4306_v15  ;;  %v3986_v15 = vld [vmem:[%s5263_s1 + $0xa8] sm:$0xff]  }
  0x79   : > { %3544 = vmatprep.subr.bf16.mxu0 %v4319_v18 }
  0x7a   : > { %3273 = vmatpush3.bf16.msra.mxu1 %v3926_v49  ;;  %v3996_v49 = vld [vmem:[%s5263_s1 + $0x188] sm:$0xff]  }
  0x7b   : > { %3274 = vmatprep.subr.bf16.mxu1 %v3932_v52  ;;  %v3999_v52 = vld [vmem:[%s5263_s1 + $0x1d0] sm:$0xff]  }
  0x7c   : > { %3545 = vmatpush3.bf16.msra.mxu0 %v4319_v18  ;;  %v4575_v18 = vld [vmem:[%s4375_s23 + $0xdc] ss:$12 sps:$4 sm:$0xff]  }
  0x7d   : > { %1033 = vmatmul.mubr.bf16.gmra.mrb[8].mxu0 %v4454_v50  ;;  %3579 = vmatmul.mubr.bf16.gmra.mrb[8].mxu1 %v4457_v51 }
  0x7e   : > { %3275 = vmatpush3.bf16.msra.mxu1 %v3933_v53  ;;  %1040 = vmatprep.mubr.bf16.mxu0 %v4471_v55  ;;  %v4690_v53 = vld [vmem:[%s4375_s23 + $0x68] ss:$12 sps:$4 sm:$0xff]  }
  0x7f   : > { %3276 = vmatprep.subr.bf16.mxu1 %v3934_v54  ;;  %3582 = vmatprep.mubr.bf16.mxu1 %v4474_v56  ;;  %v4000_v54 = vld [vmem:[%s5263_s1 + $0x190] sm:$0xff]  }
  0x80   : > { %3546 = vmatprep.subr.bf16.mxu0 %v4332_v21 }
  0x81   : > { %3547 = vmatpush3.bf16.msra.mxu0 %v4332_v21  ;;  %v4588_v21 = vld [vmem:[%s4375_s23 + $0xf4] ss:$12 sps:$4 sm:$0xff]  }
  0x82   : > { %3277 = vmatpush3.bf16.msra.mxu1 %v3935_v57  ;;  %3548 = vmatprep.subr.bf16.mxu0 %v4346_v24  ;;  %v4696_v57 = vld [vmem:[%s4375_s23 + $0x80] ss:$12 sps:$4 sm:$0xff]  }
  0x83   : > { %3278 = vmatprep.subr.bf16.mxu1 %v3941_v58  ;;  %v4001_v58 = vld [vmem:[%s5263_s1 + $0x1d8] sm:$0xff]  }
  0x85   : > { %1041 = vmatmul.mubr.bf16.gmra.mrb[12].mxu0 %v4488_v59  ;;  %3583 = vmatmul.mubr.bf16.gmra.mrb[12].mxu1 %v4492_v60 }
  0x86   : > { %3279 = vmatpush3.bf16.msra.mxu1 %v3942_v61  ;;  %1048 = vmatprep.mubr.bf16.mxu0 %v4502_v63  ;;  %v4002_v61 = vld [vmem:[%s5263_s1 + $0x198] sm:$0xff]  }
  0x87   : > { %3280 = vmatprep.subr.bf16.mxu1 %v3943_v62  ;;  %1498 = vmatprep.mubr.bf16.mxu1 %v3949_v0  ;;  %v4006_v62 = vld [vmem:[%s5263_s1 + $0x1e0] sm:$0xff]  }
  0x88   : > { %3549 = vmatpush3.bf16.msra.mxu0 %v4346_v24  ;;  %v4603_v24 = vld [vmem:[%s5263_s1 + $0x200] sm:$0xff]  }
  0x89   : > { %3550 = vmatprep.subr.bf16.mxu0 %v4361_v27  ;;  %v4712_v0 = vld [vmem:[%s4375_s23 + $0x98] ss:$12 sps:$4 sm:$0xff]  }
  0x8a   : > { %3281 = vmatpush3.bf16.msra.mxu1 %v3944_v1  ;;  %v4007_v1 = vld [vmem:[%s5263_s1 + $0x1a0] sm:$0xff]  }
  0x8b   : > { %3586 = vmatprep.subr.bf16.mxu1 %v3951_v2 }
  0x8c   : > { %3551 = vmatpush3.bf16.msra.mxu0 %v4361_v27  ;;  %v4621_v27 = vld [vmem:[%s4375_s23 + $0x120] ss:$12 sps:$4 sm:$0xff]  }
  0x8d   : > { %1049 = vmatmul.mubr.bf16.gmra.mrb[16].mxu0 %v4518_v4  ;;  %1499 = vmatmul.mubr.bf16.vlgmr.msra.gmra.mrb[16].mxu1 %v3947_v3  ;;  %v4008_v3 = vld [vmem:[%s5263_s1 + $0x1e8] sm:$0xff]  }
  0x8e   : > { %3587 = vmatpush3.bf16.msra.mxu1 %v3951_v2  ;;  %1056 = vmatprep.mubr.bf16.mxu0 %v4522_v5  ;;  %v4718_v2 = vld [vmem:[%s4375_s23 + $0xb0] ss:$12 sps:$4 sm:$0xff]  }
  0x8f   : > { %1506 = vmatprep.mubr.bf16.mxu1 %v4379_v31  ;;  %3588 = vmatprep.subr.bf16.mxu1 %v3958_v6  ;;  %v4641_v31 = vld [vmem:[%s4375_s23 + $0x150] ss:$12 sps:$4 sm:$0xff]  }
  0x90   : > { %3552 = vmatprep.subr.bf16.mxu0 %v4373_v30 }
  0x91   : > { %3553 = vmatpush3.bf16.msra.mxu0 %v4373_v30  ;;  %v4634_v30 = vld [vmem:[%s4375_s23 + $0x154] ss:$12 sps:$4 sm:$0xff]  }
  0x92   : > { %3589 = vmatpush3.bf16.msra.mxu1 %v3958_v6  ;;  %3402 = vmatprep.subr.bf16.mxu0 %v3993_v14  ;;  %v4009_v6 = vld [vmem:[%s5263_s1 + $0x1a8] sm:$0xff]  }
  0x93   : > { %3590 = vmatprep.subr.bf16.mxu1 %v3965_v7  ;;  %v4016_v14 = vld [vmem:[%s4375_s23 + $0x8] ss:$12 sps:$4 sm:$0xff]  }
  0x95   : > { %1057 = vmatmul.mubr.bf16.gmra.mrb[20].mxu0 %v4536_v8  ;;  %1507 = vmatmul.mubr.bf16.gmra.mrb[20].mxu1 %v4394_v35  ;;  %v4654_v35 = vld [vmem:[%s4375_s23 + $0x184] ss:$12 sps:$4 sm:$0xff]  }
  0x96   : > { %1064 = vmatprep.mubr.bf16.mxu0 %v4540_v9  ;;  %1514 = vmatprep.mubr.bf16.mxu1 %v4409_v39 }
  0x97   : > { %3591 = vmatpush3.bf16.msra.mxu1 %v3965_v7  ;;  %v4012_v7 = vld [vmem:[%s5263_s1 + $0x1f0] sm:$0xff]  }
  0x98   : > { %3592 = vmatprep.subr.bf16.mxu1 %v3972_v10 }
  0x9b   : > { %3593 = vmatpush3.bf16.msra.mxu1 %v3972_v10  ;;  %v4734_v10 = vld [vmem:[%s4375_s23 + $0xc8] ss:$12 sps:$4 sm:$0xff]  }
  0x9c   : > { %3594 = vmatprep.subr.bf16.mxu1 %v3979_v12 }
  0x9d   : > { %1065 = vmatmul.mubr.bf16.gmra.mrb[24].mxu0 %v4550_v11  ;;  %1515 = vmatmul.mubr.bf16.gmra.mrb[24].mxu1 %v4422_v42 }
  0x9e   : > { %1072 = vmatprep.mubr.bf16.mxu0 %v4556_v13  ;;  %1522 = vmatprep.mubr.bf16.mxu1 %v4439_v47 }
  0x9f   : > { %3595 = vmatpush3.bf16.msra.mxu1 %v3979_v12  ;;  %v4013_v12 = vld [vmem:[%s5263_s1 + $0x1b0] sm:$0xff]  }
  0xa0   : > { %3596 = vmatprep.subr.bf16.mxu1 %v3986_v15 }
  0xa3   : > { %3597 = vmatpush3.bf16.msra.mxu1 %v3986_v15  ;;  %v4014_v15 = vld [vmem:[%s5263_s1 + $0x1f8] sm:$0xff]  }
  0xa4   : > { %3598 = vmatprep.subr.bf16.mxu1 %v3992_v16 }
  0xa5   : > { %1073 = vmatmul.mubr.bf16.gmra.mrb[28].mxu0 %v4572_v17  ;;  %1523 = vmatmul.mubr.bf16.gmra.mrb[28].mxu1 %v4454_v50 }
  0xa6   : > { %1080 = vmatprep.mubr.bf16.mxu0 %v4575_v18  ;;  %1530 = vmatprep.mubr.bf16.mxu1 %v4471_v55 }
  0xa7   : > { %3599 = vmatpush3.bf16.msra.mxu1 %v3992_v16  ;;  %v4015_v16 = vld [vmem:[%s5263_s1 + $0x1b8] sm:$0xff]  }
  0xa8   : > { %3600 = vmatprep.subr.bf16.mxu1 %v4005_v19 }
  0xab   : > { %3601 = vmatpush3.bf16.msra.mxu1 %v4005_v19  ;;  %v4018_v19 = vld [vmem:[%s5263_s1 + $0x208] sm:$0xff]  }
  0xac   : > { %3634 = vmatprep.subr.bf16.mxu1 %v4603_v24 }
  0xad   : > { %1081 = vmatmul.mubr.bf16.gmra.mrb[32].mxu0 %v4585_v20  ;;  %1531 = vmatmul.mubr.bf16.gmra.mrb[32].mxu1 %v4488_v59 }
  0xae   : > { %1088 = vmatprep.mubr.bf16.mxu0 %v4588_v21  ;;  %1538 = vmatprep.mubr.bf16.mxu1 %v4502_v63 }
  0xb5   : > { %1089 = vmatmul.mubr.bf16.gmra.mrb[36].mxu0 %v4595_v22  ;;  %1539 = vmatmul.mubr.bf16.gmra.mrb[36].mxu1 %v4518_v4 }
  0xb6   : > { %1096 = vmatprep.mubr.bf16.mxu0 %v4598_v23  ;;  %1546 = vmatprep.mubr.bf16.mxu1 %v4522_v5 }
  0xbd   : > { %1097 = vmatmul.mubr.bf16.gmra.mrb[40].mxu0 %v4611_v25  ;;  %1547 = vmatmul.mubr.bf16.gmra.mrb[40].mxu1 %v4536_v8 }
  0xbe   : > { %1104 = vmatprep.mubr.bf16.mxu0 %v4614_v26  ;;  %1554 = vmatprep.mubr.bf16.mxu1 %v4540_v9 }
  0xc5   : > { %1105 = vmatmul.mubr.bf16.gmra.mrb[44].mxu0 %v4621_v27  ;;  %1555 = vmatmul.mubr.bf16.gmra.mrb[44].mxu1 %v4550_v11 }
  0xc6   : > { %1112 = vmatprep.mubr.bf16.mxu0 %v4624_v28  ;;  %1562 = vmatprep.mubr.bf16.mxu1 %v4556_v13 }
  0xcd   : > { %1113 = vmatmul.mubr.bf16.gmra.mrb[48].mxu0 %v4631_v29  ;;  %1563 = vmatmul.mubr.bf16.gmra.mrb[48].mxu1 %v4572_v17 }
  0xce   : > { %1120 = vmatprep.mubr.bf16.mxu0 %v4634_v30  ;;  %1570 = vmatprep.mubr.bf16.mxu1 %v4575_v18 }
  0xd5   : > { %1121 = vmatmul.mubr.bf16.gmra.mrb[52].mxu0 %v4641_v31  ;;  %1571 = vmatmul.mubr.bf16.gmra.mrb[52].mxu1 %v4585_v20 }
  0xd6   : > { %1128 = vmatprep.mubr.bf16.mxu0 %v4644_v33  ;;  %1578 = vmatprep.mubr.bf16.mxu1 %v4588_v21 }
  0xdd   : > { %1129 = vmatmul.mubr.bf16.gmra.mrb[56].mxu0 %v4651_v34  ;;  %1579 = vmatmul.mubr.bf16.gmra.mrb[56].mxu1 %v4595_v22 }
  0xde   : > { %1136 = vmatprep.mubr.bf16.mxu0 %v4654_v35  ;;  %1586 = vmatprep.mubr.bf16.mxu1 %v4598_v23 }
  0xe5   : > { %1137 = vmatmul.mubr.bf16.gmra.mrb[60].mxu0 %v4661_v37  ;;  %1587 = vmatmul.mubr.bf16.gmra.mrb[60].mxu1 %v4611_v25 }
  0xe6   : > { %3554 = vmatprep.mubr.bf16.mxu0 %v3990_v38  ;;  %1594 = vmatprep.mubr.bf16.mxu1 %v4614_v26 }
  0xed   : > { %3555 = vmatmul.mubr.bf16.vlgmr.msra.gmra.mrb[64].mxu0 %v4668_v41  ;;  %1595 = vmatmul.mubr.bf16.gmra.mrb[64].mxu1 %v4621_v27 }
  0xee   : > { %3403 = vmatpush3.bf16.msra.mxu0 %v3994_v43  ;;  %3558 = vmatprep.mubr.bf16.mxu0 %v4674_v45  ;;  %v4019_v43 = vld [vmem:[%s5263_s1 + $0x210] sm:$0xff]  }
  0xef   : > { %3404 = vmatprep.subr.bf16.mxu0 %v3995_v46  ;;  %1602 = vmatprep.mubr.bf16.mxu1 %v4624_v28 }
  0xf2   : > { %3405 = vmatpush3.bf16.msra.mxu0 %v3996_v49 }
  0xf3   : > { %3406 = vmatprep.subr.bf16.mxu0 %v3999_v52 }
  0xf5   : > { %3559 = vmatmul.mubr.bf16.gmra.mrb[68].mxu0 %v4690_v53  ;;  %1603 = vmatmul.mubr.bf16.gmra.mrb[68].mxu1 %v4631_v29 }
  0xf6   : > { %3407 = vmatpush3.bf16.msra.mxu0 %v4000_v54  ;;  %3562 = vmatprep.mubr.bf16.mxu0 %v4696_v57 }
  0xf7   : > { %3408 = vmatprep.subr.bf16.mxu0 %v4001_v58  ;;  %1610 = vmatprep.mubr.bf16.mxu1 %v4634_v30 }
  0xfa   : > { %3409 = vmatpush3.bf16.msra.mxu0 %v4002_v61 }
  0xfb   : > { %3410 = vmatprep.subr.bf16.mxu0 %v4006_v62 }
  0xfd   : > { %3563 = vmatmul.mubr.bf16.gmra.mrb[72].mxu0 %v4712_v0  ;;  %1611 = vmatmul.mubr.bf16.gmra.mrb[72].mxu1 %v4641_v31 }
  0xfe   : > { %3411 = vmatpush3.bf16.msra.mxu0 %v4007_v1  ;;  %3566 = vmatprep.mubr.bf16.mxu0 %v4718_v2 }
  0xff   : > { %3412 = vmatprep.subr.bf16.mxu0 %v4008_v3  ;;  %1618 = vmatprep.mubr.bf16.mxu1 %v4644_v33 }
 0x102   : > { %3413 = vmatpush3.bf16.msra.mxu0 %v4009_v6 }
 0x103   : > { %3414 = vmatprep.subr.bf16.mxu0 %v4012_v7 }
 0x105   : > { %3567 = vmatmul.mubr.bf16.gmra.mrb[76].mxu0 %v4734_v10  ;;  %1619 = vmatmul.mubr.bf16.gmra.mrb[76].mxu1 %v4651_v34 }
 0x106   : > { %3415 = vmatpush3.bf16.msra.mxu0 %v4013_v12  ;;  %3602 = vmatprep.mubr.bf16.mxu1 %v4016_v14 }
 0x107   : > { %3416 = vmatprep.subr.bf16.mxu0 %v4014_v15  ;;  %2029 = vmatprep.mubr.bf16.mxu0 %v4409_v39  ;;  %v4020_v39 = vld [vmem:[%s5263_s1 + $0x218] sm:$0xff]  }
 0x10a   : > { %3417 = vmatpush3.bf16.msra.mxu0 %v4015_v16 }
 0x10d   : > { %3603 = vmatmul.mubr.bf16.vlgmr.msra.gmra.mrb[80].mxu1 %v3990_v38  ;;  %2030 = vmatmul.mubr.bf16.vlgmr.msra.gmra.mrb[80].mxu0 %v4422_v42  ;;  %v4021_v42 = vld [vmem:[%s5263_s1 + $0x220] sm:$0xff]  }
 0x10e   : > { %3635 = vmatpush3.bf16.msra.mxu1 %v4603_v24  ;;  %3606 = vmatprep.mubr.bf16.mxu1 %v4668_v41 }
 0x10f   : > { %2037 = vmatprep.mubr.bf16.mxu0 %v4439_v47  ;;  %3636 = vmatprep.subr.bf16.mxu1 %v4018_v19  ;;  %v4022_v47 = vld [vmem:[%s5263_s1 + $0x228] sm:$0xff]  }
 0x112   : > { %3637 = vmatpush3.bf16.msra.mxu1 %v4018_v19 }
 0x113   : > { %3638 = vmatprep.subr.bf16.mxu1 %v4019_v43 }
 0x115   : > { %3607 = vmatmul.mubr.bf16.gmra.mrb[84].mxu1 %v4674_v45  ;;  %2038 = vmatmul.mubr.bf16.gmra.mrb[84].mxu0 %v4454_v50  ;;  %v4023_v50 = vld [vmem:[%s5263_s1 + $0x230] sm:$0xff]  }
 0x116   : > { %3610 = vmatprep.mubr.bf16.mxu1 %v4690_v53  ;;  %2045 = vmatprep.mubr.bf16.mxu0 %v4471_v55  ;;  %v4024_v55 = vld [vmem:[%s5263_s1 + $0x238] sm:$0xff]  }
 0x117   : > { %3639 = vmatpush3.bf16.msra.mxu1 %v4019_v43 }
 0x118   : > { %3640 = vmatprep.subr.bf16.mxu1 %v4020_v39 }
 0x11b   : > { %3641 = vmatpush3.bf16.msra.mxu1 %v4020_v39 }
 0x11c   : > { %3642 = vmatprep.subr.bf16.mxu1 %v4021_v42 }
 0x11d   : > { %3611 = vmatmul.mubr.bf16.gmra.mrb[88].mxu1 %v4696_v57  ;;  %2046 = vmatmul.mubr.bf16.gmra.mrb[88].mxu0 %v4488_v59 }
 0x11e   : > { %3614 = vmatprep.mubr.bf16.mxu1 %v4712_v0  ;;  %2053 = vmatprep.mubr.bf16.mxu0 %v4502_v63 }
 0x11f   : > { %3643 = vmatpush3.bf16.msra.mxu1 %v4021_v42 }
 0x120   : > { %3644 = vmatprep.subr.bf16.mxu1 %v4022_v47 }
 0x123   : > { %3645 = vmatpush3.bf16.msra.mxu1 %v4022_v47 }
 0x124   : > { %3646 = vmatprep.subr.bf16.mxu1 %v4023_v50 }
 0x125   : > { %3615 = vmatmul.mubr.bf16.gmra.mrb[92].mxu1 %v4718_v2  ;;  %2054 = vmatmul.mubr.bf16.gmra.mrb[92].mxu0 %v4518_v4 }
 0x126   : > { %3618 = vmatprep.mubr.bf16.mxu1 %v4734_v10  ;;  %2061 = vmatprep.mubr.bf16.mxu0 %v4522_v5 }
 0x127   : > { %3647 = vmatpush3.bf16.msra.mxu1 %v4023_v50 }
 0x128   : > { %3648 = vmatprep.subr.bf16.mxu1 %v4024_v55 }
 0x12b   : > { %3649 = vmatpush3.bf16.msra.mxu1 %v4024_v55 }
 0x12d   : > { %3619 = vmatmul.mubr.bf16.gmra.mrb[0].mxu1 %v4382_v32  ;;  %2062 = vmatmul.mubr.bf16.gmra.mrb[96].mxu0 %v4536_v8 }
 0x12e   : > { %3622 = vmatprep.mubr.bf16.mxu1 %v4398_v36  ;;  %2069 = vmatprep.mubr.bf16.mxu0 %v4540_v9 }
 0x135   : > { %3623 = vmatmul.mubr.bf16.gmra.mrb[4].mxu1 %v4412_v40  ;;  %2070 = vmatmul.mubr.bf16.gmra.mrb[100].mxu0 %v4550_v11 }
 0x136   : > { %3626 = vmatprep.mubr.bf16.mxu1 %v4429_v44  ;;  %2077 = vmatprep.mubr.bf16.mxu0 %v4556_v13 }
 0x13d   : > { %3627 = vmatmul.mubr.bf16.gmra.mrb[8].mxu1 %v4443_v48  ;;  %2078 = vmatmul.mubr.bf16.gmra.mrb[104].mxu0 %v4572_v17 }
 0x13e   : > { %3630 = vmatprep.mubr.bf16.mxu1 %v4457_v51  ;;  %2085 = vmatprep.mubr.bf16.mxu0 %v4575_v18 }
 0x140   : > { %v3146_v32 = vpop.f32.mrb[0].mxu0 }
 0x141   : > { %v3147_v59 = vpop.f32.mrb[1].mxu0 }
 0x142   : > { %v4798_v63 = vadd.f32 %v3147_v59, %v3146_v32  ;;  %v3149_v4 = vpop.f32.mrb[2].mxu0 }
 0x143   : > { %v3150_v5 = vpop.f32.mrb[3].mxu0 }
 0x144   : > { %v4800_v8 = vadd.f32 %v3150_v5, %v3149_v4 }
 0x145   : > { %3631 = vmatmul.mubr.bf16.gmra.mrb[12].mxu1 %v4474_v56  ;;  %2086 = vmatmul.mubr.bf16.gmra.mrb[108].mxu0 %v4585_v20 }
 0x146   : > { %2093 = vmatprep.mubr.bf16.mxu0 %v4588_v21  ;;  %3650 = vmatprep.mubr.bf16.mxu1 %v4668_v41 }
 0x148   : > { %v3152_v9 = vpop.f32.mrb[4].mxu0 }
 0x149   : > { %v3153_v11 = vpop.f32.mrb[5].mxu0 }
 0x14a   : > { %v4806_v13 = vadd.f32 %v3153_v11, %v3152_v9  ;;  %v3155_v17 = vpop.f32.mrb[6].mxu0 }
 0x14b   : > { %v3156_v18 = vpop.f32.mrb[7].mxu0 }
 0x14c   : > { %v4808_v24 = vadd.f32 %v3156_v18, %v3155_v17 }
 0x14d   : > { %2094 = vmatmul.mubr.bf16.gmra.mrb[112].mxu0 %v4595_v22  ;;  %3651 = vmatmul.mubr.bf16.vlgmr.msra.gmra.mrb[80].mxu1 %v4674_v45 }
 0x14e   : > { %2101 = vmatprep.mubr.bf16.mxu0 %v4598_v23  ;;  %3654 = vmatprep.mubr.bf16.mxu1 %v4690_v53 }
 0x150   : > { %v3158_v20 = vpop.f32.mrb[8].mxu0 }
 0x151   : > { %v3159_v21 = vpop.f32.mrb[9].mxu0 }
 0x152   : > { %v4814_v38 = vadd.f32 %v3159_v21, %v3158_v20  ;;  %v3161_v41 = vpop.f32.mrb[10].mxu0 }
 0x153   : > { %v3162_v46 = vpop.f32.mrb[11].mxu0 }
 0x154   : > { %v4816_v49 = vadd.f32 %v3162_v46, %v3161_v41 }
 0x155   : > { %2102 = vmatmul.mubr.bf16.gmra.mrb[116].mxu0 %v4611_v25  ;;  %3655 = vmatmul.mubr.bf16.gmra.mrb[84].mxu1 %v4696_v57 }
 0x156   : > { %2109 = vmatprep.mubr.bf16.mxu0 %v4614_v26  ;;  %3658 = vmatprep.mubr.bf16.mxu1 %v4712_v0 }
 0x158   : > { %v3164_v22 = vpop.f32.mrb[12].mxu0 }
 0x159   : > { %v3165_v23 = vpop.f32.mrb[13].mxu0 }
 0x15a   : > { %v4822_v45 = vadd.f32 %v3165_v23, %v3164_v22  ;;  %v3167_v52 = vpop.f32.mrb[14].mxu0  ;;  %v4025_v22 = vld [vmem:[%s4375_s23 + $0x19c] ss:$12 sps:$4 sm:$0xff]  }
 0x15b   : > { %v3168_v53 = vpop.f32.mrb[15].mxu0 }
 0x15c   : > { %v4824_v54 = vadd.f32 %v3168_v53, %v3167_v52 }
 0x15d   : > { %2110 = vmatmul.mubr.bf16.gmra.mrb[120].mxu0 %v4621_v27  ;;  %3659 = vmatmul.mubr.bf16.gmra.mrb[88].mxu1 %v4718_v2 }
 0x15e   : > { %2117 = vmatprep.mubr.bf16.mxu0 %v4624_v28  ;;  %3662 = vmatprep.mubr.bf16.mxu1 %v4734_v10  ;;  %v4029_v28 = vld [vmem:[%s4375_s23 + $0xe0] ss:$12 sps:$4 sm:$0xff]  }
 0x160   : > { %v3170_v25 = vpop.f32.mrb[16].mxu0  ;;  %v3282_v26 = vpop.f32.mrb[16].mxu1 }
 0x161   : > { %v3171_v57 = vpop.f32.mrb[17].mxu0  ;;  %v3283_v58 = vpop.f32.mrb[17].mxu1 }
 0x162   : > { %v4830_v61 = vadd.f32 %v3171_v57, %v3170_v25  ;;  %v4832_v62 = vadd.f32 %v3283_v58, %v3282_v26  ;;  %v3173_v0 = vpop.f32.mrb[18].mxu0  ;;  %v3285_v1 = vpop.f32.mrb[18].mxu1  ;;  %v4027_v26 = vld [vmem:[%s4375_s23 + $0x198] ss:$12 sps:$4 sm:$0xff]   ;;  %v4028_v57 = vld [vmem:[%s4375_s23 + $0x1a0] ss:$12 sps:$4 sm:$0xff]  }
 0x163   : > { %v3174_v3 = vpop.f32.mrb[19].mxu0  ;;  %v3286_v6 = vpop.f32.mrb[19].mxu1  ;;  %s2898_s23 = sshll.u32 %s370_s24, 8 }
 0x164   : > { %v4834_v27 = vadd.f32 %v3174_v3, %v3173_v0  ;;  %v4836_v2 = vadd.f32 %v3286_v6, %v3285_v1  ;;  %s5065_s18 = scalar_lea.vmem [#allocation3], %s2898_s23 }
 0x165   : > { %2118 = vmatmul.mubr.bf16.gmra.mrb[124].mxu0 %v4631_v29  ;;  %3663 = vmatmul.mubr.bf16.gmra.mrb[92].mxu1 %v4029_v28  ;;  %s407_s24 = scalar_select %p406_p10, %s4100_s21, 1 }
 0x166   : > { %2125 = vmatprep.mubr.bf16.mxu0 %v4634_v30  ;;  %3666 = vmatprep.mubr.bf16.mxu1 %v4398_v36 }
 0x167   : > { %s2899_s17 = sshll.u32 %s407_s24, 3 }
 0x168   : > { %v3176_v7 = vpop.f32.mrb[20].mxu0  ;;  %v3288_v10 = vpop.f32.mrb[20].mxu1  ;;  %s409_s28 = scalar_lea.vmem %s5266_s4, %s2899_s17  ;;  %s413_s6 = scalar_lea.vmem %s5267_s5, %s2899_s17 }
 0x169   : > { %v3177_v12 = vpop.f32.mrb[21].mxu0  ;;  %v3289_v14 = vpop.f32.mrb[21].mxu1 }
 0x16a   : > { %v4842_v15 = vadd.f32 %v3177_v12, %v3176_v7  ;;  %v4844_v16 = vadd.f32 %v3289_v14, %v3288_v10  ;;  %v3179_v19 = vpop.f32.mrb[22].mxu0  ;;  %v3291_v43 = vpop.f32.mrb[22].mxu1 }
 0x16b   : > { %v3180_v39 = vpop.f32.mrb[23].mxu0  ;;  %v3292_v42 = vpop.f32.mrb[23].mxu1 }
 0x16c   : > { %v4846_v47 = vadd.f32 %v3180_v39, %v3179_v19  ;;  %v4848_v29 = vadd.f32 %v3292_v42, %v3291_v43 }
 0x16d   : > { %2126 = vmatmul.mubr.bf16.gmra.mrb[128].mxu0 %v4641_v31  ;;  %3667 = vmatmul.mubr.bf16.gmra.mrb[0].mxu1 %v4412_v40 }
 0x16e   : > { %2133 = vmatprep.mubr.bf16.mxu0 %v4644_v33  ;;  %3670 = vmatprep.mubr.bf16.mxu1 %v4429_v44 }
 0x170   : > { %v3182_v36 = vpop.f32.mrb[24].mxu0  ;;  %v3294_v30 = vpop.f32.mrb[24].mxu1 }
 0x171   : > { %v3183_v50 = vpop.f32.mrb[25].mxu0  ;;  %v3295_v55 = vpop.f32.mrb[25].mxu1 }
 0x172   : > { %v4854_v32 = vadd.f32 %v3183_v50, %v3182_v36  ;;  %v4856_v59 = vadd.f32 %v3295_v55, %v3294_v30  ;;  %v3185_v4 = vpop.f32.mrb[26].mxu0  ;;  %v3297_v5 = vpop.f32.mrb[26].mxu1 }
 0x173   : > { %v3186_v9 = vpop.f32.mrb[27].mxu0  ;;  %v3298_v11 = vpop.f32.mrb[27].mxu1 }
 0x174   : > { %v4858_v31 = vadd.f32 %v3186_v9, %v3185_v4  ;;  %v4860_v40 = vadd.f32 %v3298_v11, %v3297_v5 }
 0x175   : > { %2134 = vmatmul.mubr.bf16.gmra.mrb[132].mxu0 %v4651_v34  ;;  %3671 = vmatmul.mubr.bf16.gmra.mrb[4].mxu1 %v4443_v48 }
 0x176   : > { %2141 = vmatprep.mubr.bf16.mxu0 %v4654_v35  ;;  %3674 = vmatprep.mubr.bf16.mxu1 %v4457_v51 }
 0x178   : > { %v3188_v44 = vpop.f32.mrb[28].mxu0  ;;  %v3300_v33 = vpop.f32.mrb[28].mxu1 }
 0x179   : > { %v3189_v17 = vpop.f32.mrb[29].mxu0  ;;  %v3301_v18 = vpop.f32.mrb[29].mxu1 }
 0x17a   : > { %v4866_v20 = vadd.f32 %v3189_v17, %v3188_v44  ;;  %v4868_v21 = vadd.f32 %v3301_v18, %v3300_v33  ;;  %v3191_v41 = vpop.f32.mrb[30].mxu0  ;;  %v3303_v46 = vpop.f32.mrb[30].mxu1 }
 0x17b   : > { %v3192_v34 = vpop.f32.mrb[31].mxu0  ;;  %v3304_v23 = vpop.f32.mrb[31].mxu1 }
 0x17c   : > { %v4871_v48 = vadd.f32 %v3192_v34, %v3191_v41  ;;  %v4873_v35 = vadd.f32 %v3304_v23, %v3303_v46 }
 0x17d   : > { %2142 = vmatmul.mubr.bf16.gmra.mrb[136].mxu0 %v4661_v37  ;;  %3675 = vmatmul.mubr.bf16.gmra.mrb[8].mxu1 %v4474_v56 }
 0x17e   : > { %2149 = vmatprep.mubr.bf16.mxu0 %v4025_v22  ;;  %3678 = vmatprep.mubr.bf16.mxu1 %v4492_v60 }
 0x180   : > { %v3194_v51 = vpop.f32.mrb[32].mxu0  ;;  %v3306_v52 = vpop.f32.mrb[32].mxu1 }
 0x181   : > { %v3195_v53 = vpop.f32.mrb[33].mxu0  ;;  %v3307_v25 = vpop.f32.mrb[33].mxu1 }
 0x182   : > { %v3196_v58 = vadd.f32 %v3195_v53, %v3194_v51  ;;  %v4880_v0 = vadd.f32 %v3307_v25, %v3306_v52  ;;  %v3197_v1 = vpop.f32.mrb[34].mxu0  ;;  %v3309_v3 = vpop.f32.mrb[34].mxu1 }
 0x183   : > { %v3198_v6 = vpop.f32.mrb[35].mxu0  ;;  %v3310_v28 = vpop.f32.mrb[35].mxu1 }
 0x184   : > { %v3199_v7 = vadd.f32 %v3198_v6, %v3197_v1  ;;  %v4882_v37 = vadd.f32 %v3310_v28, %v3309_v3 }
 0x185   : > { %2150 = vmatmul.mubr.bf16.gmra.mrb[140].mxu0 %v4027_v26  ;;  %3679 = vmatmul.mubr.bf16.gmra.mrb[12].mxu1 %v4028_v57 }
 0x188   : > { %v3200_v56 = vpop.f32.mrb[36].mxu0  ;;  %v3312_v60 = vpop.f32.mrb[36].mxu1 }
 0x189   : > { %v3201_v10 = vpop.f32.mrb[37].mxu0  ;;  %v3313_v12 = vpop.f32.mrb[37].mxu1 }
 0x18a   : > { %v3202_v14 = vadd.f32 %v3201_v10, %v3200_v56  ;;  %v4884_v19 = vadd.f32 %v3313_v12, %v3312_v60  ;;  %v3203_v43 = vpop.f32.mrb[38].mxu0  ;;  %v3315_v39 = vpop.f32.mrb[38].mxu1 }
 0x18b   : > { %v3204_v42 = vpop.f32.mrb[39].mxu0  ;;  %v3316_v36 = vpop.f32.mrb[39].mxu1 }
 0x18c   : > { %v3205_v30 = vadd.f32 %v3204_v42, %v3203_v43  ;;  %v4886_v50 = vadd.f32 %v3316_v36, %v3315_v39 }
 0x190   : > { %v3206_v55 = vpop.f32.mrb[40].mxu0  ;;  %v3318_v4 = vpop.f32.mrb[40].mxu1 }
 0x191   : > { %v3207_v5 = vpop.f32.mrb[41].mxu0  ;;  %v3319_v9 = vpop.f32.mrb[41].mxu1 }
 0x192   : > { %v3208_v11 = vadd.f32 %v3207_v5, %v3206_v55  ;;  %v4888_v44 = vadd.f32 %v3319_v9, %v3318_v4  ;;  %v3209_v33 = vpop.f32.mrb[42].mxu0  ;;  %v3321_v17 = vpop.f32.mrb[42].mxu1 }
 0x193   : > { %v3210_v18 = vpop.f32.mrb[43].mxu0  ;;  %v3322_v41 = vpop.f32.mrb[43].mxu1 }
 0x194   : > { %v3211_v46 = vadd.f32 %v3210_v18, %v3209_v33  ;;  %v4890_v22 = vadd.f32 %v3322_v41, %v3321_v17 }
 0x198   : > { %v3212_v34 = vpop.f32.mrb[44].mxu0  ;;  %v3324_v23 = vpop.f32.mrb[44].mxu1 }
 0x199   : > { %v3213_v51 = vpop.f32.mrb[45].mxu0  ;;  %v3325_v52 = vpop.f32.mrb[45].mxu1 }
 0x19a   : > { %v3214_v53 = vadd.f32 %v3213_v51, %v3212_v34  ;;  %v4892_v25 = vadd.f32 %v3325_v52, %v3324_v23  ;;  %v3215_v26 = vpop.f32.mrb[46].mxu0  ;;  %v3327_v57 = vpop.f32.mrb[46].mxu1 }
 0x19b   : > { %v3216_v1 = vpop.f32.mrb[47].mxu0  ;;  %v3328_v3 = vpop.f32.mrb[47].mxu1 }
 0x19c   : > { %v3217_v6 = vadd.f32 %v3216_v1, %v3215_v26  ;;  %v4894_v28 = vadd.f32 %v3328_v3, %v3327_v57 }
 0x1a0   : > { %v3218_v56 = vpop.f32.mrb[48].mxu0  ;;  %v3330_v60 = vpop.f32.mrb[48].mxu1 }
 0x1a1   : > { %v3219_v10 = vpop.f32.mrb[49].mxu0  ;;  %v3331_v12 = vpop.f32.mrb[49].mxu1 }
 0x1a2   : > { %v4896_v43 = vadd.f32 %v3219_v10, %v3218_v56  ;;  %v3332_v39 = vadd.f32 %v3331_v12, %v3330_v60  ;;  %v3221_v42 = vpop.f32.mrb[50].mxu0  ;;  %v3333_v36 = vpop.f32.mrb[50].mxu1 }
 0x1a3   : > { %v3222_v55 = vpop.f32.mrb[51].mxu0  ;;  %v3334_v4 = vpop.f32.mrb[51].mxu1 }
 0x1a4   : > { %v4898_v5 = vadd.f32 %v3332_v39, %v3196_v58  ;;  %v4900_v9 = vadd.f32 %v3222_v55, %v3221_v42  ;;  %v3335_v33 = vadd.f32 %v3334_v4, %v3333_v36 }
 0x1a6   : > { %v4902_v17 = vadd.f32 %v3335_v33, %v3199_v7 }
 0x1a8   : > { %v3224_v18 = vpop.f32.mrb[52].mxu0  ;;  %v3336_v41 = vpop.f32.mrb[52].mxu1 }
 0x1a9   : > { %v3225_v34 = vpop.f32.mrb[53].mxu0  ;;  %v3337_v23 = vpop.f32.mrb[53].mxu1 }
 0x1aa   : > { %v4904_v51 = vadd.f32 %v3225_v34, %v3224_v18  ;;  %v3338_v52 = vadd.f32 %v3337_v23, %v3336_v41  ;;  %v3227_v26 = vpop.f32.mrb[54].mxu0  ;;  %v3339_v57 = vpop.f32.mrb[54].mxu1 }
 0x1ab   : > { %v3228_v1 = vpop.f32.mrb[55].mxu0  ;;  %v3340_v3 = vpop.f32.mrb[55].mxu1 }
 0x1ac   : > { %v4906_v56 = vadd.f32 %v3338_v52, %v3202_v14  ;;  %v4908_v58 = vadd.f32 %v3228_v1, %v3227_v26  ;;  %v3341_v60 = vadd.f32 %v3340_v3, %v3339_v57 }
 0x1ae   : > { %v4910_v10 = vadd.f32 %v3341_v60, %v3205_v30 }
 0x1b0   : > { %5269 = vst [vmem:[#allocation4_spill] sm:$0xff] %v4910_v10  ;;  %v3230_v7 = vpop.f32.mrb[56].mxu0  ;;  %v3342_v12 = vpop.f32.mrb[56].mxu1 }
 0x1b1   : > { %v3231_v39 = vpop.f32.mrb[57].mxu0  ;;  %v3343_v42 = vpop.f32.mrb[57].mxu1 }
 0x1b2   : > { %v4912_v36 = vadd.f32 %v3231_v39, %v3230_v7  ;;  %v3344_v55 = vadd.f32 %v3343_v42, %v3342_v12  ;;  %v3233_v4 = vpop.f32.mrb[58].mxu0  ;;  %v3345_v33 = vpop.f32.mrb[58].mxu1 }
 0x1b3   : > { %v3234_v18 = vpop.f32.mrb[59].mxu0  ;;  %v3346_v41 = vpop.f32.mrb[59].mxu1 }
 0x1b4   : > { %v4914_v34 = vadd.f32 %v3344_v55, %v3208_v11  ;;  %v4916_v14 = vadd.f32 %v3234_v18, %v3233_v4  ;;  %v3347_v23 = vadd.f32 %v3346_v41, %v3345_v33 }
 0x1b6   : > { %v4918_v52 = vadd.f32 %v3347_v23, %v3211_v46 }
 0x1b8   : > { %5270 = vst [vmem:[#allocation5_spill] sm:$0xff] %v4918_v52  ;;  %v3236_v30 = vpop.f32.mrb[60].mxu0  ;;  %v3348_v26 = vpop.f32.mrb[60].mxu1 }
 0x1b9   : > { %v3237_v57 = vpop.f32.mrb[61].mxu0  ;;  %v3349_v1 = vpop.f32.mrb[61].mxu1 }
 0x1ba   : > { %v4920_v3 = vadd.f32 %v3237_v57, %v3236_v30  ;;  %v3350_v60 = vadd.f32 %v3349_v1, %v3348_v26  ;;  %v3239_v7 = vpop.f32.mrb[62].mxu0  ;;  %v3351_v12 = vpop.f32.mrb[62].mxu1 }
 0x1bb   : > { %v3240_v39 = vpop.f32.mrb[63].mxu0  ;;  %v3352_v42 = vpop.f32.mrb[63].mxu1 }
 0x1bc   : > { %v4922_v10 = vadd.f32 %v3350_v60, %v3214_v53  ;;  %v4924_v11 = vadd.f32 %v3240_v39, %v3239_v7  ;;  %v3353_v55 = vadd.f32 %v3352_v42, %v3351_v12 }
 0x1be   : > { %v4926_v4 = vadd.f32 %v3353_v55, %v3217_v6 }
 0x1c0   : > { %v3556_v46 = vpop.f32.mrb[64].mxu0  ;;  %v3354_v33 = vpop.f32.mrb[64].mxu1 }
 0x1c1   : > { %v1188_v18 = vadd.f32 %v3556_v46, %v4806_v13  ;;  %v1179_v41 = vpop.f32.mrb[65].mxu0  ;;  %v3355_v23 = vpop.f32.mrb[65].mxu1 }
 0x1c2   : > { %v1180_v30 = vadd.f32 %v4798_v63, %v1179_v41  ;;  %v3356_v26 = vadd.f32 %v3355_v23, %v3354_v33  ;;  %v3557_v57 = vpop.f32.mrb[66].mxu0  ;;  %v3357_v1 = vpop.f32.mrb[66].mxu1 }
 0x1c3   : > { %v4931_v52 = vadd.f32 %v4844_v16, %v1188_v18  ;;  %v1191_v53 = vadd.f32 %v3557_v57, %v4808_v24  ;;  %v1182_v60 = vpop.f32.mrb[67].mxu0  ;;  %v3358_v7 = vpop.f32.mrb[67].mxu1 }
 0x1c4   : > { %v4935_v6 = vadd.f32 %v4832_v62, %v1180_v30  ;;  %v4938_v12 = vadd.f32 %v3356_v26, %v4896_v43  ;;  %v1183_v13 = vadd.f32 %v4800_v8, %v1182_v60  ;;  %v3359_v39 = vadd.f32 %v3358_v7, %v3357_v1 }
 0x1c5   : > { %v4942_v63 = vadd.f32 %v4848_v29, %v1191_v53 }
 0x1c6   : > { %v4945_v42 = vadd.f32 %v4836_v2, %v1183_v13  ;;  %v4948_v16 = vadd.f32 %v3359_v39, %v4900_v9 }
 0x1c8   : > { %v3560_v24 = vpop.f32.mrb[68].mxu0  ;;  %v3360_v55 = vpop.f32.mrb[68].mxu1 }
 0x1c9   : > { %v1204_v62 = vadd.f32 %v3560_v24, %v4822_v45  ;;  %v1195_v46 = vpop.f32.mrb[69].mxu0  ;;  %v3361_v33 = vpop.f32.mrb[69].mxu1 }
 0x1ca   : > { %v1196_v43 = vadd.f32 %v4814_v38, %v1195_v46  ;;  %v3362_v18 = vadd.f32 %v3361_v33, %v3360_v55  ;;  %v3561_v8 = vpop.f32.mrb[70].mxu0  ;;  %v3363_v41 = vpop.f32.mrb[70].mxu1 }
 0x1cb   : > { %v4953_v29 = vadd.f32 %v4868_v21, %v1204_v62  ;;  %v1207_v2 = vadd.f32 %v3561_v8, %v4824_v54  ;;  %v1198_v23 = vpop.f32.mrb[71].mxu0  ;;  %v3364_v30 = vpop.f32.mrb[71].mxu1 }
 0x1cc   : > { %v4957_v9 = vadd.f32 %v4856_v59, %v1196_v43  ;;  %v4960_v26 = vadd.f32 %v3362_v18, %v4904_v51  ;;  %v1199_v45 = vadd.f32 %v4816_v49, %v1198_v23  ;;  %v3365_v57 = vadd.f32 %v3364_v30, %v3363_v41 }
 0x1cd   : > { %v4964_v38 = vadd.f32 %v4873_v35, %v1207_v2 }
 0x1ce   : > { %v4967_v1 = vadd.f32 %v4860_v40, %v1199_v45  ;;  %v4970_v21 = vadd.f32 %v3365_v57, %v4908_v58 }
 0x1d0   : > { %v3564_v54 = vpop.f32.mrb[72].mxu0  ;;  %v3366_v53 = vpop.f32.mrb[72].mxu1 }
 0x1d1   : > { %v1220_v59 = vadd.f32 %v3564_v54, %v4842_v15  ;;  %v1211_v60 = vpop.f32.mrb[73].mxu0  ;;  %v3367_v7 = vpop.f32.mrb[73].mxu1 }
 0x1d2   : > { %v1212_v51 = vadd.f32 %v4830_v61, %v1211_v60  ;;  %v3368_v13 = vadd.f32 %v3367_v7, %v3366_v53  ;;  %v3565_v49 = vpop.f32.mrb[74].mxu0  ;;  %v3369_v39 = vpop.f32.mrb[74].mxu1 }
 0x1d3   : > { %v4975_v35 = vadd.f32 %v4884_v19, %v1220_v59  ;;  %v1223_v40 = vadd.f32 %v3565_v49, %v4846_v47  ;;  %v1214_v24 = vpop.f32.mrb[75].mxu0  ;;  %v3370_v55 = vpop.f32.mrb[75].mxu1 }
 0x1d4   : > { %v4979_v58 = vadd.f32 %v4880_v0, %v1212_v51  ;;  %v4982_v62 = vadd.f32 %v3368_v13, %v4912_v36  ;;  %v1215_v15 = vadd.f32 %v4834_v27, %v1214_v24  ;;  %v3371_v46 = vadd.f32 %v3370_v55, %v3369_v39 }
 0x1d5   : > { %v4986_v61 = vadd.f32 %v4886_v50, %v1223_v40 }
 0x1d6   : > { %v1536_v33 = vadd.f32 %v4882_v37, %v1215_v15  ;;  %v4990_v19 = vadd.f32 %v3371_v46, %v4916_v14 }
 0x1d8   : > { %v3568_v47 = vpop.f32.mrb[76].mxu0  ;;  %v3372_v43 = vpop.f32.mrb[76].mxu1 }
 0x1d9   : > { %v1236_v18 = vadd.f32 %v3568_v47, %v4866_v20  ;;  %v1227_v0 = vpop.f32.mrb[77].mxu0  ;;  %v3373_v8 = vpop.f32.mrb[77].mxu1 }
 0x1da   : > { %v1228_v36 = vadd.f32 %v4854_v32, %v1227_v0  ;;  %v3374_v41 = vadd.f32 %v3373_v8, %v3372_v43  ;;  %v3569_v2 = vpop.f32.mrb[78].mxu0  ;;  %v3375_v27 = vpop.f32.mrb[78].mxu1 }
 0x1db   : > { %v4995_v23 = vadd.f32 %v4892_v25, %v1236_v18  ;;  %v1239_v50 = vadd.f32 %v3569_v2, %v4871_v48  ;;  %v1230_v37 = vpop.f32.mrb[79].mxu0  ;;  %v3376_v30 = vpop.f32.mrb[79].mxu1 }
 0x1dc   : > { %v1549_v14 = vadd.f32 %v4888_v44, %v1228_v36  ;;  %v5000_v45 = vadd.f32 %v3374_v41, %v4920_v3  ;;  %v1231_v20 = vadd.f32 %v4858_v31, %v1230_v37  ;;  %v3377_v57 = vadd.f32 %v3376_v30, %v3375_v27 }
 0x1dd   : > { %v5004_v32 = vadd.f32 %v4894_v28, %v1239_v50 }
 0x1de   : > { %v1552_v54 = vadd.f32 %v4890_v22, %v1231_v20  ;;  %v5008_v25 = vadd.f32 %v3377_v57, %v4924_v11 }
 0x1e0   : > { %v3418_v53 = vpop.f32.mrb[80].mxu0 }
 0x1e1   : > { %v3419_v48 = vpop.f32.mrb[81].mxu0 }
 0x1e2   : > { %v3420_v59 = vadd.f32 %v3419_v48, %v3418_v53  ;;  %v3421_v60 = vpop.f32.mrb[82].mxu0 }
 0x1e3   : > { %v3422_v7 = vpop.f32.mrb[83].mxu0 }
 0x1e4   : > { %v3423_v44 = vadd.f32 %v3422_v7, %v3421_v60  ;;  %v5011_v3 = vadd.f32 %v3420_v59, %v4935_v6 }
 0x1e6   : > { %v5014_v31 = vadd.f32 %v3423_v44, %v4945_v42 }
 0x1e8   : > { %v3424_v51 = vpop.f32.mrb[84].mxu0 }
 0x1e9   : > { %v3425_v28 = vpop.f32.mrb[85].mxu0 }
 0x1ea   : > { %v3426_v13 = vadd.f32 %v3425_v28, %v3424_v51  ;;  %v3427_v49 = vpop.f32.mrb[86].mxu0 }
 0x1eb   : > { %v3428_v22 = vpop.f32.mrb[87].mxu0 }
 0x1ec   : > { %v3429_v39 = vadd.f32 %v3428_v22, %v3427_v49  ;;  %v3700_v11 = vadd.f32 %v3426_v13, %v4931_v52 }
 0x1ee   : > { %v3708_v40 = vadd.f32 %v3429_v39, %v4942_v63 }
 0x1f0   : > { %v3430_v24 = vpop.f32.mrb[88].mxu0 }
 0x1f1   : > { %v3431_v55 = vpop.f32.mrb[89].mxu0 }
 0x1f2   : > { %v3432_v15 = vadd.f32 %v3431_v55, %v3430_v24  ;;  %v3433_v46 = vpop.f32.mrb[90].mxu0 }
 0x1f3   : > { %v3434_v47 = vpop.f32.mrb[91].mxu0 }
 0x1f4   : > { %v3435_v6 = vadd.f32 %v3434_v47, %v3433_v46  ;;  %v5019_v43 = vadd.f32 %v3432_v15, %v4957_v9 }
 0x1f6   : > { %v5022_v42 = vadd.f32 %v3435_v6, %v4967_v1 }
 0x1f8   : > { %v3436_v18 = vpop.f32.mrb[92].mxu0 }
 0x1f9   : > { %v3437_v0 = vpop.f32.mrb[93].mxu0 }
 0x1fa   : > { %v3438_v8 = vadd.f32 %v3437_v0, %v3436_v18  ;;  %v3439_v36 = vpop.f32.mrb[94].mxu0 }
 0x1fb   : > { %v3440_v41 = vpop.f32.mrb[95].mxu0 }
 0x1fc   : > { %v3441_v52 = vadd.f32 %v3440_v41, %v3439_v36  ;;  %v5025_v63 = vadd.f32 %v3438_v8, %v4953_v29 }
 0x1fe   : > { %v5028_v2 = vadd.f32 %v3441_v52, %v4964_v38 }
 0x200   : > { %v3442_v27 = vpop.f32.mrb[96].mxu0 }
 0x201   : > { %v3443_v50 = vpop.f32.mrb[97].mxu0 }
 0x202   : > { %v3444_v37 = vadd.f32 %v3443_v50, %v3442_v27  ;;  %v3445_v9 = vpop.f32.mrb[98].mxu0 }
 0x203   : > { %v3446_v30 = vpop.f32.mrb[99].mxu0 }
 0x204   : > { %v3447_v20 = vadd.f32 %v3446_v30, %v3445_v9  ;;  %v5031_v1 = vadd.f32 %v3444_v37, %v4979_v58 }
 0x206   : > { %v5033_v57 = vadd.f32 %v3447_v20, %v1536_v33 }
 0x208   : > { %v3448_v53 = vpop.f32.mrb[100].mxu0 }
 0x209   : > { %v3449_v48 = vpop.f32.mrb[101].mxu0 }
 0x20a   : > { %v3450_v59 = vadd.f32 %v3449_v48, %v3448_v53  ;;  %v3451_v60 = vpop.f32.mrb[102].mxu0 }
 0x20b   : > { %v3452_v29 = vpop.f32.mrb[103].mxu0 }
 0x20c   : > { %v3453_v7 = vadd.f32 %v3452_v29, %v3451_v60  ;;  %v5036_v38 = vadd.f32 %v3450_v59, %v4975_v35 }
 0x20e   : > { %v5039_v44 = vadd.f32 %v3453_v7, %v4986_v61 }
 0x210   : > { %v3454_v51 = vpop.f32.mrb[104].mxu0 }
 0x211   : > { %v3455_v28 = vpop.f32.mrb[105].mxu0 }
 0x212   : > { %v3456_v13 = vadd.f32 %v3455_v28, %v3454_v51  ;;  %v3457_v58 = vpop.f32.mrb[106].mxu0 }
 0x213   : > { %v3458_v49 = vpop.f32.mrb[107].mxu0 }
 0x214   : > { %v3459_v33 = vadd.f32 %v3458_v49, %v3457_v58  ;;  %v5041_v22 = vadd.f32 %v3456_v13, %v1549_v14  ;;  %v5056_v14 = vld [vmem:[%s5264_s2] ss:$0 sm:$0xff] }
 0x216   : > { %v5043_v39 = vadd.f32 %v3459_v33, %v1552_v54 }
 0x218   : > { %v3460_v24 = vpop.f32.mrb[108].mxu0 }
 0x219   : > { %v3461_v55 = vpop.f32.mrb[109].mxu0 }
 0x21a   : > { %v3462_v15 = vadd.f32 %v3461_v55, %v3460_v24  ;;  %v3463_v46 = vpop.f32.mrb[110].mxu0 }
 0x21b   : > { %v3464_v35 = vpop.f32.mrb[111].mxu0 }
 0x21c   : > { %v3465_v47 = vadd.f32 %v3464_v35, %v3463_v46  ;;  %v5046_v61 = vadd.f32 %v3462_v15, %v4995_v23 }
 0x21e   : > { %v5049_v6 = vadd.f32 %v3465_v47, %v5004_v32 }
 0x220   : > { %v3466_v18 = vpop.f32.mrb[112].mxu0  ;;  %v3652_v0 = vpop.f32.mrb[80].mxu1 }
 0x221   : > { %v3701_v54 = vadd.f32 %v3700_v11, %v3652_v0  ;;  %v3467_v8 = vpop.f32.mrb[113].mxu0  ;;  %v2192_v36 = vpop.f32.mrb[81].mxu1 }
 0x222   : > { %v3468_v41 = vadd.f32 %v3467_v8, %v3466_v18  ;;  %v3705_v52 = vadd.f32 %v5011_v3, %v2192_v36  ;;  %v3469_v23 = vpop.f32.mrb[114].mxu0  ;;  %v3653_v27 = vpop.f32.mrb[82].mxu1 }
 0x223   : > { %v2360_v32 = vadd.f32 %v3701_v54, %v5056_v14  ;;  %v3709_v50 = vadd.f32 %v3708_v40, %v3653_v27  ;;  %v3470_v37 = vpop.f32.mrb[115].mxu0  ;;  %v2195_v9 = vpop.f32.mrb[83].mxu1  ;;  %v5271_v27 = vld [vmem:[#allocation4_spill] sm:$0xff] }
 0x224   : > { %v2358_v30 = vadd.f32 %v3705_v52, %v5056_v14  ;;  %v3471_v20 = vadd.f32 %v3470_v37, %v3469_v23  ;;  %v3713_v53 = vadd.f32 %v5014_v31, %v2195_v9  ;;  %v5063_v48 = vadd.f32 %v4898_v5, %v3468_v41 }
 0x225   : > { %2392 = vst [vmem:[%s5065_s18 + $0x10] sm:$0xff] %v2360_v32  ;;  %v2361_v3 = vadd.f32 %v3709_v50, %v5056_v14  ;;  %v2462_v7 = vmul.f32 %v2360_v32, %v2360_v32 }
 0x226   : > { %2390 = vst [vmem:[%s5065_s18] sm:$0xff] %v2358_v30  ;;  %v2359_v11 = vadd.f32 %v3713_v53, %v5056_v14  ;;  %v5072_v40 = vadd.f32 %v4902_v17, %v3471_v20  ;;  %v2460_v31 = vmul.f32 %v2358_v30, %v2358_v30 }
 0x227   : > { %2393 = vst [vmem:[%s5065_s18 + $0x18] sm:$0xff] %v2361_v3  ;;  %v2463_v15 = vmul.f32 %v2361_v3, %v2361_v3 }
 0x228   : > { %2391 = vst [vmem:[%s5065_s18 + $0x8] sm:$0xff] %v2359_v11  ;;  %v2422_v5 = vadd.f32 %v2359_v11, %v2358_v30  ;;  %v2461_v59 = vmul.f32 %v2359_v11, %v2359_v11  ;;  %v3472_v60 = vpop.f32.mrb[116].mxu0  ;;  %v3656_v29 = vpop.f32.mrb[84].mxu1 }
 0x229   : > { %v3717_v51 = vadd.f32 %v5025_v63, %v3656_v29  ;;  %v3473_v28 = vpop.f32.mrb[117].mxu0  ;;  %v2208_v13 = vpop.f32.mrb[85].mxu1 }
 0x22a   : > { %v2423_v58 = vadd.f32 %v2422_v5, %v2360_v32  ;;  %v2492_v49 = vadd.f32 %v2461_v59, %v2460_v31  ;;  %v3474_v33 = vadd.f32 %v3473_v28, %v3472_v60  ;;  %v3721_v24 = vadd.f32 %v5019_v43, %v2208_v13  ;;  %v3475_v17 = vpop.f32.mrb[118].mxu0  ;;  %v3657_v55 = vpop.f32.mrb[86].mxu1 }
 0x22b   : > { %v2364_v46 = vadd.f32 %v3717_v51, %v5056_v14  ;;  %v3725_v35 = vadd.f32 %v5028_v2, %v3657_v55  ;;  %v3476_v47 = vpop.f32.mrb[119].mxu0  ;;  %v2211_v18 = vpop.f32.mrb[87].mxu1 }
 0x22c   : > { %v2493_v63 = vadd.f32 %v2492_v49, %v2462_v7  ;;  %v2362_v0 = vadd.f32 %v3721_v24, %v5056_v14  ;;  %v2424_v54 = vadd.f32 %v2423_v58, %v2361_v3  ;;  %v3477_v8 = vadd.f32 %v3476_v47, %v3475_v17 }
 0x22d   : > { %2396 = vst [vmem:[%s5065_s18 + $0x30] sm:$0xff] %v2364_v46  ;;  %v2365_v43 = vadd.f32 %v3725_v35, %v5056_v14  ;;  %v3729_v36 = vadd.f32 %v5022_v42, %v2211_v18  ;;  %v5085_v41 = vadd.f32 %v4906_v56, %v3474_v33  ;;  %v2466_v11 = vmul.f32 %v2364_v46, %v2364_v46  ;;  %v5272_v35 = vld [vmem:[#allocation5_spill] sm:$0xff] }
 0x22e   : > { %2394 = vst [vmem:[%s5065_s18 + $0x20] sm:$0xff] %v2362_v0  ;;  %v2425_v52 = vadd.f32 %v2424_v54, %v2362_v0  ;;  %v2464_v2 = vmul.f32 %v2362_v0, %v2362_v0  ;;  %v2494_v23 = vadd.f32 %v2493_v63, %v2463_v15  ;;  %v5089_v32 = vadd.f32 %v5271_v27, %v3477_v8 }
 0x22f   : > { %2397 = vst [vmem:[%s5065_s18 + $0x38] sm:$0xff] %v2365_v43  ;;  %v2363_v50 = vadd.f32 %v3729_v36, %v5056_v14  ;;  %v2467_v24 = vmul.f32 %v2365_v43, %v2365_v43 }
 0x230   : > { %v2495_v37 = vadd.f32 %v2494_v23, %v2464_v2  ;;  %v3478_v9 = vpop.f32.mrb[120].mxu0  ;;  %v3660_v30 = vpop.f32.mrb[88].mxu1 }
 0x231   : > { %2395 = vst [vmem:[%s5065_s18 + $0x28] sm:$0xff] %v2363_v50  ;;  %v2426_v20 = vadd.f32 %v2425_v52, %v2363_v50  ;;  %v2465_v53 = vmul.f32 %v2363_v50, %v2363_v50  ;;  %v3733_v42 = vadd.f32 %v5036_v38, %v3660_v30  ;;  %v3479_v56 = vpop.f32.mrb[121].mxu0  ;;  %v2224_v3 = vpop.f32.mrb[89].mxu1 }
 0x232   : > { %v3480_v31 = vadd.f32 %v3479_v56, %v3478_v9  ;;  %v3737_v5 = vadd.f32 %v5031_v1, %v2224_v3  ;;  %v3481_v59 = vpop.f32.mrb[122].mxu0  ;;  %v3661_v60 = vpop.f32.mrb[90].mxu1 }
 0x233   : > { %v2427_v29 = vadd.f32 %v2426_v20, %v2364_v46  ;;  %v2496_v7 = vadd.f32 %v2495_v37, %v2465_v53  ;;  %v2368_v51 = vadd.f32 %v3733_v42, %v5056_v14  ;;  %v3741_v28 = vadd.f32 %v5039_v44, %v3661_v60  ;;  %v3482_v13 = vpop.f32.mrb[123].mxu0  ;;  %v2227_v58 = vpop.f32.mrb[91].mxu1 }
 0x234   : > { %v2366_v38 = vadd.f32 %v3737_v5, %v5056_v14  ;;  %v3483_v49 = vadd.f32 %v3482_v13, %v3481_v59  ;;  %v3745_v33 = vadd.f32 %v5033_v57, %v2227_v58  ;;  %v5101_v1 = vadd.f32 %v4914_v34, %v3480_v31 }
 0x235   : > { %v2497_v17 = vadd.f32 %v2496_v7, %v2466_v11  ;;  %2400 = vst [vmem:[%s5065_s18 + $0x50] sm:$0xff] %v2368_v51  ;;  %v2428_v55 = vadd.f32 %v2427_v29, %v2365_v43  ;;  %v2369_v15 = vadd.f32 %v3741_v28, %v5056_v14  ;;  %v2470_v2 = vmul.f32 %v2368_v51, %v2368_v51 }
 0x236   : > { %2398 = vst [vmem:[%s5065_s18 + $0x40] sm:$0xff] %v2366_v38  ;;  %v2468_v44 = vmul.f32 %v2366_v38, %v2366_v38  ;;  %v2367_v46 = vadd.f32 %v3745_v33, %v5056_v14  ;;  %v5108_v47 = vadd.f32 %v5272_v35, %v3483_v49 }
 0x237   : > { %v2429_v18 = vadd.f32 %v2428_v55, %v2366_v38  ;;  %v2498_v63 = vadd.f32 %v2497_v17, %v2467_v24  ;;  %2401 = vst [vmem:[%s5065_s18 + $0x58] sm:$0xff] %v2369_v15  ;;  %v2471_v31 = vmul.f32 %v2369_v15, %v2369_v15 }
 0x238   : > { %2399 = vst [vmem:[%s5065_s18 + $0x48] sm:$0xff] %v2367_v46  ;;  %v2469_v57 = vmul.f32 %v2367_v46, %v2367_v46  ;;  %v3484_v34 = vpop.f32.mrb[124].mxu0  ;;  %v3664_v0 = vpop.f32.mrb[92].mxu1 }
 0x239   : > { %v2499_v54 = vadd.f32 %v2498_v63, %v2468_v44  ;;  %v2430_v8 = vadd.f32 %v2429_v18, %v2367_v46  ;;  %v3749_v43 = vadd.f32 %v5046_v61, %v3664_v0  ;;  %v3485_v36 = vpop.f32.mrb[125].mxu0  ;;  %v2240_v52 = vpop.f32.mrb[93].mxu1 }
 0x23a   : > { %v3486_v23 = vadd.f32 %v3485_v36, %v3484_v34  ;;  %v3753_v27 = vadd.f32 %v5041_v22, %v2240_v52  ;;  %v3487_v50 = vpop.f32.mrb[126].mxu0  ;;  %v3665_v37 = vpop.f32.mrb[94].mxu1 }
 0x23b   : > { %v2431_v9 = vadd.f32 %v2430_v8, %v2368_v51  ;;  %v2500_v30 = vadd.f32 %v2499_v54, %v2469_v57  ;;  %v2372_v20 = vadd.f32 %v3749_v43, %v5056_v14  ;;  %v3757_v53 = vadd.f32 %v5049_v6, %v3665_v37  ;;  %v3488_v42 = vpop.f32.mrb[127].mxu0  ;;  %v2243_v56 = vpop.f32.mrb[95].mxu1 }
 0x23c   : > { %v2370_v61 = vadd.f32 %v3753_v27, %v5056_v14  ;;  %v3489_v3 = vadd.f32 %v3488_v42, %v3487_v50  ;;  %v3761_v11 = vadd.f32 %v5043_v39, %v2243_v56  ;;  %v3775_v22 = vadd.f32 %v4922_v10, %v3486_v23 }
 0x23d   : > { %v2501_v5 = vadd.f32 %v2500_v30, %v2470_v2  ;;  %2404 = vst [vmem:[%s5065_s18 + $0x70] sm:$0xff] %v2372_v20  ;;  %v2432_v59 = vadd.f32 %v2431_v9, %v2369_v15  ;;  %v2373_v60 = vadd.f32 %v3757_v53, %v5056_v14  ;;  %v2474_v17 = vmul.f32 %v2372_v20, %v2372_v20 }
 0x23e   : > { %2402 = vst [vmem:[%s5065_s18 + $0x60] sm:$0xff] %v2370_v61  ;;  %v2472_v29 = vmul.f32 %v2370_v61, %v2370_v61  ;;  %v2371_v6 = vadd.f32 %v3761_v11, %v5056_v14  ;;  %v3781_v7 = vadd.f32 %v4926_v4, %v3489_v3 }
 0x23f   : > { %v2433_v51 = vadd.f32 %v2432_v59, %v2370_v61  ;;  %v2502_v28 = vadd.f32 %v2501_v5, %v2471_v31  ;;  %2405 = vst [vmem:[%s5065_s18 + $0x78] sm:$0xff] %v2373_v60  ;;  %v2475_v8 = vmul.f32 %v2373_v60, %v2373_v60 }
 0x240   : > { %2403 = vst [vmem:[%s5065_s18 + $0x68] sm:$0xff] %v2371_v6  ;;  %v2473_v13 = vmul.f32 %v2371_v6, %v2371_v6  ;;  %v3490_v39 = vpop.f32.mrb[128].mxu0  ;;  %v3668_v58 = vpop.f32.mrb[0].mxu1 }
 0x241   : > { %v2503_v10 = vadd.f32 %v2502_v28, %v2472_v29  ;;  %v2434_v38 = vadd.f32 %v2433_v51, %v2371_v6  ;;  %v3764_v49 = vadd.f32 %v5085_v41, %v3668_v58  ;;  %v3491_v33 = vpop.f32.mrb[129].mxu0  ;;  %v2256_v24 = vpop.f32.mrb[1].mxu1 }
 0x242   : > { %v3492_v55 = vadd.f32 %v3491_v33, %v3490_v39  ;;  %v3767_v15 = vadd.f32 %v5063_v48, %v2256_v24  ;;  %v3493_v44 = vpop.f32.mrb[130].mxu0  ;;  %v3669_v4 = vpop.f32.mrb[2].mxu1 }
 0x243   : > { %v2435_v46 = vadd.f32 %v2434_v38, %v2372_v20  ;;  %v2504_v35 = vadd.f32 %v2503_v10, %v2473_v13  ;;  %v2376_v18 = vadd.f32 %v3764_v49, %v5056_v14  ;;  %v3770_v63 = vadd.f32 %v5089_v32, %v3669_v4  ;;  %v3494_v57 = vpop.f32.mrb[131].mxu0  ;;  %v2259_v34 = vpop.f32.mrb[3].mxu1 }
 0x244   : > { %v2374_v41 = vadd.f32 %v3767_v15, %v5056_v14  ;;  %v3495_v0 = vadd.f32 %v3494_v57, %v3493_v44  ;;  %v3773_v54 = vadd.f32 %v5072_v40, %v2259_v34  ;;  %v3790_v48 = vadd.f32 %v4938_v12, %v3492_v55 }
 0x245   : > { %v2505_v43 = vadd.f32 %v2504_v35, %v2474_v17  ;;  %2408 = vst [vmem:[%s5065_s18 + $0x90] sm:$0xff] %v2376_v18  ;;  %v2436_v36 = vadd.f32 %v2435_v46, %v2373_v60  ;;  %v2377_v52 = vadd.f32 %v3770_v63, %v5056_v14  ;;  %v2478_v56 = vmul.f32 %v2376_v18, %v2376_v18 }
 0x246   : > { %2406 = vst [vmem:[%s5065_s18 + $0x80] sm:$0xff] %v2374_v41  ;;  %v2476_v2 = vmul.f32 %v2374_v41, %v2374_v41  ;;  %v2375_v32 = vadd.f32 %v3773_v54, %v5056_v14  ;;  %v3796_v23 = vadd.f32 %v4948_v16, %v3495_v0 }
 0x247   : > { %v2437_v27 = vadd.f32 %v2436_v36, %v2374_v41  ;;  %v2506_v50 = vadd.f32 %v2505_v43, %v2475_v8  ;;  %2409 = vst [vmem:[%s5065_s18 + $0x98] sm:$0xff] %v2377_v52 }
 0x248   : > { %2407 = vst [vmem:[%s5065_s18 + $0x88] sm:$0xff] %v2375_v32  ;;  %v2477_v37 = vmul.f32 %v2375_v32, %v2375_v32  ;;  %v3496_v40 = vpop.f32.mrb[132].mxu0  ;;  %v3672_v9 = vpop.f32.mrb[4].mxu1 }
 0x249   : > { %v2507_v12 = vadd.f32 %v2506_v50, %v2476_v2  ;;  %v2438_v30 = vadd.f32 %v2437_v27, %v2375_v32  ;;  %v3776_v20 = vadd.f32 %v3775_v22, %v3672_v9  ;;  %v3497_v53 = vpop.f32.mrb[133].mxu0  ;;  %v2272_v42 = vpop.f32.mrb[5].mxu1 }
 0x24a   : > { %v3498_v61 = vadd.f32 %v3497_v53, %v3496_v40  ;;  %v3779_v3 = vadd.f32 %v5101_v1, %v2272_v42  ;;  %v3499_v11 = vpop.f32.mrb[134].mxu0  ;;  %v3673_v31 = vpop.f32.mrb[6].mxu1  ;;  %v2479_v1 = vmul.f32 %v2377_v52, %v2377_v52 }
 0x24b   : > { %v2439_v16 = vadd.f32 %v2438_v30, %v2376_v18  ;;  %v2508_v5 = vadd.f32 %v2507_v12, %v2477_v37  ;;  %v2380_v59 = vadd.f32 %v3776_v20, %v5056_v14  ;;  %v3782_v60 = vadd.f32 %v3781_v7, %v3673_v31  ;;  %v3500_v29 = vpop.f32.mrb[135].mxu0  ;;  %v2275_v6 = vpop.f32.mrb[7].mxu1 }
 0x24c   : > { %v2378_v22 = vadd.f32 %v3779_v3, %v5056_v14  ;;  %v3501_v51 = vadd.f32 %v3500_v29, %v3499_v11  ;;  %v3785_v28 = vadd.f32 %v5108_v47, %v2275_v6  ;;  %v3787_v13 = vadd.f32 %v4960_v26, %v3498_v61 }
 0x24d   : > { %v2509_v39 = vadd.f32 %v2508_v5, %v2478_v56  ;;  %2412 = vst [vmem:[%s5065_s18 + $0xb0] sm:$0xff] %v2380_v59  ;;  %v2440_v58 = vadd.f32 %v2439_v16, %v2377_v52  ;;  %v2381_v10 = vadd.f32 %v3782_v60, %v5056_v14  ;;  %v2482_v35 = vmul.f32 %v2380_v59, %v2380_v59 }
 0x24e   : > { %2410 = vst [vmem:[%s5065_s18 + $0xa0] sm:$0xff] %v2378_v22  ;;  %v2480_v38 = vmul.f32 %v2378_v22, %v2378_v22  ;;  %v2379_v7 = vadd.f32 %v3785_v28, %v5056_v14  ;;  %v3793_v49 = vadd.f32 %v4970_v21, %v3501_v51 }
 0x24f   : > { %v2441_v33 = vadd.f32 %v2440_v58, %v2378_v22  ;;  %v2510_v24 = vadd.f32 %v2509_v39, %v2479_v1  ;;  %2413 = vst [vmem:[%s5065_s18 + $0xb8] sm:$0xff] %v2381_v10  ;;  %v2483_v27 = vmul.f32 %v2381_v10, %v2381_v10 }
 0x250   : > { %2411 = vst [vmem:[%s5065_s18 + $0xa8] sm:$0xff] %v2379_v7  ;;  %v2481_v17 = vmul.f32 %v2379_v7, %v2379_v7  ;;  %v3502_v47 = vpop.f32.mrb[136].mxu0  ;;  %v3676_v55 = vpop.f32.mrb[8].mxu1 }
 0x251   : > { %v2511_v26 = vadd.f32 %v2510_v24, %v2480_v38  ;;  %v2442_v15 = vadd.f32 %v2441_v33, %v2379_v7  ;;  %v3788_v44 = vadd.f32 %v3787_v13, %v3676_v55  ;;  %v3503_v4 = vpop.f32.mrb[137].mxu0  ;;  %v2288_v46 = vpop.f32.mrb[9].mxu1 }
 0x252   : > { %v3504_v18 = vadd.f32 %v3503_v4, %v3502_v47  ;;  %v3791_v63 = vadd.f32 %v3790_v48, %v2288_v46  ;;  %v3505_v57 = vpop.f32.mrb[138].mxu0  ;;  %v3677_v34 = vpop.f32.mrb[10].mxu1 }
 0x253   : > { %v2443_v21 = vadd.f32 %v2442_v15, %v2380_v59  ;;  %v2512_v41 = vadd.f32 %v2511_v26, %v2481_v17  ;;  %v2384_v0 = vadd.f32 %v3788_v44, %v5056_v14  ;;  %v3794_v54 = vadd.f32 %v3793_v49, %v3677_v34  ;;  %v3506_v8 = vpop.f32.mrb[139].mxu0  ;;  %v2291_v43 = vpop.f32.mrb[11].mxu1 }
 0x254   : > { %v2382_v36 = vadd.f32 %v3791_v63, %v5056_v14  ;;  %v3507_v52 = vadd.f32 %v3506_v8, %v3505_v57  ;;  %v3797_v2 = vadd.f32 %v3796_v23, %v2291_v43  ;;  %v3802_v32 = vadd.f32 %v4982_v62, %v3504_v18 }
 0x255   : > { %v2513_v48 = vadd.f32 %v2512_v41, %v2482_v35  ;;  %2416 = vst [vmem:[%s5065_s18 + $0xd0] sm:$0xff] %v2384_v0  ;;  %v2444_v50 = vadd.f32 %v2443_v21, %v2381_v10  ;;  %v2385_v37 = vadd.f32 %v3794_v54, %v5056_v14  ;;  %v2486_v59 = vmul.f32 %v2384_v0, %v2384_v0 }
 0x256   : > { %2414 = vst [vmem:[%s5065_s18 + $0xc0] sm:$0xff] %v2382_v36  ;;  %v2484_v40 = vmul.f32 %v2382_v36, %v2382_v36  ;;  %v2383_v9 = vadd.f32 %v3797_v2, %v5056_v14  ;;  %v3808_v12 = vadd.f32 %v4990_v19, %v3507_v52 }
 0x257   : > { %v2445_v30 = vadd.f32 %v2444_v50, %v2382_v36  ;;  %v2514_v20 = vadd.f32 %v2513_v48, %v2483_v27  ;;  %2417 = vst [vmem:[%s5065_s18 + $0xd8] sm:$0xff] %v2385_v37  ;;  %v2487_v1 = vmul.f32 %v2385_v37, %v2385_v37  ;;  %v2639_v27 = vld [vmem:[%s5065_s18 + $0x8] sm:$0xff] (%p4115_p5)  ;;  %v2641_v48 = vld [vmem:[%s5065_s18 + $0x10] sm:$0xff] (%p4115_p5)  ;;  %v2643_v50 = vld [vmem:[%s5065_s18 + $0x18] sm:$0xff] (%p4115_p5) }
 0x258   : > { %2415 = vst [vmem:[%s5065_s18 + $0xc8] sm:$0xff] %v2383_v9  ;;  %v2485_v53 = vmul.f32 %v2383_v9, %v2383_v9  ;;  %v3508_v23 = vpop.f32.mrb[140].mxu0  ;;  %v3680_v42 = vpop.f32.mrb[12].mxu1  ;;  %2640 = vst [vmem:[%s5189_s10 + $0x8] sm:$0xff] (%p4115_p5), %v2639_v27 }
 0x259   : > { %v2515_v62 = vadd.f32 %v2514_v20, %v2484_v40  ;;  %v2446_v56 = vadd.f32 %v2445_v30, %v2383_v9  ;;  %v3509_v61 = vpop.f32.mrb[141].mxu0  ;;  %v2304_v3 = vpop.f32.mrb[13].mxu1  ;;  %v2647_v40 = vld [vmem:[%s5065_s18 + $0x28] sm:$0xff] (%p4115_p5)  ;;  %2642 = vst [vmem:[%s5189_s10 + $0x20] sm:$0xff] (%p4115_p5), %v2641_v48  ;;  %2644 = vst [vmem:[%s5189_s10 + $0x28] sm:$0xff] (%p4115_p5), %v2643_v50  ;;  %v2649_v9 = vld [vmem:[%s5065_s18 + $0x30] sm:$0xff] (%p4115_p5) }
 0x25a   : > { %v3510_v11 = vadd.f32 %v3509_v61, %v3508_v23  ;;  %v3803_v31 = vadd.f32 %v3802_v32, %v2304_v3  ;;  %v3511_v16 = vpop.f32.mrb[142].mxu0  ;;  %v3681_v5 = vpop.f32.mrb[14].mxu1  ;;  %v2637_v32 = vld [vmem:[%s5065_s18] sm:$0xff] (%p4115_p5)  ;;  %2648 = vst [vmem:[%s5189_s10 + $0x48] sm:$0xff] (%p4115_p5), %v2647_v40  ;;  %2650 = vst [vmem:[%s5189_s10 + $0x60] sm:$0xff] (%p4115_p5), %v2649_v9  ;;  %v2655_v20 = vld [vmem:[%s5065_s18 + $0x48] sm:$0xff] (%p4115_p5) }
 0x25b   : > { %v2447_v60 = vadd.f32 %v2446_v56, %v2384_v0  ;;  %v2516_v29 = vadd.f32 %v2515_v62, %v2485_v53  ;;  %v3512_v19 = vpop.f32.mrb[143].mxu0  ;;  %v2307_v6 = vpop.f32.mrb[15].mxu1  ;;  %2638 = vst [vmem:[%s5189_s10] sm:$0xff] (%p4115_p5), %v2637_v32  ;;  %v2653_v30 = vld [vmem:[%s5065_s18 + $0x40] sm:$0xff] (%p4115_p5)  ;;  %v2657_v53 = vld [vmem:[%s5065_s18 + $0x50] sm:$0xff] (%p4115_p5)  ;;  %v2659_v23 = vld [vmem:[%s5065_s18 + $0x58] sm:$0xff] (%p4115_p5) }
 0x25c   : > { %v3799_v22 = vadd.f32 %v5000_v45, %v3510_v11  ;;  %v2386_v51 = vadd.f32 %v3803_v31, %v5056_v14  ;;  %v3513_v28 = vadd.f32 %v3512_v19, %v3511_v16  ;;  %v3809_v13 = vadd.f32 %v3808_v12, %v2307_v6  ;;  %v2651_v12 = vld [vmem:[%s5065_s18 + $0x38] sm:$0xff] (%p4115_p5)  ;;  %2654 = vst [vmem:[%s5189_s10 + $0x80] sm:$0xff] (%p4115_p5), %v2653_v30  ;;  %v2663_v62 = vld [vmem:[%s5065_s18 + $0x68] sm:$0xff] (%p4115_p5)  ;;  %v2665_v56 = vld [vmem:[%s5065_s18 + $0x70] sm:$0xff] (%p4115_p5) }
 0x25d   : > { %v2517_v39 = vadd.f32 %v2516_v29, %v2486_v59  ;;  %v2448_v58 = vadd.f32 %v2447_v60, %v2385_v37  ;;  %v2645_v37 = vld [vmem:[%s5065_s18 + $0x20] sm:$0xff] (%p4115_p5)  ;;  %2652 = vst [vmem:[%s5189_s10 + $0x68] sm:$0xff] (%p4115_p5), %v2651_v12  ;;  %2656 = vst [vmem:[%s5189_s10 + $0x88] sm:$0xff] (%p4115_p5), %v2655_v20  ;;  %v2667_v61 = vld [vmem:[%s5065_s18 + $0x78] sm:$0xff] (%p4115_p5) }
 0x25e   : > { %v3800_v10 = vadd.f32 %v3799_v22, %v3680_v42  ;;  %2418 = vst [vmem:[%s5065_s18 + $0xe0] sm:$0xff] %v2386_v51  ;;  %v2488_v38 = vmul.f32 %v2386_v51, %v2386_v51  ;;  %v3805_v7 = vadd.f32 %v5008_v25, %v3513_v28  ;;  %v2387_v49 = vadd.f32 %v3809_v13, %v5056_v14  ;;  %v2661_v42 = vld [vmem:[%s5065_s18 + $0x60] sm:$0xff] (%p4115_p5)  ;;  %v2671_v11 = vld [vmem:[%s5065_s18 + $0x88] sm:$0xff] (%p4115_p5)  ;;  %v2673_v31 = vld [vmem:[%s5065_s18 + $0x90] sm:$0xff] (%p4115_p5) }
 0x25f   : > { %v2449_v33 = vadd.f32 %v2448_v58, %v2386_v51  ;;  %v2518_v45 = vadd.f32 %v2517_v39, %v2487_v1  ;;  %2646 = vst [vmem:[%s5189_s10 + $0x40] sm:$0xff] (%p4115_p5), %v2645_v37  ;;  %2658 = vst [vmem:[%s5189_s10 + $0xa0] sm:$0xff] (%p4115_p5), %v2657_v53  ;;  %v2669_v3 = vld [vmem:[%s5065_s18 + $0x80] sm:$0xff] (%p4115_p5)  ;;  %v2675_v16 = vld [vmem:[%s5065_s18 + $0x98] sm:$0xff] (%p4115_p5) }
 0x260   : > { %v2388_v24 = vadd.f32 %v3800_v10, %v5056_v14  ;;  %v3806_v17 = vadd.f32 %v3805_v7, %v3681_v5  ;;  %2419 = vst [vmem:[%s5065_s18 + $0xe8] sm:$0xff] %v2387_v49  ;;  %v2489_v47 = vmul.f32 %v2387_v49, %v2387_v49  ;;  %2660 = vst [vmem:[%s5189_s10 + $0xa8] sm:$0xff] (%p4115_p5), %v2659_v23  ;;  %v2677_v5 = vld [vmem:[%s5065_s18 + $0xa0] sm:$0xff] (%p4115_p5)  ;;  %v2679_v59 = vld [vmem:[%s5065_s18 + $0xa8] sm:$0xff] (%p4115_p5) }
 0x261   : > { %v2519_v55 = vadd.f32 %v2518_v45, %v2488_v38  ;;  %v2450_v26 = vadd.f32 %v2449_v33, %v2387_v49  ;;  %2662 = vst [vmem:[%s5189_s10 + $0xc0] sm:$0xff] (%p4115_p5), %v2661_v42  ;;  %2664 = vst [vmem:[%s5189_s10 + $0xc8] sm:$0xff] (%p4115_p5), %v2663_v62  ;;  %v2681_v60 = vld [vmem:[%s5065_s18 + $0xb0] sm:$0xff] (%p4115_p5)  ;;  %v2683_v29 = vld [vmem:[%s5065_s18 + $0xb8] sm:$0xff] (%p4115_p5) }
 0x262   : > { %2420 = vst [vmem:[%s5065_s18 + $0xf0] sm:$0xff] %v2388_v24  ;;  %v2490_v15 = vmul.f32 %v2388_v24, %v2388_v24  ;;  %v2389_v44 = vadd.f32 %v3806_v17, %v5056_v14  ;;  %2666 = vst [vmem:[%s5189_s10 + $0xe0] sm:$0xff] (%p4115_p5), %v2665_v56  ;;  %v2685_v19 = vld [vmem:[%s5065_s18 + $0xc0] sm:$0xff] (%p4115_p5)  ;;  %v2687_v6 = vld [vmem:[%s5065_s18 + $0xc8] sm:$0xff] (%p4115_p5) }
 0x263   : > { %v2451_v4 = vadd.f32 %v2450_v26, %v2388_v24  ;;  %v2520_v46 = vadd.f32 %v2519_v55, %v2489_v47  ;;  %2668 = vst [vmem:[%s5189_s10 + $0xe8] sm:$0xff] (%p4115_p5), %v2667_v61  ;;  %2670 = vst [vmem:[%s5189_s10 + $0x100] sm:$0xff] (%p4115_p5), %v2669_v3  ;;  %v2689_v22 = vld [vmem:[%s5065_s18 + $0xd0] sm:$0xff] (%p4115_p5)  ;;  %v2691_v51 = vld [vmem:[%s5065_s18 + $0xd8] sm:$0xff] (%p4115_p5) }
 0x264   : > { %2421 = vst [vmem:[%s5065_s18 + $0xf8] sm:$0xff] %v2389_v44  ;;  %v2491_v25 = vmul.f32 %v2389_v44, %v2389_v44  ;;  %2672 = vst [vmem:[%s5189_s10 + $0x108] sm:$0xff] (%p4115_p5), %v2671_v11 }
 0x265   : > { %v2452_v35 = vadd.f32 %v2451_v4, %v2389_v44  ;;  %v2521_v18 = vadd.f32 %v2520_v46, %v2490_v15  ;;  %2674 = vst [vmem:[%s5189_s10 + $0x120] sm:$0xff] (%p4115_p5), %v2673_v31  ;;  %2676 = vst [vmem:[%s5189_s10 + $0x128] sm:$0xff] (%p4115_p5), %v2675_v16  ;;  %v2693_v28 = vld [vmem:[%s5065_s18 + $0xe0] sm:$0xff] (%p4115_p5) }
 0x266   : > { %2678 = vst [vmem:[%s5189_s10 + $0x140] sm:$0xff] (%p4115_p5), %v2677_v5  ;;  %2680 = vst [vmem:[%s5189_s10 + $0x148] sm:$0xff] (%p4115_p5), %v2679_v59 }
 0x267   : > { %v2453_v63 = vrot.slane %v2452_v35, 4  ;;  %v2522_v57 = vadd.f32 %v2521_v18, %v2491_v25  ;;  %2682 = vst [vmem:[%s5189_s10 + $0x160] sm:$0xff] (%p4115_p5), %v2681_v60  ;;  %2684 = vst [vmem:[%s5189_s10 + $0x168] sm:$0xff] (%p4115_p5), %v2683_v29  ;;  %v2695_v13 = vld [vmem:[%s5065_s18 + $0xe8] sm:$0xff] (%p4115_p5) }
 0x268   : > { %2686 = vst [vmem:[%s5189_s10 + $0x180] sm:$0xff] (%p4115_p5), %v2685_v19  ;;  %2688 = vst [vmem:[%s5189_s10 + $0x188] sm:$0xff] (%p4115_p5), %v2687_v6 }
 0x269   : > { %v2454_v34 = vadd.f32 %v2453_v63, %v2452_v35  ;;  %v2523_v21 = vrot.slane %v2522_v57, 4  ;;  %2690 = vst [vmem:[%s5189_s10 + $0x1a0] sm:$0xff] (%p4115_p5), %v2689_v22  ;;  %2692 = vst [vmem:[%s5189_s10 + $0x1a8] sm:$0xff] (%p4115_p5), %v2691_v51  ;;  %v2697_v1 = vld [vmem:[%s5065_s18 + $0xf0] sm:$0xff] (%p4115_p5) }
 0x26a   : > { %2694 = vst [vmem:[%s5189_s10 + $0x1c0] sm:$0xff] (%p4115_p5), %v2693_v28  ;;  %2696 = vst [vmem:[%s5189_s10 + $0x1c8] sm:$0xff] (%p4115_p5), %v2695_v13 }
 0x26b   : > { %v2455_v41 = vrot.slane %v2454_v34, 2  ;;  %v2524_v0 = vadd.f32 %v2523_v21, %v2522_v57  ;;  %v2699_v39 = vld [vmem:[%s5065_s18 + $0xf8] sm:$0xff] (%p4115_p5)  ;;  %2698 = vst [vmem:[%s5189_s10 + $0x1e0] sm:$0xff] (%p4115_p5), %v2697_v1 }
 0x26c   : > { %2700 = vst [vmem:[%s5189_s10 + $0x1e8] sm:$0xff] (%p4115_p5), %v2699_v39 }
 0x26d   : > { %v2456_v54 = vadd.f32 %v2455_v41, %v2454_v34  ;;  %v2525_v8 = vrot.slane %v2524_v0, 2 }
 0x26f   : > { %v2457_v43 = vrot.slane %v2456_v54, 1  ;;  %v2526_v36 = vadd.f32 %v2525_v8, %v2524_v0  ;;  %2544 = sbr.rel (!%p4115_p5) target bundleno = 630 (0x276), region = 62 }
 0x271   : > { %v2458_v14 = vadd.f32 %v2457_v43, %v2456_v54  ;;  %v2527_v52 = vrot.slane %v2526_v36, 1 }
 0x273   : > { %2459 = vst [vmem:[%s409_s28] sm:$0xff] %v2458_v14  ;;  %v2528_v2 = vadd.f32 %v2527_v52, %v2526_v36 }
 0x275   : > { %2529 = vst [vmem:[%s413_s6] sm:$0xff] %v2528_v2 }
 0x276 PF: > { %p13_p11 = scmp.ge.s32.totalorder %s4103_s22, 4   ;;  %s5273_s18 = smov %s4048_s19 }
 0x277   : > { %s5274_s19 = smov %s4113_s25  ;;  %s5275_s20 = smov %s4103_s22 }
 0x278   :  { %15 = sbr.rel (!%p13_p11) target bundleno = 2 (0x2), region = 163 }

</bundles_post_ra>
